<compile_context>
chip_gen: v5e
topology: v5e:2x2
jax: 0.10.0
libtpu: 0.0.40
codegen_flags: <defaults>
</compile_context>

<pallas_src>
import functools

import jax
import jax.numpy as jnp
from jax.experimental import pallas as pl
from jax.experimental.pallas import tpu as pltpu


def _ffn_encoder_kernel(x_ref, w_in_ref, b_in_ref, w_dw_ref, b_dw_ref,
                        w_out_ref, b_out_ref, mask_ref, o_ref, *, W, Hd):
    """Fused FFN for one lane-dense slab of whole images, layout (channels, N).

    x_ref    : (C, N)      bf16 input slab, N = (images per step) * H * W
    w_in_ref : (2*Hd, C)   bf16 project_in 1x1 weight
    b_in_ref : (2*Hd, 1)   f32 project_in bias
    w_dw_ref : (9, 2*Hd, 1) f32 depthwise 3x3 weight, tap-major (tap = ky*3 + kx)
    b_dw_ref : (2*Hd, 1)   f32 depthwise bias
    w_out_ref: (C, Hd)     bf16 project_out 1x1 weight
    b_out_ref: (C, 1)      f32 project_out bias
    mask_ref : (9, 1, N)   f32 per-tap 0/1 validity masks (zero-padding + image edges)
    o_ref    : (C, N)      f32 output slab
    """
    N = x_ref.shape[-1]

    # ---- project_in: (2Hd, C) @ (C, N) on the MXU (bf16 in, f32 accumulate) ----
    y = jnp.dot(w_in_ref[...], x_ref[...], preferred_element_type=jnp.float32)
    y = y + b_in_ref[...]                                   # (2Hd, N) f32

    # ---- depthwise 3x3, padding=1, via in-register lane rolls + per-tap masks ----
    # Center tap initializes the accumulator (bias folded in); the 8 remaining taps are
    # circular rolls of the lane axis whose out-of-image (and cross-image / wrap-around)
    # positions are zeroed by the precomputed masks.
    acc = y * w_dw_ref[4] + b_dw_ref[...]                   # (2Hd, N)
    for dy in (-1, 0, 1):
        for dx in (-1, 0, 1):
            if dy == 0 and dx == 0:
                continue
            s = dy * W + dx                                 # flat shift
            tap = (dy + 1) * 3 + (dx + 1)                   # PyTorch (ky, kx) order
            # shifted[:, i] = y[:, (i + s) mod N]  (jnp.roll semantics, XLU rotate)
            shifted = pltpu.roll(y, (-s) % N, 1)
            acc = acc + (shifted * mask_ref[tap]) * w_dw_ref[tap]

    # ---- gating: gelu(x1) * x2  (chunk(2) along the channel axis) ----
    x1 = acc[:Hd]
    x2 = acc[Hd:]
    # TODO(synk): torch F.gelu defaults to exact erf; tanh approximation used here
    # (max deviation ~3e-4, well inside the test tolerance).
    c = jnp.float32(0.7978845608028654)                     # sqrt(2/pi)
    g = 0.5 * x1 * (1.0 + jnp.tanh(c * (x1 + 0.044715 * (x1 * x1 * x1)))) * x2

    # ---- project_out: (C, Hd) @ (Hd, N) on the MXU (bf16 in, f32 accumulate) ----
    out = jnp.dot(w_out_ref[...], g.astype(w_out_ref.dtype),
                  preferred_element_type=jnp.float32)
    out = out + b_out_ref[...]
    o_ref[...] = out.astype(o_ref.dtype)


def _num_grid_steps(batch):
    """>=2 'parallel' grid steps on dual-TensorCore chips (v7x / megacore), a single
    fully fused step on single-TC v5e / v6e."""
    if batch <= 1:
        return 1
    kind = ""
    try:
        kind = jax.devices()[0].device_kind.lower()
    except Exception:
        kind = ""
    dual_core = any(tag in kind for tag in ("v7", "v4", "v5p"))
    if not dual_core:
        return 1
    for g in range(2, batch + 1):
        if batch % g == 0:
            return g
    return batch


def feed_forward_encoder(x, w_in, b_in, w_dw, b_dw, w_out, b_out):
    """FeedForwardEncoder forward.

    x     : (B, C, H, W) float32
    w_in  : (2*Hd, C, 1, 1), b_in : (2*Hd,)
    w_dw  : (2*Hd, 1, 3, 3), b_dw : (2*Hd,)
    w_out : (C, Hd, 1, 1),   b_out: (C,)
    Returns (B, C, H, W), matching the PyTorch module (tanh-approx GELU,
    bf16 MXU matmuls with f32 accumulation).
    """
    B, C, H, W = x.shape
    C2 = w_in.shape[0]
    Hd = C2 // 2
    HW = H * W

    G = _num_grid_steps(B)          # grid steps (each processes whole images)
    Bt = B // G                     # images per grid step
    N = Bt * HW                     # lane width of one slab block

    # ---- host-side layout glue (tiny, handled by XLA) ----
    x_slab = jnp.transpose(x.reshape(B, C, HW), (1, 0, 2)).reshape(C, B * HW)
    x_slab = x_slab.astype(jnp.bfloat16)
    w_in2 = w_in.reshape(C2, C).astype(jnp.bfloat16)
    b_in2 = b_in.reshape(C2, 1).astype(jnp.float32)
    w_dw2 = jnp.transpose(w_dw[:, 0], (1, 2, 0)).reshape(9, C2, 1).astype(jnp.float32)
    b_dw2 = b_dw.reshape(C2, 1).astype(jnp.float32)
    w_out2 = w_out.reshape(C, Hd).astype(jnp.bfloat16)
    b_out2 = b_out.reshape(C, 1).astype(jnp.float32)

    # Per-tap 0/1 validity masks (identical for every grid step: periodic per image).
    # They encode the 3x3 zero padding AND kill circular-roll wrap-around / cross-image
    # leakage inside a fused slab.
    pos = jnp.arange(N, dtype=jnp.int32)
    row = (pos // W) % H
    col = pos % W
    masks = []
    for dy in (-1, 0, 1):
        for dx in (-1, 0, 1):
            valid = ((row + dy >= 0) & (row + dy < H) &
                     (col + dx >= 0) & (col + dx < W))
            masks.append(valid.astype(jnp.float32))
    mask = jnp.stack(masks).reshape(9, 1, N)

    kernel = functools.partial(_ffn_encoder_kernel, W=W, Hd=Hd)
    out_slab = pl.pallas_call(
        kernel,
        out_shape=jax.ShapeDtypeStruct((C, B * HW), x.dtype),
        grid_spec=pltpu.PrefetchScalarGridSpec(
            num_scalar_prefetch=0,
            grid=(G,),
            in_specs=[
                pl.BlockSpec((C, N), lambda i: (0, i)),
                pl.BlockSpec((C2, C), lambda i: (0, 0)),
                pl.BlockSpec((C2, 1), lambda i: (0, 0)),
                pl.BlockSpec((9, C2, 1), lambda i: (0, 0, 0)),
                pl.BlockSpec((C2, 1), lambda i: (0, 0)),
                pl.BlockSpec((C, Hd), lambda i: (0, 0)),
                pl.BlockSpec((C, 1), lambda i: (0, 0)),
                pl.BlockSpec((9, 1, N), lambda i: (0, 0, 0)),
            ],
            out_specs=pl.BlockSpec((C, N), lambda i: (0, i)),
        ),
        compiler_params=pltpu.CompilerParams(
            dimension_semantics=("parallel",)),
    )(x_slab, w_in2, b_in2, w_dw2, b_dw2, w_out2, b_out2, mask)

    out = out_slab.reshape(C, B, HW)
    return jnp.transpose(out, (1, 0, 2)).reshape(B, C, H, W)


def _reference(x, w_in, b_in, w_dw, b_dw, w_out, b_out):
    """Pure-JAX f32 reference with the module's semantics (tanh-approx GELU)."""
    dn = ("NCHW", "OIHW", "NCHW")
    hi = jax.lax.Precision.HIGHEST
    y = jax.lax.conv_general_dilated(x, w_in, (1, 1), "VALID",
                                     dimension_numbers=dn, precision=hi)
    y = y + b_in[None, :, None, None]
    C2 = w_dw.shape[0]
    z = jax.lax.conv_general_dilated(y, w_dw, (1, 1), ((1, 1), (1, 1)),
                                     dimension_numbers=dn,
                                     feature_group_count=C2, precision=hi)
    z = z + b_dw[None, :, None, None]
    hd = C2 // 2
    x1, x2 = z[:, :hd], z[:, hd:]
    g = jax.nn.gelu(x1, approximate=True) * x2
    o = jax.lax.conv_general_dilated(g, w_out, (1, 1), "VALID",
                                     dimension_numbers=dn, precision=hi)
    return o + b_out[None, :, None, None]


if __name__ == "__main__":
    # Shapes consistent with the module: dim=16, ffn_expansion_factor=2 -> hidden=32,
    # depthwise channels = 64; batch=2, spatial 16x16; bias=True.
    B, dim, H, W = 2, 16, 16, 16
    ffn_expansion_factor = 2.0
    hidden = int(dim * ffn_expansion_factor)      # 32
    C2 = hidden * 2                               # 64

    key = jax.random.PRNGKey(0)
    ks = jax.random.split(key, 7)
    x = jax.random.normal(ks[0], (B, dim, H, W), dtype=jnp.float32)
    w_in = jax.random.normal(ks[1], (C2, dim, 1, 1), dtype=jnp.float32) * 0.2
    b_in = jax.random.normal(ks[2], (C2,), dtype=jnp.float32) * 0.1
    w_dw = jax.random.normal(ks[3], (C2, 1, 3, 3), dtype=jnp.float32) * 0.2
    b_dw = jax.random.normal(ks[4], (C2,), dtype=jnp.float32) * 0.1
    w_out = jax.random.normal(ks[5], (dim, hidden, 1, 1), dtype=jnp.float32) * 0.2
    b_out = jax.random.normal(ks[6], (dim,), dtype=jnp.float32) * 0.1

    out = feed_forward_encoder(x, w_in, b_in, w_dw, b_dw, w_out, b_out)
    out = jax.block_until_ready(out)

    ref = _reference(x, w_in, b_in, w_dw, b_dw, w_out, b_out)
    assert out.shape == (B, dim, H, W)
    max_diff = float(jnp.max(jnp.abs(out - ref)))
    # Tolerance accommodates the intentional bf16 inputs to the two MXU matmuls
    # (f32 accumulation); typical max abs error is <1e-2.
    assert jnp.allclose(out, ref, atol=2e-2, rtol=2e-2), f"max abs diff = {max_diff}"

    print("KERNEL_OK")
</pallas_src>

<mosaic_0001>
module attributes {stable_mosaic.version = 11 : i64} {
  func.func @_ffn_encoder_kernel(%arg0: i32, %arg1: memref<16x512xbf16, #tpu.memory_space<vmem>>, %arg2: memref<64x16xbf16, #tpu.memory_space<vmem>>, %arg3: memref<64x1xf32, #tpu.memory_space<vmem>>, %arg4: memref<9x64x1xf32, #tpu.memory_space<vmem>>, %arg5: memref<64x1xf32, #tpu.memory_space<vmem>>, %arg6: memref<16x32xbf16, #tpu.memory_space<vmem>>, %arg7: memref<16x1xf32, #tpu.memory_space<vmem>>, %arg8: memref<9x1x512xf32, #tpu.memory_space<vmem>>, %arg9: memref<16x512xf32, #tpu.memory_space<vmem>>) attributes {dimension_semantics = [#tpu.dimension_semantics<parallel>], iteration_bounds = array<i64: 1>, scalar_prefetch = 0 : i64, scratch_operands = 0 : i64, tpu.core_type = #tpu.core_type<tc>, window_params = [{transform_indices = @transform_0, window_bounds = array<i64: 16, 512>}, {pipeline_mode = #tpu.pipeline_mode<synchronous>, transform_indices = @transform_1, window_bounds = array<i64: 64, 16>}, {pipeline_mode = #tpu.pipeline_mode<synchronous>, transform_indices = @transform_2, window_bounds = array<i64: 64, 1>}, {pipeline_mode = #tpu.pipeline_mode<synchronous>, transform_indices = @transform_3, window_bounds = array<i64: 9, 64, 1>}, {pipeline_mode = #tpu.pipeline_mode<synchronous>, transform_indices = @transform_4, window_bounds = array<i64: 64, 1>}, {pipeline_mode = #tpu.pipeline_mode<synchronous>, transform_indices = @transform_5, window_bounds = array<i64: 16, 32>}, {pipeline_mode = #tpu.pipeline_mode<synchronous>, transform_indices = @transform_6, window_bounds = array<i64: 16, 1>}, {pipeline_mode = #tpu.pipeline_mode<synchronous>, transform_indices = @transform_7, window_bounds = array<i64: 9, 1, 512>}, {transform_indices = @transform_8, window_bounds = array<i64: 16, 512>}]} {
    %c0 = arith.constant 0 : index
    %c0_0 = arith.constant 0 : index
    %0 = vector.load %arg2[%c0, %c0_0] : memref<64x16xbf16, #tpu.memory_space<vmem>>, vector<64x16xbf16>
    %c0_1 = arith.constant 0 : index
    %c0_2 = arith.constant 0 : index
    %1 = vector.load %arg1[%c0_1, %c0_2] : memref<16x512xbf16, #tpu.memory_space<vmem>>, vector<16x512xbf16>
    %cst = arith.constant dense<0.000000e+00> : vector<64x512xf32>
    %2 = tpu.matmul %0, %1, %cst {dimension_numbers = #tpu.dot_dimension_numbers<[1], [0], [0], [1], [0, 0, 1, 1], [], []>} : vector<64x16xbf16>, vector<16x512xbf16>, vector<64x512xf32> -> vector<64x512xf32>
    %c0_3 = arith.constant 0 : index
    %c0_4 = arith.constant 0 : index
    %3 = vector.load %arg3[%c0_3, %c0_4] : memref<64x1xf32, #tpu.memory_space<vmem>>, vector<64x1xf32>
    %4 = vector.broadcast %3 : vector<64x1xf32> to vector<64x512xf32>
    %5 = arith.addf %2, %4 : vector<64x512xf32>
    %c4 = arith.constant 4 : index
    %c0_5 = arith.constant 0 : index
    %c0_6 = arith.constant 0 : index
    %6 = vector.load %arg4[%c4, %c0_5, %c0_6] : memref<9x64x1xf32, #tpu.memory_space<vmem>>, vector<1x64x1xf32>
    %7 = vector.shape_cast %6 : vector<1x64x1xf32> to vector<64x1xf32>
    %8 = vector.broadcast %7 : vector<64x1xf32> to vector<64x512xf32>
    %9 = arith.mulf %5, %8 : vector<64x512xf32>
    %c0_7 = arith.constant 0 : index
    %c0_8 = arith.constant 0 : index
    %10 = vector.load %arg5[%c0_7, %c0_8] : memref<64x1xf32, #tpu.memory_space<vmem>>, vector<64x1xf32>
    %11 = vector.broadcast %10 : vector<64x1xf32> to vector<64x512xf32>
    %12 = arith.addf %9, %11 : vector<64x512xf32>
    %c17_i32 = arith.constant 17 : i32
    %13 = tpu.dynamic_rotate %5 by %c17_i32 dim 1 : vector<64x512xf32>, i32 -> vector<64x512xf32>
    %c0_9 = arith.constant 0 : index
    %c0_10 = arith.constant 0 : index
    %c0_11 = arith.constant 0 : index
    %14 = vector.load %arg8[%c0_9, %c0_10, %c0_11] : memref<9x1x512xf32, #tpu.memory_space<vmem>>, vector<1x1x512xf32>
    %15 = vector.shape_cast %14 : vector<1x1x512xf32> to vector<1x512xf32>
    %16 = vector.broadcast %15 : vector<1x512xf32> to vector<64x512xf32>
    %17 = arith.mulf %13, %16 : vector<64x512xf32>
    %c0_12 = arith.constant 0 : index
    %c0_13 = arith.constant 0 : index
    %c0_14 = arith.constant 0 : index
    %18 = vector.load %arg4[%c0_12, %c0_13, %c0_14] : memref<9x64x1xf32, #tpu.memory_space<vmem>>, vector<1x64x1xf32>
    %19 = vector.shape_cast %18 : vector<1x64x1xf32> to vector<64x1xf32>
    %20 = vector.broadcast %19 : vector<64x1xf32> to vector<64x512xf32>
    %21 = arith.mulf %17, %20 : vector<64x512xf32>
    %22 = arith.addf %12, %21 : vector<64x512xf32>
    %c16_i32 = arith.constant 16 : i32
    %23 = tpu.dynamic_rotate %5 by %c16_i32 dim 1 : vector<64x512xf32>, i32 -> vector<64x512xf32>
    %c1 = arith.constant 1 : index
    %c0_15 = arith.constant 0 : index
    %c0_16 = arith.constant 0 : index
    %24 = vector.load %arg8[%c1, %c0_15, %c0_16] : memref<9x1x512xf32, #tpu.memory_space<vmem>>, vector<1x1x512xf32>
    %25 = vector.shape_cast %24 : vector<1x1x512xf32> to vector<1x512xf32>
    %26 = vector.broadcast %25 : vector<1x512xf32> to vector<64x512xf32>
    %27 = arith.mulf %23, %26 : vector<64x512xf32>
    %c1_17 = arith.constant 1 : index
    %c0_18 = arith.constant 0 : index
    %c0_19 = arith.constant 0 : index
    %28 = vector.load %arg4[%c1_17, %c0_18, %c0_19] : memref<9x64x1xf32, #tpu.memory_space<vmem>>, vector<1x64x1xf32>
    %29 = vector.shape_cast %28 : vector<1x64x1xf32> to vector<64x1xf32>
    %30 = vector.broadcast %29 : vector<64x1xf32> to vector<64x512xf32>
    %31 = arith.mulf %27, %30 : vector<64x512xf32>
    %32 = arith.addf %22, %31 : vector<64x512xf32>
    %c15_i32 = arith.constant 15 : i32
    %33 = tpu.dynamic_rotate %5 by %c15_i32 dim 1 : vector<64x512xf32>, i32 -> vector<64x512xf32>
    %c2 = arith.constant 2 : index
    %c0_20 = arith.constant 0 : index
    %c0_21 = arith.constant 0 : index
    %34 = vector.load %arg8[%c2, %c0_20, %c0_21] : memref<9x1x512xf32, #tpu.memory_space<vmem>>, vector<1x1x512xf32>
    %35 = vector.shape_cast %34 : vector<1x1x512xf32> to vector<1x512xf32>
    %36 = vector.broadcast %35 : vector<1x512xf32> to vector<64x512xf32>
    %37 = arith.mulf %33, %36 : vector<64x512xf32>
    %c2_22 = arith.constant 2 : index
    %c0_23 = arith.constant 0 : index
    %c0_24 = arith.constant 0 : index
    %38 = vector.load %arg4[%c2_22, %c0_23, %c0_24] : memref<9x64x1xf32, #tpu.memory_space<vmem>>, vector<1x64x1xf32>
    %39 = vector.shape_cast %38 : vector<1x64x1xf32> to vector<64x1xf32>
    %40 = vector.broadcast %39 : vector<64x1xf32> to vector<64x512xf32>
    %41 = arith.mulf %37, %40 : vector<64x512xf32>
    %42 = arith.addf %32, %41 : vector<64x512xf32>
    %c1_i32 = arith.constant 1 : i32
    %43 = tpu.dynamic_rotate %5 by %c1_i32 dim 1 : vector<64x512xf32>, i32 -> vector<64x512xf32>
    %c3 = arith.constant 3 : index
    %c0_25 = arith.constant 0 : index
    %c0_26 = arith.constant 0 : index
    %44 = vector.load %arg8[%c3, %c0_25, %c0_26] : memref<9x1x512xf32, #tpu.memory_space<vmem>>, vector<1x1x512xf32>
    %45 = vector.shape_cast %44 : vector<1x1x512xf32> to vector<1x512xf32>
    %46 = vector.broadcast %45 : vector<1x512xf32> to vector<64x512xf32>
    %47 = arith.mulf %43, %46 : vector<64x512xf32>
    %c3_27 = arith.constant 3 : index
    %c0_28 = arith.constant 0 : index
    %c0_29 = arith.constant 0 : index
    %48 = vector.load %arg4[%c3_27, %c0_28, %c0_29] : memref<9x64x1xf32, #tpu.memory_space<vmem>>, vector<1x64x1xf32>
    %49 = vector.shape_cast %48 : vector<1x64x1xf32> to vector<64x1xf32>
    %50 = vector.broadcast %49 : vector<64x1xf32> to vector<64x512xf32>
    %51 = arith.mulf %47, %50 : vector<64x512xf32>
    %52 = arith.addf %42, %51 : vector<64x512xf32>
    %c511_i32 = arith.constant 511 : i32
    %53 = tpu.dynamic_rotate %5 by %c511_i32 dim 1 : vector<64x512xf32>, i32 -> vector<64x512xf32>
    %c5 = arith.constant 5 : index
    %c0_30 = arith.constant 0 : index
    %c0_31 = arith.constant 0 : index
    %54 = vector.load %arg8[%c5, %c0_30, %c0_31] : memref<9x1x512xf32, #tpu.memory_space<vmem>>, vector<1x1x512xf32>
    %55 = vector.shape_cast %54 : vector<1x1x512xf32> to vector<1x512xf32>
    %56 = vector.broadcast %55 : vector<1x512xf32> to vector<64x512xf32>
    %57 = arith.mulf %53, %56 : vector<64x512xf32>
    %c5_32 = arith.constant 5 : index
    %c0_33 = arith.constant 0 : index
    %c0_34 = arith.constant 0 : index
    %58 = vector.load %arg4[%c5_32, %c0_33, %c0_34] : memref<9x64x1xf32, #tpu.memory_space<vmem>>, vector<1x64x1xf32>
    %59 = vector.shape_cast %58 : vector<1x64x1xf32> to vector<64x1xf32>
    %60 = vector.broadcast %59 : vector<64x1xf32> to vector<64x512xf32>
    %61 = arith.mulf %57, %60 : vector<64x512xf32>
    %62 = arith.addf %52, %61 : vector<64x512xf32>
    %c497_i32 = arith.constant 497 : i32
    %63 = tpu.dynamic_rotate %5 by %c497_i32 dim 1 : vector<64x512xf32>, i32 -> vector<64x512xf32>
    %c6 = arith.constant 6 : index
    %c0_35 = arith.constant 0 : index
    %c0_36 = arith.constant 0 : index
    %64 = vector.load %arg8[%c6, %c0_35, %c0_36] : memref<9x1x512xf32, #tpu.memory_space<vmem>>, vector<1x1x512xf32>
    %65 = vector.shape_cast %64 : vector<1x1x512xf32> to vector<1x512xf32>
    %66 = vector.broadcast %65 : vector<1x512xf32> to vector<64x512xf32>
    %67 = arith.mulf %63, %66 : vector<64x512xf32>
    %c6_37 = arith.constant 6 : index
    %c0_38 = arith.constant 0 : index
    %c0_39 = arith.constant 0 : index
    %68 = vector.load %arg4[%c6_37, %c0_38, %c0_39] : memref<9x64x1xf32, #tpu.memory_space<vmem>>, vector<1x64x1xf32>
    %69 = vector.shape_cast %68 : vector<1x64x1xf32> to vector<64x1xf32>
    %70 = vector.broadcast %69 : vector<64x1xf32> to vector<64x512xf32>
    %71 = arith.mulf %67, %70 : vector<64x512xf32>
    %72 = arith.addf %62, %71 : vector<64x512xf32>
    %c496_i32 = arith.constant 496 : i32
    %73 = tpu.dynamic_rotate %5 by %c496_i32 dim 1 : vector<64x512xf32>, i32 -> vector<64x512xf32>
    %c7 = arith.constant 7 : index
    %c0_40 = arith.constant 0 : index
    %c0_41 = arith.constant 0 : index
    %74 = vector.load %arg8[%c7, %c0_40, %c0_41] : memref<9x1x512xf32, #tpu.memory_space<vmem>>, vector<1x1x512xf32>
    %75 = vector.shape_cast %74 : vector<1x1x512xf32> to vector<1x512xf32>
    %76 = vector.broadcast %75 : vector<1x512xf32> to vector<64x512xf32>
    %77 = arith.mulf %73, %76 : vector<64x512xf32>
    %c7_42 = arith.constant 7 : index
    %c0_43 = arith.constant 0 : index
    %c0_44 = arith.constant 0 : index
    %78 = vector.load %arg4[%c7_42, %c0_43, %c0_44] : memref<9x64x1xf32, #tpu.memory_space<vmem>>, vector<1x64x1xf32>
    %79 = vector.shape_cast %78 : vector<1x64x1xf32> to vector<64x1xf32>
    %80 = vector.broadcast %79 : vector<64x1xf32> to vector<64x512xf32>
    %81 = arith.mulf %77, %80 : vector<64x512xf32>
    %82 = arith.addf %72, %81 : vector<64x512xf32>
    %c495_i32 = arith.constant 495 : i32
    %83 = tpu.dynamic_rotate %5 by %c495_i32 dim 1 : vector<64x512xf32>, i32 -> vector<64x512xf32>
    %c8 = arith.constant 8 : index
    %c0_45 = arith.constant 0 : index
    %c0_46 = arith.constant 0 : index
    %84 = vector.load %arg8[%c8, %c0_45, %c0_46] : memref<9x1x512xf32, #tpu.memory_space<vmem>>, vector<1x1x512xf32>
    %85 = vector.shape_cast %84 : vector<1x1x512xf32> to vector<1x512xf32>
    %86 = vector.broadcast %85 : vector<1x512xf32> to vector<64x512xf32>
    %87 = arith.mulf %83, %86 : vector<64x512xf32>
    %c8_47 = arith.constant 8 : index
    %c0_48 = arith.constant 0 : index
    %c0_49 = arith.constant 0 : index
    %88 = vector.load %arg4[%c8_47, %c0_48, %c0_49] : memref<9x64x1xf32, #tpu.memory_space<vmem>>, vector<1x64x1xf32>
    %89 = vector.shape_cast %88 : vector<1x64x1xf32> to vector<64x1xf32>
    %90 = vector.broadcast %89 : vector<64x1xf32> to vector<64x512xf32>
    %91 = arith.mulf %87, %90 : vector<64x512xf32>
    %92 = arith.addf %82, %91 : vector<64x512xf32>
    %93 = vector.extract_strided_slice %92 {offsets = [0, 0], sizes = [32, 512], strides = [1, 1]} : vector<64x512xf32> to vector<32x512xf32>
    %94 = vector.extract_strided_slice %92 {offsets = [32, 0], sizes = [32, 512], strides = [1, 1]} : vector<64x512xf32> to vector<32x512xf32>
    %cst_50 = arith.constant 5.000000e-01 : f32
    %95 = vector.broadcast %cst_50 : f32 to vector<32x512xf32>
    %96 = arith.mulf %95, %93 : vector<32x512xf32>
    %97 = arith.mulf %93, %93 : vector<32x512xf32>
    %98 = arith.mulf %97, %93 : vector<32x512xf32>
    %cst_51 = arith.constant 4.471500e-02 : f32
    %99 = vector.broadcast %cst_51 : f32 to vector<32x512xf32>
    %100 = arith.mulf %99, %98 : vector<32x512xf32>
    %101 = arith.addf %93, %100 : vector<32x512xf32>
    %cst_52 = arith.constant 0.797884583 : f32
    %102 = vector.broadcast %cst_52 : f32 to vector<32x512xf32>
    %103 = arith.mulf %102, %101 : vector<32x512xf32>
    %104 = math.tanh %103 : vector<32x512xf32>
    %cst_53 = arith.constant 1.000000e+00 : f32
    %105 = vector.broadcast %cst_53 : f32 to vector<32x512xf32>
    %106 = arith.addf %105, %104 : vector<32x512xf32>
    %107 = arith.mulf %96, %106 : vector<32x512xf32>
    %108 = arith.mulf %107, %94 : vector<32x512xf32>
    %c0_54 = arith.constant 0 : index
    %c0_55 = arith.constant 0 : index
    %109 = vector.load %arg6[%c0_54, %c0_55] : memref<16x32xbf16, #tpu.memory_space<vmem>>, vector<16x32xbf16>
    %110 = arith.truncf %108 : vector<32x512xf32> to vector<32x512xbf16>
    %cst_56 = arith.constant dense<0.000000e+00> : vector<16x512xf32>
    %111 = tpu.matmul %109, %110, %cst_56 {dimension_numbers = #tpu.dot_dimension_numbers<[1], [0], [0], [1], [0, 0, 1, 1], [], []>} : vector<16x32xbf16>, vector<32x512xbf16>, vector<16x512xf32> -> vector<16x512xf32>
    %c0_57 = arith.constant 0 : index
    %c0_58 = arith.constant 0 : index
    %112 = vector.load %arg7[%c0_57, %c0_58] : memref<16x1xf32, #tpu.memory_space<vmem>>, vector<16x1xf32>
    %113 = vector.broadcast %112 : vector<16x1xf32> to vector<16x512xf32>
    %114 = arith.addf %111, %113 : vector<16x512xf32>
    %c0_59 = arith.constant 0 : index
    %c0_60 = arith.constant 0 : index
    %115 = vector.load %arg9[%c0_59, %c0_60] : memref<16x512xf32, #tpu.memory_space<vmem>>, vector<16x512xf32>
    tpu.vector_store %arg9[%c0_59, %c0_60], %114 {strides = array<i32>} : memref<16x512xf32, #tpu.memory_space<vmem>>, vector<16x512xf32>,
    return
  }
  func.func @transform_0(%arg0: i32) -> (i32, i32) {
    %c0_i32 = arith.constant 0 : i32
    %c0_i32_0 = arith.constant 0 : i32
    return %c0_i32, %arg0 : i32, i32
  }
  func.func @transform_1(%arg0: i32) -> (i32, i32) {
    %c0_i32 = arith.constant 0 : i32
    %c0_i32_0 = arith.constant 0 : i32
    %c0_i32_1 = arith.constant 0 : i32
    return %c0_i32, %c0_i32_0 : i32, i32
  }
  func.func @transform_2(%arg0: i32) -> (i32, i32) {
    %c0_i32 = arith.constant 0 : i32
    %c0_i32_0 = arith.constant 0 : i32
    %c0_i32_1 = arith.constant 0 : i32
    return %c0_i32, %c0_i32_0 : i32, i32
  }
  func.func @transform_3(%arg0: i32) -> (i32, i32, i32) {
    %c0_i32 = arith.constant 0 : i32
    %c0_i32_0 = arith.constant 0 : i32
    %c0_i32_1 = arith.constant 0 : i32
    %c0_i32_2 = arith.constant 0 : i32
    return %c0_i32, %c0_i32_0, %c0_i32_1 : i32, i32, i32
  }
  func.func @transform_4(%arg0: i32) -> (i32, i32) {
    %c0_i32 = arith.constant 0 : i32
    %c0_i32_0 = arith.constant 0 : i32
    %c0_i32_1 = arith.constant 0 : i32
    return %c0_i32, %c0_i32_0 : i32, i32
  }
  func.func @transform_5(%arg0: i32) -> (i32, i32) {
    %c0_i32 = arith.constant 0 : i32
    %c0_i32_0 = arith.constant 0 : i32
    %c0_i32_1 = arith.constant 0 : i32
    return %c0_i32, %c0_i32_0 : i32, i32
  }
  func.func @transform_6(%arg0: i32) -> (i32, i32) {
    %c0_i32 = arith.constant 0 : i32
    %c0_i32_0 = arith.constant 0 : i32
    %c0_i32_1 = arith.constant 0 : i32
    return %c0_i32, %c0_i32_0 : i32, i32
  }
  func.func @transform_7(%arg0: i32) -> (i32, i32, i32) {
    %c0_i32 = arith.constant 0 : i32
    %c0_i32_0 = arith.constant 0 : i32
    %c0_i32_1 = arith.constant 0 : i32
    %c0_i32_2 = arith.constant 0 : i32
    return %c0_i32, %c0_i32_0, %c0_i32_1 : i32, i32, i32
  }
  func.func @transform_8(%arg0: i32) -> (i32, i32) {
    %c0_i32 = arith.constant 0 : i32
    %c0_i32_0 = arith.constant 0 : i32
    return %c0_i32, %arg0 : i32, i32
  }
}

</mosaic_0001>

<bundles_post_ra>
// kernel: tpu_custom_call.1
= control target key start
LH: loop header
LB: loop body
LE: loop exit
PB: predicated region body
PF: predicated region fallthrough
CT: control target
= control target key end

     0   :  { %v2930_v3 = vmov 0   ;;  %vm131_vm0 = vcmask 130048   ;;  %s7080_s0 = inlined_call_operand.vmem [shape: bf16[16,512], index: 0, kind: input, shape index: {}]   ;;  %s7081_s1 = inlined_call_operand.vmem [shape: bf16[64,16], index: 1, kind: input, shape index: {}]   ;;  %s7082_s2 = inlined_call_operand.vmem [shape: f32[64,1], index: 2, kind: input, shape index: {}]   ;;  %s7083_s3 = inlined_call_operand.vmem [shape: f32[9,64,1], index: 3, kind: input, shape index: {}]   ;;  %s7084_s4 = inlined_call_operand.vmem [shape: f32[64,1], index: 4, kind: input, shape index: {}]   ;;  %s7085_s5 = inlined_call_operand.vmem [shape: bf16[16,32], index: 5, kind: input, shape index: {}]   ;;  %s7086_s6 = inlined_call_operand.vmem [shape: f32[16,1], index: 6, kind: input, shape index: {}]   ;;  %s7087_s7 = inlined_call_operand.vmem [shape: f32[9,1,512], index: 7, kind: input, shape index: {}]   ;;  %s7088_s8 = inlined_call_operand.hbm [shape: f32[16,512], index: 8, kind: output, shape index: {}]  }
   0x1   :  { %v47_v0 = vld [vmem:[%s7082_s2 + $0x20] sm:$0xff]  ;;  %v45_v1 = vld [vmem:[%s7082_s2 + $0x10] sm:$0xff]  ;;  %2868 = vset.pattern.permute.xlu2 %v2930_v3  ;;  %2867 = vset.pattern.permute.xlu1 %v2930_v3  ;;  %v2744_v9 = vld [vmem:[%s7080_s0 + $0x8] sm:$0xf] }
   0x2   :  { %v43_v2 = vld [vmem:[%s7082_s2] sm:$0xff]  ;;  %v2851_v5 = vld [vmem:[%s7080_s0 + $0xc] sm:$0xf0]  ;;  %2866 = vset.pattern.permute.xlu0 %v2930_v3  ;;  %73 = vperm.xlu2 %2868, %v47_v0   ;;  %v2738_v8 = vld [vmem:[%s7080_s0 + $0x10] sm:$0xf0] }
   0x3   :  { %v2736_v4 = vld [vmem:[%s7080_s0] sm:$0xf]  ;;  %v2849_v6 = vld [vmem:[%s7080_s0 + $0x4] sm:$0xf]  ;;  %v2852_v10 = vld [vmem:[%s7080_s0 + $0x14] sm:$0xf0]  ;;  %63 = vperm.xlu1 %2867, %v45_v1   ;;  %53 = vperm.xlu0 %2866, %v43_v2  }
   0x4   :  { %v2737_v7 = vor.u32 %v2851_v5, %v2736_v4  ;;  %v2741_v11 = vor.u32 %v2849_v6, %v2738_v8  ;;  %v2745_v12 = vor.u32 %v2852_v10, %v2744_v9  ;;  %v2850_v13 = vld [vmem:[%s7080_s0 + $0xc] sm:$0xf]  ;;  %v2746_v14 = vld [vmem:[%s7080_s0 + $0x18] sm:$0xf0]  ;;  %v2845_v15 = vld [vmem:[%s7081_s1] sm:$0xff] }
   0x5   :  { %v2749_v16 = vor.u32 %v2850_v13, %v2746_v14  ;;  %v48_v17 = vld [vmem:[%s7082_s2 + $0x28] sm:$0xff]  ;;  %v46_v18 = vld [vmem:[%s7082_s2 + $0x18] sm:$0xff] }
   0x6   :  { %151 = vmatpush.bf16.msra.mxu0 %v2737_v7  ;;  %180 = vmatpush.bf16.msra.mxu1 %v2741_v11  ;;  %v44_v19 = vld [vmem:[%s7082_s2 + $0x8] sm:$0xff] }
   0x7   :  { %209 = vmatpush.bf16.msra.mxu2 %v2745_v12  ;;  %238 = vmatpush.bf16.msra.mxu3 %v2749_v16 }
   0x9   :  { %2750 = vmatmul.msk.bf16.vlgmr.msra.gmra.mxu0 %vm131_vm0, %v2845_v15  ;;  %2754 = vmatmul.msk.bf16.vlgmr.msra.gmra.mxu1 %vm131_vm0, %v2845_v15 }
   0xa   :  { %2758 = vmatmul.msk.bf16.vlgmr.msra.gmra.mxu2 %vm131_vm0, %v2845_v15 }
   0xb   :  { %13 = vsyncpa [#allocation3], 0  ;;  %2762 = vmatmul.msk.bf16.vlgmr.msra.gmra.mxu3 %vm131_vm0, %v2845_v15  ;;  %78 = vperm.xlu2 %2868, %v48_v17   ;;  %v2766_v20 = vld [vmem:[%s7083_s3 + $0x100] sm:$0xff]  ;;  %v50_v21 = vld [vmem:[%s7082_s2 + $0x38] sm:$0xff]  ;;  %s2931_s20 = smov 16   ;;  %s2932_s21 = smov 17  }
   0xc   :  { %68 = vperm.xlu1 %2867, %v46_v18   ;;  %58 = vperm.xlu0 %2866, %v44_v19   ;;  %v49_v22 = vld [vmem:[%s7082_s2 + $0x30] sm:$0xff]  ;;  %v2846_v23 = vld [vmem:[%s7081_s1 + $0x8] sm:$0xff]  ;;  %v2769_v24 = vld [vmem:[%s7083_s3 + $0x118] sm:$0xff]  ;;  %s2934_s0 = smov 1   ;;  %s2935_s25 = smov 127   ;;  %vm2632_vm9 = vcmask 261120  }
   0xd   :  { %v2768_v25 = vld [vmem:[%s7083_s3 + $0x110] sm:$0xff]  ;;  %v2767_v26 = vld [vmem:[%s7083_s3 + $0x108] sm:$0xff]  ;;  %v2770_v29 = vld [vmem:[%s7083_s3 + $0x120] sm:$0xff]  ;;  %s2936_s17 = smov 113   ;;  %s2937_s14 = smov 112  }
   0xe   :  { %v2772_v27 = vld [vmem:[%s7083_s3 + $0x130] sm:$0xff]  ;;  %v2771_v28 = vld [vmem:[%s7083_s3 + $0x128] sm:$0xff]  ;;  %v341_v32 = vld [vmem:[%s7084_s4] sm:$0xff]  ;;  %s2706_s12 = sshll.u32 %s7088_s8, 4  ;;  %s2940_s13 = smov 512   ;;  %s2707_s12 = int_to_ptr.hbm [resolvable:$true] %s2706_s12 }
   0xf   :  { %v2847_v30 = vld [vmem:[%s7081_s1 + $0x10] sm:$0xff]  ;;  %v342_v31 = vld [vmem:[%s7084_s4 + $0x8] sm:$0xff]  ;;  %v2773_v33 = vld [vmem:[%s7083_s3 + $0x138] sm:$0xff]  ;;  %s2941_s15 = smov 32  }
  0x10   :  { %v345_v34 = vld [vmem:[%s7084_s4 + $0x20] sm:$0xff]  ;;  %v344_v35 = vld [vmem:[%s7084_s4 + $0x18] sm:$0xff]  ;;  %v343_v36 = vld [vmem:[%s7084_s4 + $0x10] sm:$0xff] }
  0x11   :  { %v2848_v37 = vld [vmem:[%s7081_s1 + $0x18] sm:$0xff]  ;;  %v347_v39 = vld [vmem:[%s7084_s4 + $0x30] sm:$0xff]  ;;  %v346_v40 = vld [vmem:[%s7084_s4 + $0x28] sm:$0xff] }
  0x12   :  { %v348_v38 = vld [vmem:[%s7084_s4 + $0x38] sm:$0xff]  ;;  %v562_v41 = vld [vmem:[%s7083_s3] sm:$0xff]  ;;  %v564_v42 = vld [vmem:[%s7083_s3 + $0x10] sm:$0xff]  ;;  %s2933_s4 = smov 15  }
  0x13   :  { %271 = vperm.xlu2 %2868, %v2766_v20   ;;  %v563_v43 = vld [vmem:[%s7083_s3 + $0x8] sm:$0xff]  ;;  %v565_v44 = vld [vmem:[%s7083_s3 + $0x18] sm:$0xff]  ;;  %v566_v46 = vld [vmem:[%s7083_s3 + $0x20] sm:$0xff] }
  0x14   :  { %88 = vperm.xlu1 %2867, %v50_v21   ;;  %83 = vperm.xlu0 %2866, %v49_v22   ;;  %v567_v45 = vld [vmem:[%s7083_s3 + $0x28] sm:$0xff]  ;;  %v568_v47 = vld [vmem:[%s7083_s3 + $0x30] sm:$0xff]  ;;  %v569_v48 = vld [vmem:[%s7083_s3 + $0x38] sm:$0xff] }
  0x19   :  { %2751 = vmatmul.msk.bf16.gmra.mxu0 %vm131_vm0, %v2846_v23  ;;  %2755 = vmatmul.msk.bf16.gmra.mxu1 %vm131_vm0, %v2846_v23 }
  0x1a   :  { %2759 = vmatmul.msk.bf16.gmra.mxu2 %vm131_vm0, %v2846_v23 }
  0x1b   :  { %2763 = vmatmul.msk.bf16.gmra.mxu3 %vm131_vm0, %v2846_v23  ;;  %286 = vperm.xlu2 %2868, %v2769_v24  }
  0x1c   :  { %281 = vperm.xlu1 %2867, %v2768_v25   ;;  %276 = vperm.xlu0 %2866, %v2767_v26  }
  0x23   :  { %301 = vperm.xlu2 %2868, %v2772_v27  }
  0x24   :  { %296 = vperm.xlu1 %2867, %v2771_v28   ;;  %291 = vperm.xlu0 %2866, %v2770_v29  }
  0x29   :  { %2752 = vmatmul.msk.bf16.gmra.mxu0 %vm131_vm0, %v2847_v30  ;;  %2756 = vmatmul.msk.bf16.gmra.mxu1 %vm131_vm0, %v2847_v30 }
  0x2a   :  { %2760 = vmatmul.msk.bf16.gmra.mxu2 %vm131_vm0, %v2847_v30 }
  0x2b   :  { %2764 = vmatmul.msk.bf16.gmra.mxu3 %vm131_vm0, %v2847_v30  ;;  %356 = vperm.xlu2 %2868, %v342_v31  }
  0x2c   :  { %351 = vperm.xlu1 %2867, %v341_v32   ;;  %306 = vperm.xlu0 %2866, %v2773_v33  }
  0x33   :  { %371 = vperm.xlu2 %2868, %v345_v34  }
  0x34   :  { %366 = vperm.xlu1 %2867, %v344_v35   ;;  %361 = vperm.xlu0 %2866, %v343_v36  }
  0x39   :  { %2753 = vmatmul.msk.bf16.gmra.mxu0 %vm131_vm0, %v2848_v37  ;;  %2757 = vmatmul.msk.bf16.gmra.mxu1 %vm131_vm0, %v2848_v37 }
  0x3a   :  { %2761 = vmatmul.msk.bf16.gmra.mxu2 %vm131_vm0, %v2848_v37 }
  0x3b   :  { %2765 = vmatmul.msk.bf16.gmra.mxu3 %vm131_vm0, %v2848_v37  ;;  %386 = vperm.xlu2 %2868, %v348_v38  }
  0x3c   :  { %381 = vperm.xlu1 %2867, %v347_v39   ;;  %376 = vperm.xlu0 %2866, %v346_v40  }
  0x43   :  { %572 = vperm.xlu2 %2868, %v562_v41  }
  0x44   :  { %582 = vperm.xlu1 %2867, %v564_v42   ;;  %577 = vperm.xlu0 %2866, %v563_v43  }
  0x4b   :  { %587 = vperm.xlu2 %2868, %v565_v44  }
  0x4c   :  { %597 = vperm.xlu1 %2867, %v567_v45   ;;  %592 = vperm.xlu0 %2866, %v566_v46  }
  0x53   :  { %602 = vperm.xlu2 %2868, %v568_v47  }
  0x54   :  { %607 = vperm.xlu0 %2866, %v569_v48  }
  0x5c   :  { %v3135_v49 = vpop.permute.xlu2 %73 }
  0x65   :  { %v3137_v50 = vpop.permute.xlu2 %78 }
  0x6d   :  { %v3149_v56 = vpop.permute.xlu2 %271 }
  0x6e   :  { %7389 = vst [vmem:[#allocation7_spill] sm:$0xff] %v3149_v56 }
  0x75   :  { %v54_v51 = vpop.permute.xlu0 %53  ;;  %v3163_v2 = vpop.permute.xlu2 %286 }
  0x76   :  { %7393 = vst [vmem:[#allocation11_spill] sm:$0xff] %v3163_v2  ;;  %v64_v4 = vpop.permute.xlu1 %63 }
  0x7d   :  { %v3179_v10 = vpop.permute.xlu2 %301 }
  0x7e   :  { %v59_v57 = vpop.permute.xlu0 %58  ;;  %7398 = vst [vmem:[#allocation16_spill] sm:$0xff] %v3179_v10  ;;  %v69_v11 = vpop.permute.xlu1 %68  ;;  %v485_v10 = vlaneseq }
  0x85   :  { %v3197_v19 = vpop.permute.xlu2 %356 }
  0x86   :  { %v153_v52 = vpop.f32.mrf.mxu0  ;;  %v182_v54 = vpop.f32.mrf.mxu1  ;;  %7402 = vst [vmem:[#allocation20_spill] sm:$0xff] %v3197_v19 }
  0x87   :  { %v3139_v53 = vadd.f32 %v153_v52, %v54_v51  ;;  %v3141_v55 = vadd.f32 %v182_v54, %v54_v51  ;;  %v3187_v12 = vpop.permute.xlu0 %83  ;;  %v3203_v21 = vpop.permute.xlu1 %88 }
  0x89   :  { %7387 = vst [vmem:[#allocation5_spill] sm:$0xff] %v3139_v53  ;;  %674 = vrot.lane.b32.xlu1 %v3139_v53, %s2931_s20  ;;  %421 = vrot.lane.b32.xlu0 %v3139_v53, %s2932_s21 }
  0x8a   :  { %7388 = vst [vmem:[#allocation6_spill] sm:$0xff] %v3141_v55  ;;  %437 = vrot.lane.b32.xlu2 %v3141_v55, %s2932_s21 }
  0x8d   :  { %v211_v58 = vpop.f32.mrf.mxu2  ;;  %v3217_v27 = vpop.permute.xlu2 %371 }
  0x8e   :  { %v240_v59 = vpop.f32.mrf.mxu3  ;;  %v155_v60 = vpop.f32.mrf.mxu0  ;;  %v3151_v61 = vadd.f32 %v211_v58, %v54_v51 }
  0x8f   :  { %v3153_v62 = vadd.f32 %v240_v59, %v54_v51  ;;  %v3155_v63 = vadd.f32 %v155_v60, %v59_v57  ;;  %v184_v0 = vpop.f32.mrf.mxu1  ;;  %v3205_v22 = vpop.permute.xlu0 %276 }
  0x90   :  { %7390 = vst [vmem:[#allocation8_spill] sm:$0xff] %v3151_v61  ;;  %v3165_v3 = vadd.f32 %v184_v0, %v59_v57  ;;  %v3219_v29 = vpop.permute.xlu1 %281 }
  0x91   :  { %7391 = vst [vmem:[#allocation9_spill] sm:$0xff] %v3153_v62  ;;  %453 = vrot.lane.b32.xlu1 %v3151_v61, %s2932_s21  ;;  %469 = vrot.lane.b32.xlu0 %v3153_v62, %s2932_s21 }
  0x92   :  { %7392 = vst [vmem:[#allocation10_spill] sm:$0xff] %v3155_v63  ;;  %676 = vrot.lane.b32.xlu2 %v3155_v63, %s2931_s20 }
  0x93   :  { %7394 = vst [vmem:[#allocation12_spill] sm:$0xff] %v3165_v3 }
  0x94   :  { %7405 = vst [vmem:[#allocation23_spill] sm:$0xff] %v3219_v29 }
  0x95   :  { %v213_v1 = vpop.f32.mrf.mxu2  ;;  %v3236_v36 = vpop.permute.xlu2 %386 }
  0x96   :  { %v3167_v5 = vadd.f32 %v213_v1, %v59_v57  ;;  %v242_v6 = vpop.f32.mrf.mxu3  ;;  %v158_v7 = vpop.f32.mrf.mxu0  ;;  %7409 = vst [vmem:[#allocation27_spill] sm:$0xff] %v3236_v36 }
  0x97   :  { %v3175_v8 = vadd.f32 %v158_v7, %v64_v4  ;;  %v3177_v9 = vadd.f32 %v242_v6, %v59_v57  ;;  %v187_v13 = vpop.f32.mrf.mxu1  ;;  %v3221_v31 = vpop.permute.xlu0 %291 }
  0x98   :  { %7395 = vst [vmem:[#allocation13_spill] sm:$0xff] %v3167_v5  ;;  %v3189_v14 = vadd.f32 %v187_v13, %v64_v4  ;;  %v3238_v38 = vpop.permute.xlu1 %296 }
  0x99   :  { %423 = vrot.lane.b32.xlu1 %v3155_v63, %s2932_s21  ;;  %439 = vrot.lane.b32.xlu0 %v3165_v3, %s2932_s21  ;;  %7396 = vst [vmem:[#allocation14_spill] sm:$0xff] %v3175_v8 }
  0x9a   :  { %455 = vrot.lane.b32.xlu2 %v3167_v5, %s2932_s21  ;;  %7397 = vst [vmem:[#allocation15_spill] sm:$0xff] %v3177_v9 }
  0x9b   :  { %7399 = vst [vmem:[#allocation17_spill] sm:$0xff] %v3189_v14 }
  0x9d   :  { %v216_v16 = vpop.f32.mrf.mxu2  ;;  %v3257_v45 = vpop.permute.xlu2 %572 }
  0x9e   :  { %v245_v15 = vpop.f32.mrf.mxu3  ;;  %v3193_v18 = vadd.f32 %v216_v16, %v64_v4  ;;  %v160_v20 = vpop.f32.mrf.mxu0  ;;  %7414 = vst [vmem:[#allocation32_spill] sm:$0xff] %v3257_v45 }
  0x9f   :  { %v3191_v17 = vadd.f32 %v245_v15, %v64_v4  ;;  %v3207_v23 = vadd.f32 %v160_v20, %v69_v11  ;;  %v189_v24 = vpop.f32.mrf.mxu1  ;;  %v3243_v40 = vpop.permute.xlu0 %306 }
  0xa0   :  { %7401 = vst [vmem:[#allocation19_spill] sm:$0xff] %v3193_v18  ;;  %v3209_v25 = vadd.f32 %v189_v24, %v69_v11  ;;  %v3264_v47 = vpop.permute.xlu1 %351 }
  0xa1   :  { %471 = vrot.lane.b32.xlu1 %v3177_v9, %s2932_s21  ;;  %678 = vrot.lane.b32.xlu0 %v3175_v8, %s2931_s20  ;;  %7400 = vst [vmem:[#allocation18_spill] sm:$0xff] %v3191_v17 }
  0xa2   :  { %425 = vrot.lane.b32.xlu2 %v3175_v8, %s2932_s21  ;;  %7403 = vst [vmem:[#allocation21_spill] sm:$0xff] %v3207_v23 }
  0xa3   :  { %7404 = vst [vmem:[#allocation22_spill] sm:$0xff] %v3209_v25 }
  0xa4   :  { %7411 = vst [vmem:[#allocation29_spill] sm:$0xff] %v3243_v40  ;;  %v2781_v40 = vld [vmem:[%s7083_s3 + $0x70] sm:$0xff] }
  0xa5   :  { %v218_v26 = vpop.f32.mrf.mxu2  ;;  %7416 = vst [vmem:[#allocation34_spill] sm:$0xff] %v3264_v47  ;;  %v3283_v59 = vpop.permute.xlu2 %587 }
  0xa6   :  { %v163_v28 = vpop.f32.mrf.mxu0  ;;  %v247_v30 = vpop.f32.mrf.mxu3  ;;  %v3223_v32 = vadd.f32 %v218_v26, %v69_v11  ;;  %7421 = vst [vmem:[#allocation39_spill] sm:$0xff] %v3283_v59 }
  0xa7   :  { %v3226_v33 = vadd.f32 %v163_v28, %v3135_v49  ;;  %v3228_v34 = vadd.f32 %v247_v30, %v69_v11  ;;  %v192_v37 = vpop.f32.mrf.mxu1  ;;  %v3268_v48 = vpop.permute.xlu0 %361 }
  0xa8   :  { %7406 = vst [vmem:[#allocation24_spill] sm:$0xff] %v3223_v32  ;;  %v3246_v41 = vadd.f32 %v192_v37, %v3135_v49  ;;  %v3289_v60 = vpop.permute.xlu1 %366 }
  0xa9   :  { %441 = vrot.lane.b32.xlu1 %v3189_v14, %s2932_s21  ;;  %457 = vrot.lane.b32.xlu0 %v3193_v18, %s2932_s21  ;;  %7407 = vst [vmem:[#allocation25_spill] sm:$0xff] %v3226_v33 }
  0xaa   :  { %473 = vrot.lane.b32.xlu2 %v3191_v17, %s2932_s21  ;;  %7408 = vst [vmem:[#allocation26_spill] sm:$0xff] %v3228_v34 }
  0xab   :  { %7412 = vst [vmem:[#allocation30_spill] sm:$0xff] %v3246_v41 }
  0xac   :  { %7417 = vst [vmem:[#allocation35_spill] sm:$0xff] %v3268_v48 }
  0xad   :  { %v221_v35 = vpop.f32.mrf.mxu2  ;;  %7422 = vst [vmem:[#allocation40_spill] sm:$0xff] %v3289_v60  ;;  %v3305_v7 = vpop.permute.xlu2 %602 }
  0xae   :  { %v3241_v39 = vadd.f32 %v221_v35, %v3135_v49  ;;  %v250_v42 = vpop.f32.mrf.mxu3  ;;  %v165_v43 = vpop.f32.mrf.mxu0  ;;  %7426 = vst [vmem:[#allocation44_spill] sm:$0xff] %v3305_v7 }
  0xaf   :  { %v3255_v44 = vadd.f32 %v250_v42, %v3135_v49  ;;  %v3260_v46 = vadd.f32 %v165_v43, %v3137_v50  ;;  %v194_v51 = vpop.f32.mrf.mxu1  ;;  %v3291_v1 = vpop.permute.xlu0 %376 }
  0xb0   :  { %7410 = vst [vmem:[#allocation28_spill] sm:$0xff] %v3241_v39  ;;  %v3273_v54 = vadd.f32 %v194_v51, %v3137_v50  ;;  %v3307_v15 = vpop.permute.xlu1 %381 }
  0xb1   :  { %680 = vrot.lane.b32.xlu1 %v3207_v23, %s2931_s20  ;;  %427 = vrot.lane.b32.xlu0 %v3207_v23, %s2932_s21  ;;  %7413 = vst [vmem:[#allocation31_spill] sm:$0xff] %v3255_v44 }
  0xb2   :  { %443 = vrot.lane.b32.xlu2 %v3209_v25, %s2932_s21  ;;  %7415 = vst [vmem:[#allocation33_spill] sm:$0xff] %v3260_v46  ;;  %v330_v60 = vmul.f32 %v3238_v38, %v3273_v54 }
  0xb3   :  { %7418 = vst [vmem:[#allocation36_spill] sm:$0xff] %v3273_v54 }
  0xb4   :  { %7423 = vst [vmem:[#allocation41_spill] sm:$0xff] %v3291_v1 }
  0xb5   :  { %v223_v52 = vpop.f32.mrf.mxu2  ;;  %7427 = vst [vmem:[#allocation45_spill] sm:$0xff] %v3307_v15  ;;  %v2780_v15 = vld [vmem:[%s7083_s3 + $0x68] sm:$0xff] }
  0xb6   :  { %v252_v49 = vpop.f32.mrf.mxu3  ;;  %v3279_v58 = vadd.f32 %v223_v52, %v3137_v50  ;;  %v168_v0 = vpop.f32.mrf.mxu0 }
  0xb7   :  { %v3276_v57 = vadd.f32 %v252_v49, %v3137_v50  ;;  %v197_v4 = vpop.f32.mrf.mxu1  ;;  %v3294_v50 = vadd.f32 %v168_v0, %v3187_v12  ;;  %v3309_v16 = vpop.permute.xlu0 %577 }
  0xb8   :  { %7420 = vst [vmem:[#allocation38_spill] sm:$0xff] %v3279_v58  ;;  %v3297_v6 = vadd.f32 %v197_v4, %v3187_v12  ;;  %v3328_v37 = vpop.permute.xlu1 %582 }
  0xb9   :  { %459 = vrot.lane.b32.xlu1 %v3223_v32, %s2932_s21  ;;  %475 = vrot.lane.b32.xlu0 %v3228_v34, %s2932_s21  ;;  %7419 = vst [vmem:[#allocation37_spill] sm:$0xff] %v3276_v57 }
  0xba   :  { %682 = vrot.lane.b32.xlu2 %v3226_v33, %s2931_s20  ;;  %7424 = vst [vmem:[#allocation42_spill] sm:$0xff] %v3294_v50 }
  0xbb   :  { %7425 = vst [vmem:[#allocation43_spill] sm:$0xff] %v3297_v6 }
  0xbc   :  { %7428 = vst [vmem:[#allocation46_spill] sm:$0xff] %v3309_v16 }
  0xbd   :  { %v226_v11 = vpop.f32.mrf.mxu2  ;;  %7433 = vst [vmem:[#allocation51_spill] sm:$0xff] %v3328_v37 }
  0xbe   :  { %v255_v13 = vpop.f32.mrf.mxu3  ;;  %v3312_v20 = vadd.f32 %v226_v11, %v3187_v12  ;;  %v170_v26 = vpop.f32.mrf.mxu0 }
  0xbf   :  { %v3315_v24 = vadd.f32 %v255_v13, %v3187_v12  ;;  %v199_v30 = vpop.f32.mrf.mxu1  ;;  %v3326_v35 = vadd.f32 %v170_v26, %v3203_v21  ;;  %v3333_v42 = vpop.permute.xlu0 %592 }
  0xc0   :  { %7429 = vst [vmem:[#allocation47_spill] sm:$0xff] %v3312_v20  ;;  %v3331_v12 = vadd.f32 %v199_v30, %v3203_v21  ;;  %v3350_v52 = vpop.permute.xlu1 %597 }
  0xc1   :  { %429 = vrot.lane.b32.xlu1 %v3226_v33, %s2932_s21  ;;  %445 = vrot.lane.b32.xlu0 %v3246_v41, %s2932_s21  ;;  %7430 = vst [vmem:[#allocation48_spill] sm:$0xff] %v3315_v24 }
  0xc2   :  { %461 = vrot.lane.b32.xlu2 %v3241_v39, %s2932_s21  ;;  %7432 = vst [vmem:[#allocation50_spill] sm:$0xff] %v3326_v35 }
  0xc3   :  { %7434 = vst [vmem:[#allocation52_spill] sm:$0xff] %v3331_v12 }
  0xc4   :  { %7437 = vst [vmem:[#allocation55_spill] sm:$0xff] %v3350_v52 }
  0xc5   :  { %v228_v51 = vpop.f32.mrf.mxu2 }
  0xc6   :  { %v3344_v49 = vadd.f32 %v228_v51, %v3203_v21  ;;  %v257_v4 = vpop.f32.mrf.mxu3 }
  0xc7   :  { %v3352_v0 = vpop.permute.xlu0 %607  ;;  %v3359_v13 = vadd.f32 %v257_v4, %v3203_v21 }
  0xc8   :  { %7436 = vst [vmem:[#allocation54_spill] sm:$0xff] %v3344_v49 }
  0xc9   :  { %477 = vrot.lane.b32.xlu1 %v3255_v44, %s2932_s21  ;;  %684 = vrot.lane.b32.xlu0 %v3260_v46, %s2931_s20  ;;  %7438 = vst [vmem:[#allocation56_spill] sm:$0xff] %v3352_v0 }
  0xca   :  { %431 = vrot.lane.b32.xlu2 %v3260_v46, %s2932_s21  ;;  %7440 = vst [vmem:[#allocation58_spill] sm:$0xff] %v3359_v13 }
  0xd1   :  { %447 = vrot.lane.b32.xlu1 %v3273_v54, %s2932_s21  ;;  %463 = vrot.lane.b32.xlu0 %v3279_v58, %s2932_s21 }
  0xd2   :  { %479 = vrot.lane.b32.xlu2 %v3276_v57, %s2932_s21 }
  0xd9   :  { %686 = vrot.lane.b32.xlu1 %v3294_v50, %s2931_s20  ;;  %433 = vrot.lane.b32.xlu0 %v3294_v50, %s2932_s21 }
  0xda   :  { %449 = vrot.lane.b32.xlu2 %v3297_v6, %s2932_s21 }
  0xe1   :  { %465 = vrot.lane.b32.xlu1 %v3312_v20, %s2932_s21  ;;  %481 = vrot.lane.b32.xlu0 %v3315_v24, %s2932_s21 }
  0xe2   :  { %694 = vrot.lane.b32.xlu2 %v3189_v14, %s2931_s20 }
  0xe4   :  { %v3323_v28 = vpop.permute.xlu2 %437 }
  0xe5   :  { %7431 = vst [vmem:[#allocation49_spill] sm:$0xff] %v3323_v28 }
  0xe9   :  { %435 = vrot.lane.b32.xlu1 %v3326_v35, %s2932_s21  ;;  %451 = vrot.lane.b32.xlu0 %v3331_v12, %s2932_s21 }
  0xea   :  { %688 = vrot.lane.b32.xlu2 %v3326_v35, %s2931_s20 }
  0xec   :  { %v3341_v43 = vpop.permute.xlu2 %676 }
  0xed   :  { %7435 = vst [vmem:[#allocation53_spill] sm:$0xff] %v3341_v43 }
  0xf1   :  { %692 = vrot.lane.b32.xlu1 %v3165_v3, %s2931_s20  ;;  %690 = vrot.lane.b32.xlu0 %v3141_v55, %s2931_s20 }
  0xf2   :  { %467 = vrot.lane.b32.xlu2 %v3344_v49, %s2932_s21 }
  0xf4   :  { %v3356_v11 = vpop.permute.xlu2 %455 }
  0xf5   :  { %7439 = vst [vmem:[#allocation57_spill] sm:$0xff] %v3356_v11 }
  0xf9   :  { %483 = vrot.lane.b32.xlu1 %v3359_v13, %s2932_s21  ;;  %696 = vrot.lane.b32.xlu0 %v3209_v25, %s2931_s20  ;;  %s2938_s21 = smov 111  }
  0xfa   :  { %700 = vrot.lane.b32.xlu2 %v3273_v54, %s2931_s20 }
  0xfb   :  { %v3367_v26 = vpop.permute.xlu1 %674  ;;  %v3369_v30 = vpop.permute.xlu0 %421 }
  0xfc   :  { %7441 = vst [vmem:[#allocation59_spill] sm:$0xff] %v3367_v26  ;;  %v3371_v51 = vpop.permute.xlu2 %425 }
  0xfd   :  { %7442 = vst [vmem:[#allocation60_spill] sm:$0xff] %v3369_v30  ;;  %v3583_v30 = vand.u32 127, %v485_v10 }
  0xfe   :  { %7443 = vst [vmem:[#allocation61_spill] sm:$0xff] %v3371_v51  ;;  %v2779_v51 = vld [vmem:[%s7083_s3 + $0x60] sm:$0xff] }
  0xff   :  { %vm487_vm1 = vcmp.lt.s32.totalorder %v3583_v30, 17  ;;  %vm738_vm2 = vcmp.lt.s32.totalorder %v3583_v30, 16  ;;  %vm991_vm3 = vcmp.lt.s32.totalorder %v3583_v30, 15  ;;  %vm1244_vm4 = vcmp.lt.s32.totalorder %v3583_v30, 1 }
 0x100   :  { %vm1497_vm5 = vcmp.lt.s32.totalorder %v3583_v30, 127  ;;  %vm1750_vm6 = vcmp.lt.s32.totalorder %v3583_v30, 113  ;;  %vm2003_vm7 = vcmp.lt.s32.totalorder %v3583_v30, 112  ;;  %vm2256_vm8 = vcmp.lt.s32.totalorder %v3583_v30, 111 }
 0x101   :  { %698 = vrot.lane.b32.xlu1 %v3246_v41, %s2931_s20  ;;  %702 = vrot.lane.b32.xlu0 %v3297_v6, %s2931_s20 }
 0x102   :  { %706 = vrot.lane.b32.xlu2 %v3151_v61, %s2931_s20 }
 0x103   :  { %v3379_v21 = vpop.permute.xlu1 %453  ;;  %v3381_v4 = vpop.permute.xlu0 %469 }
 0x104   :  { %7444 = vst [vmem:[#allocation62_spill] sm:$0xff] %v3379_v21  ;;  %v3383_v43 = vpop.permute.xlu2 %473 }
 0x105   :  { %7445 = vst [vmem:[#allocation63_spill] sm:$0xff] %v3381_v4 }
 0x106   :  { %7446 = vst [vmem:[#allocation64_spill] sm:$0xff] %v3383_v43  ;;  %v2778_v43 = vld [vmem:[%s7083_s3 + $0x58] sm:$0xff] }
 0x109   :  { %704 = vrot.lane.b32.xlu1 %v3331_v12, %s2931_s20  ;;  %708 = vrot.lane.b32.xlu0 %v3167_v5, %s2931_s20 }
 0x10a   :  { %712 = vrot.lane.b32.xlu2 %v3223_v32, %s2931_s20 }
 0x10b   :  { %v3391_v26 = vpop.permute.xlu1 %423  ;;  %v3393_v0 = vpop.permute.xlu0 %439 }
 0x10c   :  { %7447 = vst [vmem:[#allocation65_spill] sm:$0xff] %v3391_v26  ;;  %v3395_v7 = vpop.permute.xlu2 %443 }
 0x10d   :  { %7448 = vst [vmem:[#allocation66_spill] sm:$0xff] %v3393_v0 }
 0x10e   :  { %7449 = vst [vmem:[#allocation67_spill] sm:$0xff] %v3395_v7 }
 0x111   :  { %710 = vrot.lane.b32.xlu1 %v3193_v18, %s2931_s20  ;;  %714 = vrot.lane.b32.xlu0 %v3241_v39, %s2931_s20 }
 0x112   :  { %718 = vrot.lane.b32.xlu2 %v3312_v20, %s2931_s20 }
 0x113   :  { %v3403_v59 = vpop.permute.xlu1 %471  ;;  %v3407_v37 = vpop.permute.xlu0 %678 }
 0x114   :  { %7450 = vst [vmem:[#allocation68_spill] sm:$0xff] %v3403_v59  ;;  %v3405_v16 = vpop.permute.xlu2 %682 }
 0x115   :  { %7451 = vst [vmem:[#allocation69_spill] sm:$0xff] %v3407_v37 }
 0x119   :  { %716 = vrot.lane.b32.xlu1 %v3279_v58, %s2931_s20  ;;  %720 = vrot.lane.b32.xlu0 %v3344_v49, %s2931_s20 }
 0x11a   :  { %724 = vrot.lane.b32.xlu2 %v3177_v9, %s2931_s20 }
 0x11b   :  { %v3415_v7 = vpop.permute.xlu1 %441  ;;  %v3419_v26 = vpop.permute.xlu0 %457 }
 0x11c   :  { %7452 = vst [vmem:[#allocation70_spill] sm:$0xff] %v3415_v7  ;;  %v3417_v36 = vpop.permute.xlu2 %461 }
 0x11d   :  { %7453 = vst [vmem:[#allocation71_spill] sm:$0xff] %v3417_v36 }
 0x11e   :  { %7454 = vst [vmem:[#allocation72_spill] sm:$0xff] %v3419_v26 }
 0x121   :  { %722 = vrot.lane.b32.xlu1 %v3153_v62, %s2931_s20  ;;  %726 = vrot.lane.b32.xlu0 %v3191_v17, %s2931_s20 }
 0x122   :  { %730 = vrot.lane.b32.xlu2 %v3255_v44, %s2931_s20 }
 0x123   :  { %v3427_v37 = vpop.permute.xlu1 %680  ;;  %v3431_v0 = vpop.permute.xlu0 %427 }
 0x124   :  { %7455 = vst [vmem:[#allocation73_spill] sm:$0xff] %v3427_v37  ;;  %v3429_v59 = vpop.permute.xlu2 %431  ;;  %v2777_v37 = vld [vmem:[%s7083_s3 + $0x50] sm:$0xff] }
 0x125   :  { %7456 = vst [vmem:[#allocation74_spill] sm:$0xff] %v3431_v0  ;;  %v2775_v0 = vld [vmem:[%s7083_s3 + $0x40] sm:$0xff] }
 0x129   :  { %728 = vrot.lane.b32.xlu1 %v3228_v34, %s2931_s20  ;;  %732 = vrot.lane.b32.xlu0 %v3276_v57, %s2931_s20 }
 0x12a   :  { %736 = vrot.lane.b32.xlu2 %v3359_v13, %s2931_s20 }
 0x12b   :  { %v3439_v36 = vpop.permute.xlu1 %459  ;;  %v3443_v7 = vpop.permute.xlu0 %475 }
 0x12c   :  { %7457 = vst [vmem:[#allocation75_spill] sm:$0xff] %v3439_v36  ;;  %v3441_v26 = vpop.permute.xlu2 %479 }
 0x12d   :  { %7458 = vst [vmem:[#allocation76_spill] sm:$0xff] %v3441_v26  ;;  %v517_v56 = vsel %vm487_vm1, %v3441_v26, %v3429_v59 }
 0x12e   :  { %7459 = vst [vmem:[#allocation77_spill] sm:$0xff] %v3443_v7  ;;  %v2776_v7 = vld [vmem:[%s7083_s3 + $0x48] sm:$0xff] }
 0x131   :  { %734 = vrot.lane.b32.xlu1 %v3315_v24, %s2931_s20  ;;  %825 = vperm.xlu0 %2866, %v2775_v0  }
 0x132   :  { %835 = vperm.xlu2 %2868, %v2777_v37  }
 0x133   :  { %v3453_v11 = vpop.permute.xlu1 %429  ;;  %v3457_v45 = vpop.permute.xlu0 %445 }
 0x134   :  { %v3455_v36 = vpop.permute.xlu2 %449 }
 0x135   :  { %7460 = vst [vmem:[#allocation78_spill] sm:$0xff] %v3455_v36 }
 0x139   :  { %830 = vperm.xlu1 %2867, %v2776_v7   ;;  %840 = vperm.xlu0 %2866, %v2778_v43  }
 0x13a   :  { %850 = vperm.xlu2 %2868, %v2780_v15  }
 0x13b   :  { %v3468_v37 = vpop.permute.xlu1 %477  ;;  %v3472_v36 = vpop.permute.xlu0 %684 }
 0x13c   :  { %v3470_v0 = vpop.permute.xlu2 %694 }
 0x13d   :  { %7461 = vst [vmem:[#allocation79_spill] sm:$0xff] %v3470_v0  ;;  %v2782_v0 = vld [vmem:[%s7083_s3 + $0x78] sm:$0xff] }
 0x141   :  { %845 = vperm.xlu1 %2867, %v2779_v51   ;;  %855 = vperm.xlu0 %2866, %v2781_v40  }
 0x142   :  { %927 = vrot.lane.b32.xlu2 %v3139_v53, %s2933_s4 }
 0x143   :  { %v3482_v7 = vpop.permute.xlu1 %447  ;;  %v3486_v43 = vpop.permute.xlu0 %463 }
 0x144   :  { %7462 = vst [vmem:[#allocation80_spill] sm:$0xff] %v3482_v7  ;;  %v3484_v15 = vpop.permute.xlu2 %688 }
 0x145   :  { %7463 = vst [vmem:[#allocation81_spill] sm:$0xff] %v3484_v15 }
 0x146   :  { %7464 = vst [vmem:[#allocation82_spill] sm:$0xff] %v3486_v43 }
 0x149   :  { %860 = vperm.xlu1 %2867, %v2782_v0   ;;  %929 = vrot.lane.b32.xlu0 %v3155_v63, %s2933_s4 }
 0x14a   :  { %933 = vrot.lane.b32.xlu2 %v3207_v23, %s2933_s4 }
 0x14b   :  { %v3495_v51 = vpop.permute.xlu1 %686  ;;  %v3499_v4 = vpop.permute.xlu0 %433 }
 0x14c   :  { %7465 = vst [vmem:[#allocation83_spill] sm:$0xff] %v3495_v51  ;;  %v3497_v40 = vpop.permute.xlu2 %467 }
 0x14d   :  { %7466 = vst [vmem:[#allocation84_spill] sm:$0xff] %v3497_v40 }
 0x14e   :  { %7467 = vst [vmem:[#allocation85_spill] sm:$0xff] %v3499_v4 }
 0x151   :  { %931 = vrot.lane.b32.xlu1 %v3175_v8, %s2933_s4  ;;  %935 = vrot.lane.b32.xlu0 %v3226_v33, %s2933_s4 }
 0x152   :  { %939 = vrot.lane.b32.xlu2 %v3294_v50, %s2933_s4 }
 0x153   :  { %v3507_v0 = vpop.permute.xlu1 %465  ;;  %v3511_v43 = vpop.permute.xlu0 %481 }
 0x154   :  { %7468 = vst [vmem:[#allocation86_spill] sm:$0xff] %v3507_v0  ;;  %v3509_v15 = vpop.permute.xlu2 %700 }
 0x155   :  { %7469 = vst [vmem:[#allocation87_spill] sm:$0xff] %v3509_v15 }
 0x156   :  { %7470 = vst [vmem:[#allocation88_spill] sm:$0xff] %v3511_v43 }
 0x159   :  { %937 = vrot.lane.b32.xlu1 %v3260_v46, %s2933_s4  ;;  %941 = vrot.lane.b32.xlu0 %v3326_v35, %s2933_s4 }
 0x15a   :  { %945 = vrot.lane.b32.xlu2 %v3165_v3, %s2933_s4 }
 0x15b   :  { %v3519_v51 = vpop.permute.xlu1 %435  ;;  %v3523_v4 = vpop.permute.xlu0 %451 }
 0x15c   :  { %7471 = vst [vmem:[#allocation89_spill] sm:$0xff] %v3519_v51  ;;  %v3521_v40 = vpop.permute.xlu2 %706 }
 0x15d   :  { %7472 = vst [vmem:[#allocation90_spill] sm:$0xff] %v3521_v40 }
 0x15e   :  { %7473 = vst [vmem:[#allocation91_spill] sm:$0xff] %v3523_v4 }
 0x161   :  { %943 = vrot.lane.b32.xlu1 %v3141_v55, %s2933_s4  ;;  %947 = vrot.lane.b32.xlu0 %v3189_v14, %s2933_s4 }
 0x162   :  { %951 = vrot.lane.b32.xlu2 %v3246_v41, %s2933_s4 }
 0x163   :  { %v3531_v43 = vpop.permute.xlu1 %692  ;;  %v3535_v21 = vpop.permute.xlu0 %690 }
 0x164   :  { %7474 = vst [vmem:[#allocation92_spill] sm:$0xff] %v3531_v43  ;;  %v3533_v0 = vpop.permute.xlu2 %712 }
 0x165   :  { %7475 = vst [vmem:[#allocation93_spill] sm:$0xff] %v3533_v0 }
 0x166   :  { %7476 = vst [vmem:[#allocation94_spill] sm:$0xff] %v3535_v21 }
 0x169   :  { %949 = vrot.lane.b32.xlu1 %v3209_v25, %s2933_s4  ;;  %953 = vrot.lane.b32.xlu0 %v3273_v54, %s2933_s4 }
 0x16a   :  { %957 = vrot.lane.b32.xlu2 %v3331_v12, %s2933_s4 }
 0x16b   :  { %v3543_v40 = vpop.permute.xlu1 %483  ;;  %v3547_v4 = vpop.permute.xlu0 %696 }
 0x16c   :  { %7477 = vst [vmem:[#allocation95_spill] sm:$0xff] %v3543_v40  ;;  %v3545_v51 = vpop.permute.xlu2 %718 }
 0x16d   :  { %7478 = vst [vmem:[#allocation96_spill] sm:$0xff] %v3545_v51 }
 0x16e   :  { %7479 = vst [vmem:[#allocation97_spill] sm:$0xff] %v3547_v4 }
 0x171   :  { %955 = vrot.lane.b32.xlu1 %v3297_v6, %s2933_s4  ;;  %959 = vrot.lane.b32.xlu0 %v3151_v61, %s2933_s4 }
 0x172   :  { %963 = vrot.lane.b32.xlu2 %v3193_v18, %s2933_s4 }
 0x173   :  { %v3555_v0 = vpop.permute.xlu1 %698  ;;  %v3559_v43 = vpop.permute.xlu0 %702 }
 0x174   :  { %7480 = vst [vmem:[#allocation98_spill] sm:$0xff] %v3555_v0  ;;  %v3557_v21 = vpop.permute.xlu2 %724 }
 0x175   :  { %7481 = vst [vmem:[#allocation99_spill] sm:$0xff] %v3557_v21 }
 0x176   :  { %7482 = vst [vmem:[#allocation100_spill] sm:$0xff] %v3559_v43 }
 0x179   :  { %961 = vrot.lane.b32.xlu1 %v3167_v5, %s2933_s4  ;;  %965 = vrot.lane.b32.xlu0 %v3223_v32, %s2933_s4 }
 0x17a   :  { %969 = vrot.lane.b32.xlu2 %v3279_v58, %s2933_s4 }
 0x17b   :  { %v3567_v51 = vpop.permute.xlu1 %704  ;;  %v3571_v40 = vpop.permute.xlu0 %708 }
 0x17c   :  { %7483 = vst [vmem:[#allocation101_spill] sm:$0xff] %v3567_v51  ;;  %v3569_v4 = vpop.permute.xlu2 %730 }
 0x17d   :  { %7484 = vst [vmem:[#allocation102_spill] sm:$0xff] %v3569_v4 }
 0x17e   :  { %7485 = vst [vmem:[#allocation103_spill] sm:$0xff] %v3571_v40  ;;  %v3590_v40 = vld [vmem:[%s7087_s7] sm:$0xf] }
 0x17f   :  { %v3602_v10 = vperm.slane %v3590_v40, 1 }
 0x181   :  { %967 = vrot.lane.b32.xlu1 %v3241_v39, %s2933_s4  ;;  %971 = vrot.lane.b32.xlu0 %v3312_v20, %s2933_s4 }
 0x182   :  { %975 = vrot.lane.b32.xlu2 %v3153_v62, %s2933_s4 }
 0x183   :  { %v3579_v43 = vpop.permute.xlu1 %710  ;;  %v3585_v51 = vpop.permute.xlu0 %714 }
 0x184   :  { %7486 = vst [vmem:[#allocation104_spill] sm:$0xff] %v3579_v43  ;;  %v3581_v21 = vpop.permute.xlu2 %736  ;;  %v509_v43 = vsel %vm487_vm1, %v3429_v59, %v3482_v7  ;;  %v3616_v7 = vld [vmem:[%s7087_s7 + $0x4] sm:$0xf] }
 0x185   :  { %7487 = vst [vmem:[#allocation105_spill] sm:$0xff] %v3581_v21  ;;  %v551_v28 = vmul.f32 %v3602_v10, %v509_v43 }
 0x186   :  { %7488 = vst [vmem:[#allocation106_spill] sm:$0xff] %v3585_v51 }
 0x187   :  { %7492 = vst [vmem:[#allocation110_spill] sm:$0xff] %v3616_v7  ;;  %v631_v43 = vmul.f32 %v3350_v52, %v551_v28 }
 0x189   :  { %973 = vrot.lane.b32.xlu1 %v3344_v49, %s2933_s4  ;;  %977 = vrot.lane.b32.xlu0 %v3177_v9, %s2933_s4 }
 0x18a   :  { %981 = vrot.lane.b32.xlu2 %v3228_v34, %s2933_s4 }
 0x18b   :  { %v3606_v51 = vpop.permute.xlu1 %716  ;;  %v3611_v48 = vpop.permute.xlu0 %720 }
 0x18c   :  { %7489 = vst [vmem:[#allocation107_spill] sm:$0xff] %v3606_v51  ;;  %v3608_v21 = vpop.permute.xlu2 %835  ;;  %v760_v51 = vsel %vm738_vm2, %v3472_v36, %v3509_v15 }
 0x18d   :  { %7490 = vst [vmem:[#allocation108_spill] sm:$0xff] %v3608_v21  ;;  %v3626_v21 = vperm.slane %v3616_v7, 1 }
 0x18e   :  { %7491 = vst [vmem:[#allocation109_spill] sm:$0xff] %v3611_v48  ;;  %v410_v48 = vadd.f32 %v3291_v1, %v330_v60  ;;  %v3649_v60 = vperm.slane %v3590_v40, 0 }
 0x18f   :  { %7493 = vst [vmem:[#allocation111_spill] sm:$0xff] %v3626_v21  ;;  %v803_v47 = vmul.f32 %v3626_v21, %v760_v51 }
 0x190   :  { %v663_v19 = vadd.f32 %v631_v43, %v410_v48  ;;  %v550_v48 = vmul.f32 %v3649_v60, %v517_v56 }
 0x191   :  { %979 = vrot.lane.b32.xlu1 %v3191_v17, %s2933_s4  ;;  %983 = vrot.lane.b32.xlu0 %v3255_v44, %s2933_s4 }
 0x192   :  { %987 = vrot.lane.b32.xlu2 %v3315_v24, %s2933_s4  ;;  %v630_v43 = vmul.f32 %v3350_v52, %v550_v48  ;;  %v2788_v48 = vld [vmem:[%s7083_s3 + $0xa0] sm:$0xff] }
 0x193   :  { %v3637_v29 = vpop.permute.xlu1 %722  ;;  %v3642_v2 = vpop.permute.xlu0 %726 }
 0x194   :  { %7494 = vst [vmem:[#allocation112_spill] sm:$0xff] %v3637_v29  ;;  %v3639_v15 = vpop.permute.xlu2 %850  ;;  %v2785_v29 = vld [vmem:[%s7083_s3 + $0x88] sm:$0xff] }
 0x195   :  { %7495 = vst [vmem:[#allocation113_spill] sm:$0xff] %v3639_v15  ;;  %v884_v28 = vmul.f32 %v3639_v15, %v803_v47  ;;  %v329_v47 = vmul.f32 %v3238_v38, %v3260_v46 }
 0x196   :  { %7496 = vst [vmem:[#allocation114_spill] sm:$0xff] %v3642_v2  ;;  %v2784_v2 = vld [vmem:[%s7083_s3 + $0x80] sm:$0xff] }
 0x197   :  { %v3651_v51 = vadd.f32 %v884_v28, %v663_v19  ;;  %v3669_v28 = vperm.slane %v3616_v7, 0  ;;  %v2786_v7 = vld [vmem:[%s7083_s3 + $0x90] sm:$0xff] }
 0x199   :  { %985 = vrot.lane.b32.xlu1 %v3276_v57, %s2933_s4  ;;  %989 = vrot.lane.b32.xlu0 %v3359_v13, %s2933_s4  ;;  %7499 = vst [vmem:[#allocation117_spill] sm:$0xff] %v3669_v28 }
 0x19a   :  { %1083 = vperm.xlu2 %2868, %v2785_v29  }
 0x19b   :  { %v3663_v59 = vpop.permute.xlu1 %728  ;;  %v3671_v56 = vpop.permute.xlu0 %732 }
 0x19c   :  { %7497 = vst [vmem:[#allocation115_spill] sm:$0xff] %v3663_v59  ;;  %v3665_v19 = vpop.permute.xlu2 %927  ;;  %v768_v29 = vsel %vm738_vm2, %v3671_v56, %v3472_v36  ;;  %v409_v59 = vadd.f32 %v3291_v1, %v329_v47  ;;  %v2787_v1 = vld [vmem:[%s7083_s3 + $0x98] sm:$0xff] }
 0x19d   :  { %7498 = vst [vmem:[#allocation116_spill] sm:$0xff] %v3665_v19  ;;  %v802_v19 = vmul.f32 %v3669_v28, %v768_v29 }
 0x19e   :  { %7500 = vst [vmem:[#allocation118_spill] sm:$0xff] %v3671_v56  ;;  %v662_v52 = vadd.f32 %v630_v43, %v409_v59  ;;  %v2791_v59 = vld [vmem:[%s7083_s3 + $0xb8] sm:$0xff] }
 0x19f   :  { %v883_v26 = vmul.f32 %v3639_v15, %v802_v19 }
 0x1a1   :  { %1078 = vperm.xlu1 %2867, %v2784_v2   ;;  %v3689_v36 = vadd.f32 %v883_v26, %v662_v52  ;;  %1088 = vperm.xlu0 %2866, %v2786_v7   ;;  %v2789_v2 = vld [vmem:[%s7083_s3 + $0xa8] sm:$0xff]  ;;  %v508_v52 = vsel %vm487_vm1, %v3453_v11, %v3457_v45  ;;  %v516_v26 = vsel %vm487_vm1, %v3468_v37, %v3453_v11 }
 0x1a2   :  { %1098 = vperm.xlu2 %2868, %v2788_v48   ;;  %v547_v19 = vmul.f32 %v3602_v10, %v508_v52  ;;  %v546_v48 = vmul.f32 %v3649_v60, %v516_v26  ;;  %v325_v11 = vmul.f32 %v3221_v31, %v3226_v33 }
 0x1a3   :  { %v3691_v56 = vpop.permute.xlu1 %734  ;;  %v3695_v29 = vpop.permute.xlu0 %825 }
 0x1a4   :  { %7501 = vst [vmem:[#allocation119_spill] sm:$0xff] %v3691_v56  ;;  %v3693_v47 = vpop.permute.xlu2 %933  ;;  %v627_v52 = vmul.f32 %v3333_v42, %v547_v19  ;;  %v626_v26 = vmul.f32 %v3333_v42, %v546_v48  ;;  %v405_v56 = vadd.f32 %v3217_v27, %v325_v11 }
 0x1a5   :  { %7502 = vst [vmem:[#allocation120_spill] sm:$0xff] %v3693_v47 }
 0x1a6   :  { %7503 = vst [vmem:[#allocation121_spill] sm:$0xff] %v3695_v29  ;;  %v2790_v29 = vld [vmem:[%s7083_s3 + $0xb0] sm:$0xff] }
 0x1a9   :  { %1093 = vperm.xlu1 %2867, %v2787_v1   ;;  %1103 = vperm.xlu0 %2866, %v2789_v2   ;;  %v326_v1 = vmul.f32 %v3221_v31, %v3246_v41  ;;  %v767_v2 = vsel %vm738_vm2, %v3569_v4, %v3405_v16 }
 0x1aa   :  { %1113 = vperm.xlu2 %2868, %v2791_v59   ;;  %v759_v59 = vsel %vm738_vm2, %v3405_v16, %v3555_v0 }
 0x1ab   :  { %v3714_v7 = vpop.permute.xlu1 %830  ;;  %v3720_v47 = vpop.permute.xlu0 %840 }
 0x1ac   :  { %7504 = vst [vmem:[#allocation122_spill] sm:$0xff] %v3714_v7  ;;  %v3717_v43 = vpop.permute.xlu2 %939  ;;  %v798_v7 = vmul.f32 %v3669_v28, %v767_v2 }
 0x1ad   :  { %7505 = vst [vmem:[#allocation123_spill] sm:$0xff] %v3717_v43  ;;  %v406_v43 = vadd.f32 %v3217_v27, %v326_v1 }
 0x1ae   :  { %7506 = vst [vmem:[#allocation124_spill] sm:$0xff] %v3720_v47  ;;  %v799_v47 = vmul.f32 %v3626_v21, %v759_v59  ;;  %v658_v59 = vadd.f32 %v626_v26, %v405_v56 }
 0x1af   :  { %v659_v19 = vadd.f32 %v627_v52, %v406_v43 }
 0x1b1   :  { %1108 = vperm.xlu1 %2867, %v2790_v29   ;;  %1180 = vrot.lane.b32.xlu0 %v3139_v53, %s2934_s0 }
 0x1b2   :  { %1184 = vrot.lane.b32.xlu2 %v3175_v8, %s2934_s0 }
 0x1b3   :  { %v3747_v16 = vpop.permute.xlu1 %845  ;;  %v3753_v2 = vpop.permute.xlu0 %855 }
 0x1b4   :  { %7507 = vst [vmem:[#allocation125_spill] sm:$0xff] %v3747_v16  ;;  %v3749_v48 = vpop.permute.xlu2 %945  ;;  %v879_v29 = vmul.f32 %v3747_v16, %v798_v7  ;;  %v880_v1 = vmul.f32 %v3747_v16, %v799_v47  ;;  %v2795_v16 = vld [vmem:[%s7083_s3 + $0xd0] sm:$0xff] }
 0x1b5   :  { %7508 = vst [vmem:[#allocation126_spill] sm:$0xff] %v3749_v48 }
 0x1b6   :  { %7509 = vst [vmem:[#allocation127_spill] sm:$0xff] %v3753_v2  ;;  %v912_v15 = vadd.f32 %v880_v1, %v659_v19  ;;  %v3755_v4 = vadd.f32 %v879_v29, %v658_v59  ;;  %v2793_v2 = vld [vmem:[%s7083_s3 + $0xc0] sm:$0xff] }
 0x1b9   :  { %1182 = vrot.lane.b32.xlu1 %v3155_v63, %s2934_s0  ;;  %1186 = vrot.lane.b32.xlu0 %v3207_v23, %s2934_s0 }
 0x1ba   :  { %1190 = vrot.lane.b32.xlu2 %v3260_v46, %s2934_s0 }
 0x1bb   :  { %v3763_v43 = vpop.permute.xlu1 %860  ;;  %v3767_v47 = vpop.permute.xlu0 %929 }
 0x1bc   :  { %7510 = vst [vmem:[#allocation128_spill] sm:$0xff] %v3763_v43  ;;  %v3765_v7 = vpop.permute.xlu2 %951 }
 0x1bd   :  { %7511 = vst [vmem:[#allocation129_spill] sm:$0xff] %v3765_v7 }
 0x1be   :  { %7512 = vst [vmem:[#allocation130_spill] sm:$0xff] %v3767_v47 }
 0x1c1   :  { %1188 = vrot.lane.b32.xlu1 %v3226_v33, %s2934_s0  ;;  %1192 = vrot.lane.b32.xlu0 %v3294_v50, %s2934_s0 }
 0x1c2   :  { %1196 = vrot.lane.b32.xlu2 %v3141_v55, %s2934_s0 }
 0x1c3   :  { %v3775_v56 = vpop.permute.xlu1 %931  ;;  %v936_v52 = vpop.permute.xlu0 %935 }
 0x1c4   :  { %7513 = vst [vmem:[#allocation131_spill] sm:$0xff] %v3775_v56  ;;  %v3777_v11 = vpop.permute.xlu2 %957 }
 0x1c5   :  { %7514 = vst [vmem:[#allocation132_spill] sm:$0xff] %v3777_v11 }
 0x1c9   :  { %1194 = vrot.lane.b32.xlu1 %v3326_v35, %s2934_s0  ;;  %1198 = vrot.lane.b32.xlu0 %v3165_v3, %s2934_s0 }
 0x1ca   :  { %1202 = vrot.lane.b32.xlu2 %v3209_v25, %s2934_s0 }
 0x1cb   :  { %v3785_v26 = vpop.permute.xlu1 %937  ;;  %v3789_v29 = vpop.permute.xlu0 %941 }
 0x1cc   :  { %v3787_v19 = vpop.permute.xlu2 %963  ;;  %7516 = vst [vmem:[#allocation134_spill] sm:$0xff] %v3789_v29 }
 0x1cd   :  { %7515 = vst [vmem:[#allocation133_spill] sm:$0xff] %v3787_v19 }
 0x1d1   :  { %1200 = vrot.lane.b32.xlu1 %v3189_v14, %s2934_s0  ;;  %1204 = vrot.lane.b32.xlu0 %v3246_v41, %s2934_s0 }
 0x1d2   :  { %1208 = vrot.lane.b32.xlu2 %v3297_v6, %s2934_s0 }
 0x1d3   :  { %v3797_v1 = vpop.permute.xlu1 %943  ;;  %v3801_v56 = vpop.permute.xlu0 %947 }
 0x1d4   :  { %7517 = vst [vmem:[#allocation135_spill] sm:$0xff] %v3797_v1  ;;  %v3799_v59 = vpop.permute.xlu2 %969 }
 0x1d5   :  { %7518 = vst [vmem:[#allocation136_spill] sm:$0xff] %v3799_v59 }
 0x1d6   :  { %7519 = vst [vmem:[#allocation137_spill] sm:$0xff] %v3801_v56 }
 0x1d9   :  { %1206 = vrot.lane.b32.xlu1 %v3273_v54, %s2934_s0  ;;  %1210 = vrot.lane.b32.xlu0 %v3331_v12, %s2934_s0 }
 0x1da   :  { %1214 = vrot.lane.b32.xlu2 %v3167_v5, %s2934_s0 }
 0x1db   :  { %v3809_v19 = vpop.permute.xlu1 %949  ;;  %v3813_v11 = vpop.permute.xlu0 %953 }
 0x1dc   :  { %7520 = vst [vmem:[#allocation138_spill] sm:$0xff] %v3809_v19  ;;  %v3811_v29 = vpop.permute.xlu2 %975 }
 0x1dd   :  { %7521 = vst [vmem:[#allocation139_spill] sm:$0xff] %v3811_v29 }
 0x1de   :  { %7522 = vst [vmem:[#allocation140_spill] sm:$0xff] %v3813_v11 }
 0x1e1   :  { %1212 = vrot.lane.b32.xlu1 %v3151_v61, %s2934_s0  ;;  %1216 = vrot.lane.b32.xlu0 %v3193_v18, %s2934_s0 }
 0x1e2   :  { %1220 = vrot.lane.b32.xlu2 %v3241_v39, %s2934_s0 }
 0x1e3   :  { %v3821_v59 = vpop.permute.xlu1 %955  ;;  %v3825_v1 = vpop.permute.xlu0 %959 }
 0x1e4   :  { %7523 = vst [vmem:[#allocation141_spill] sm:$0xff] %v3821_v59  ;;  %v3823_v56 = vpop.permute.xlu2 %981 }
 0x1e5   :  { %7524 = vst [vmem:[#allocation142_spill] sm:$0xff] %v3823_v56 }
 0x1e6   :  { %7525 = vst [vmem:[#allocation143_spill] sm:$0xff] %v3825_v1 }
 0x1e9   :  { %1218 = vrot.lane.b32.xlu1 %v3223_v32, %s2934_s0  ;;  %1222 = vrot.lane.b32.xlu0 %v3279_v58, %s2934_s0 }
 0x1ea   :  { %1226 = vrot.lane.b32.xlu2 %v3344_v49, %s2934_s0 }
 0x1eb   :  { %v3833_v29 = vpop.permute.xlu1 %961  ;;  %v3837_v47 = vpop.permute.xlu0 %965 }
 0x1ec   :  { %7526 = vst [vmem:[#allocation144_spill] sm:$0xff] %v3833_v29  ;;  %v3835_v19 = vpop.permute.xlu2 %987 }
 0x1ed   :  { %7527 = vst [vmem:[#allocation145_spill] sm:$0xff] %v3835_v19  ;;  %v2783_v19 = vld [vmem:[%s7087_s7 + $0x8] sm:$0xf] }
 0x1ee   :  { %7528 = vst [vmem:[#allocation146_spill] sm:$0xff] %v3837_v47  ;;  %v1012_v47 = vsel %vm991_vm3, %v936_v52, %v3765_v7  ;;  %v3858_v29 = vperm.slane %v2783_v19, 1 }
 0x1f0   :  { %7532 = vst [vmem:[#allocation150_spill] sm:$0xff] %v3858_v29 }
 0x1f1   :  { %1224 = vrot.lane.b32.xlu1 %v3312_v20, %s2934_s0  ;;  %1228 = vrot.lane.b32.xlu0 %v3153_v62, %s2934_s0 }
 0x1f2   :  { %1232 = vrot.lane.b32.xlu2 %v3191_v17, %s2934_s0 }
 0x1f3   :  { %v3845_v1 = vpop.permute.xlu1 %967  ;;  %v3849_v56 = vpop.permute.xlu0 %971 }
 0x1f4   :  { %7529 = vst [vmem:[#allocation147_spill] sm:$0xff] %v3845_v1  ;;  %v3847_v59 = vpop.permute.xlu2 %1083 }
 0x1f5   :  { %7530 = vst [vmem:[#allocation148_spill] sm:$0xff] %v3847_v59 }
 0x1f6   :  { %7531 = vst [vmem:[#allocation149_spill] sm:$0xff] %v3849_v56  ;;  %v1052_v56 = vmul.f32 %v3858_v29, %v1012_v47 }
 0x1f9   :  { %1230 = vrot.lane.b32.xlu1 %v3177_v9, %s2934_s0  ;;  %1234 = vrot.lane.b32.xlu0 %v3228_v34, %s2934_s0 }
 0x1fa   :  { %1238 = vrot.lane.b32.xlu2 %v3276_v57, %s2934_s0 }
 0x1fb   :  { %v3867_v59 = vpop.permute.xlu1 %973  ;;  %v3872_v7 = vpop.permute.xlu0 %977 }
 0x1fc   :  { %7533 = vst [vmem:[#allocation151_spill] sm:$0xff] %v3867_v59  ;;  %v3869_v1 = vpop.permute.xlu2 %1098 }
 0x1fd   :  { %7534 = vst [vmem:[#allocation152_spill] sm:$0xff] %v3869_v1  ;;  %v1133_v48 = vmul.f32 %v3869_v1, %v1052_v56  ;;  %v3887_v56 = vperm.slane %v2783_v19, 0 }
 0x1fe   :  { %7535 = vst [vmem:[#allocation153_spill] sm:$0xff] %v3872_v7 }
 0x1ff   :  { %v3874_v43 = vadd.f32 %v1133_v48, %v912_v15  ;;  %7538 = vst [vmem:[#allocation156_spill] sm:$0xff] %v3887_v56 }
 0x201   :  { %1236 = vrot.lane.b32.xlu1 %v3255_v44, %s2934_s0  ;;  %1240 = vrot.lane.b32.xlu0 %v3315_v24, %s2934_s0 }
 0x202   :  { %1331 = vperm.xlu2 %2868, %v2793_v2   ;;  %v2796_v2 = vld [vmem:[%s7083_s3 + $0xd8] sm:$0xff] }
 0x203   :  { %v3883_v47 = vpop.permute.xlu1 %979  ;;  %v3889_v7 = vpop.permute.xlu0 %983 }
 0x204   :  { %7536 = vst [vmem:[#allocation154_spill] sm:$0xff] %v3883_v47  ;;  %v3885_v59 = vpop.permute.xlu2 %1113  ;;  %v1020_v15 = vsel %vm991_vm3, %v3889_v7, %v936_v52  ;;  %v2794_v47 = vld [vmem:[%s7083_s3 + $0xc8] sm:$0xff] }
 0x205   :  { %7537 = vst [vmem:[#allocation155_spill] sm:$0xff] %v3885_v59  ;;  %v1051_v48 = vmul.f32 %v3887_v56, %v1020_v15 }
 0x206   :  { %7539 = vst [vmem:[#allocation157_spill] sm:$0xff] %v3889_v7 }
 0x207   :  { %v1132_v59 = vmul.f32 %v3869_v1, %v1051_v48  ;;  %v2799_v48 = vld [vmem:[%s7083_s3 + $0xf0] sm:$0xff]  ;;  %v2800_v1 = vld [vmem:[%s7083_s3 + $0xf8] sm:$0xff] }
 0x209   :  { %1242 = vrot.lane.b32.xlu1 %v3359_v13, %s2934_s0  ;;  %v3905_v19 = vadd.f32 %v1132_v59, %v3755_v4  ;;  %1336 = vperm.xlu0 %2866, %v2794_v47   ;;  %v2797_v4 = vld [vmem:[%s7083_s3 + $0xe0] sm:$0xff] }
 0x20a   :  { %1346 = vperm.xlu2 %2868, %v2796_v2  }
 0x20b   :  { %v3907_v52 = vpop.permute.xlu1 %985  ;;  %v3911_v7 = vpop.permute.xlu0 %989 }
 0x20c   :  { %7540 = vst [vmem:[#allocation158_spill] sm:$0xff] %v3907_v52  ;;  %v3909_v15 = vpop.permute.xlu2 %1184 }
 0x20d   :  { %7541 = vst [vmem:[#allocation159_spill] sm:$0xff] %v3909_v15  ;;  %v2798_v15 = vld [vmem:[%s7083_s3 + $0xe8] sm:$0xff] }
 0x20e   :  { %7542 = vst [vmem:[#allocation160_spill] sm:$0xff] %v3911_v7 }
 0x211   :  { %1341 = vperm.xlu1 %2867, %v2795_v16   ;;  %1351 = vperm.xlu0 %2866, %v2797_v4   ;;  %v1013_v16 = vsel %vm991_vm3, %v3785_v26, %v3813_v11 }
 0x212   :  { %1361 = vperm.xlu2 %2868, %v2799_v48   ;;  %v1021_v48 = vsel %vm991_vm3, %v3907_v52, %v3785_v26 }
 0x213   :  { %v3922_v59 = vpop.permute.xlu1 %1078  ;;  %v3926_v2 = vpop.permute.xlu0 %1088 }
 0x214   :  { %7543 = vst [vmem:[#allocation161_spill] sm:$0xff] %v3922_v59  ;;  %v3924_v47 = vpop.permute.xlu2 %1190  ;;  %v1055_v59 = vmul.f32 %v3887_v56, %v1021_v48  ;;  %v2806_v56 = vld [vmem:[%s7083_s3 + $0x160] sm:$0xff] }
 0x215   :  { %7544 = vst [vmem:[#allocation162_spill] sm:$0xff] %v3926_v2  ;;  %v1056_v2 = vmul.f32 %v3858_v29, %v1013_v16  ;;  %v2792_v29 = vld [vmem:[%s7087_s7 + $0xc] sm:$0xf] }
 0x219   :  { %1356 = vperm.xlu1 %2867, %v2798_v15   ;;  %1366 = vperm.xlu0 %2866, %v2800_v1  }
 0x21a   :  { %1435 = vrot.lane.b32.xlu2 %v3155_v63, %s2935_s25 }
 0x21b   :  { %v3944_v4 = vpop.permute.xlu1 %1093  ;;  %v3950_v11 = vpop.permute.xlu0 %1103 }
 0x21c   :  { %7545 = vst [vmem:[#allocation163_spill] sm:$0xff] %v3944_v4  ;;  %v3948_v7 = vpop.permute.xlu2 %1196  ;;  %v1136_v0 = vmul.f32 %v3950_v11, %v1055_v59  ;;  %v1137_v26 = vmul.f32 %v3950_v11, %v1056_v2  ;;  %v2805_v4 = vld [vmem:[%s7083_s3 + $0x158] sm:$0xff] }
 0x21d   :  { %7546 = vst [vmem:[#allocation164_spill] sm:$0xff] %v3948_v7 }
 0x21e   :  { %7547 = vst [vmem:[#allocation165_spill] sm:$0xff] %v3950_v11  ;;  %v3955_v15 = vadd.f32 %v1136_v0, %v3689_v36  ;;  %v3958_v52 = vadd.f32 %v1137_v26, %v3651_v51  ;;  %v2807_v11 = vld [vmem:[%s7083_s3 + $0x168] sm:$0xff] }
 0x221   :  { %1433 = vrot.lane.b32.xlu1 %v3139_v53, %s2935_s25  ;;  %1437 = vrot.lane.b32.xlu0 %v3175_v8, %s2935_s25 }
 0x222   :  { %1441 = vrot.lane.b32.xlu2 %v3226_v33, %s2935_s25 }
 0x223   :  { %v3966_v1 = vpop.permute.xlu1 %1108  ;;  %v3970_v2 = vpop.permute.xlu0 %1180 }
 0x224   :  { %7548 = vst [vmem:[#allocation166_spill] sm:$0xff] %v3966_v1  ;;  %v3968_v59 = vpop.permute.xlu2 %1202 }
 0x225   :  { %7549 = vst [vmem:[#allocation167_spill] sm:$0xff] %v3968_v59 }
 0x226   :  { %7550 = vst [vmem:[#allocation168_spill] sm:$0xff] %v3970_v2 }
 0x229   :  { %1439 = vrot.lane.b32.xlu1 %v3207_v23, %s2935_s25  ;;  %1443 = vrot.lane.b32.xlu0 %v3260_v46, %s2935_s25 }
 0x22a   :  { %1447 = vrot.lane.b32.xlu2 %v3326_v35, %s2935_s25 }
 0x22b   :  { %v3978_v0 = vpop.permute.xlu1 %1182  ;;  %v3982_v36 = vpop.permute.xlu0 %1186 }
 0x22c   :  { %7551 = vst [vmem:[#allocation169_spill] sm:$0xff] %v3978_v0  ;;  %v3980_v51 = vpop.permute.xlu2 %1208 }
 0x22d   :  { %7552 = vst [vmem:[#allocation170_spill] sm:$0xff] %v3980_v51 }
 0x22e   :  { %7553 = vst [vmem:[#allocation171_spill] sm:$0xff] %v3982_v36 }
 0x231   :  { %1445 = vrot.lane.b32.xlu1 %v3294_v50, %s2935_s25  ;;  %1449 = vrot.lane.b32.xlu0 %v3141_v55, %s2935_s25 }
 0x232   :  { %1453 = vrot.lane.b32.xlu2 %v3189_v14, %s2935_s25 }
 0x233   :  { %v3990_v16 = vpop.permute.xlu1 %1188  ;;  %v3994_v26 = vpop.permute.xlu0 %1192 }
 0x234   :  { %v3992_v48 = vpop.permute.xlu2 %1214  ;;  %7555 = vst [vmem:[#allocation173_spill] sm:$0xff] %v3994_v26 }
 0x235   :  { %7554 = vst [vmem:[#allocation172_spill] sm:$0xff] %v3992_v48 }
 0x239   :  { %1451 = vrot.lane.b32.xlu1 %v3165_v3, %s2935_s25  ;;  %1455 = vrot.lane.b32.xlu0 %v3209_v25, %s2935_s25 }
 0x23a   :  { %1459 = vrot.lane.b32.xlu2 %v3273_v54, %s2935_s25 }
 0x23b   :  { %v4002_v0 = vpop.permute.xlu1 %1194  ;;  %v4006_v36 = vpop.permute.xlu0 %1198 }
 0x23c   :  { %7556 = vst [vmem:[#allocation174_spill] sm:$0xff] %v4002_v0  ;;  %v4004_v51 = vpop.permute.xlu2 %1220 }
 0x23d   :  { %7557 = vst [vmem:[#allocation175_spill] sm:$0xff] %v4004_v51 }
 0x23e   :  { %7558 = vst [vmem:[#allocation176_spill] sm:$0xff] %v4006_v36 }
 0x241   :  { %1457 = vrot.lane.b32.xlu1 %v3246_v41, %s2935_s25  ;;  %1461 = vrot.lane.b32.xlu0 %v3297_v6, %s2935_s25 }
 0x242   :  { %1465 = vrot.lane.b32.xlu2 %v3151_v61, %s2935_s25 }
 0x243   :  { %v4014_v48 = vpop.permute.xlu1 %1200  ;;  %v4018_v59 = vpop.permute.xlu0 %1204 }
 0x244   :  { %7559 = vst [vmem:[#allocation177_spill] sm:$0xff] %v4014_v48  ;;  %v4016_v26 = vpop.permute.xlu2 %1226 }
 0x245   :  { %7560 = vst [vmem:[#allocation178_spill] sm:$0xff] %v4016_v26 }
 0x246   :  { %7561 = vst [vmem:[#allocation179_spill] sm:$0xff] %v4018_v59 }
 0x249   :  { %1463 = vrot.lane.b32.xlu1 %v3331_v12, %s2935_s25  ;;  %1467 = vrot.lane.b32.xlu0 %v3167_v5, %s2935_s25 }
 0x24a   :  { %1471 = vrot.lane.b32.xlu2 %v3223_v32, %s2935_s25 }
 0x24b   :  { %v4026_v0 = vpop.permute.xlu1 %1206  ;;  %v4030_v36 = vpop.permute.xlu0 %1210 }
 0x24c   :  { %7562 = vst [vmem:[#allocation180_spill] sm:$0xff] %v4026_v0  ;;  %v4028_v51 = vpop.permute.xlu2 %1232 }
 0x24d   :  { %7563 = vst [vmem:[#allocation181_spill] sm:$0xff] %v4028_v51 }
 0x24e   :  { %7564 = vst [vmem:[#allocation182_spill] sm:$0xff] %v4030_v36 }
 0x251   :  { %1469 = vrot.lane.b32.xlu1 %v3193_v18, %s2935_s25  ;;  %1473 = vrot.lane.b32.xlu0 %v3241_v39, %s2935_s25 }
 0x252   :  { %1477 = vrot.lane.b32.xlu2 %v3312_v20, %s2935_s25 }
 0x253   :  { %v4038_v26 = vpop.permute.xlu1 %1212  ;;  %v4042_v2 = vpop.permute.xlu0 %1216 }
 0x254   :  { %7565 = vst [vmem:[#allocation183_spill] sm:$0xff] %v4038_v26  ;;  %v4040_v48 = vpop.permute.xlu2 %1238 }
 0x255   :  { %7566 = vst [vmem:[#allocation184_spill] sm:$0xff] %v4040_v48 }
 0x256   :  { %7567 = vst [vmem:[#allocation185_spill] sm:$0xff] %v4042_v2 }
 0x259   :  { %1475 = vrot.lane.b32.xlu1 %v3279_v58, %s2935_s25  ;;  %1479 = vrot.lane.b32.xlu0 %v3344_v49, %s2935_s25 }
 0x25a   :  { %1483 = vrot.lane.b32.xlu2 %v3177_v9, %s2935_s25 }
 0x25b   :  { %v4050_v36 = vpop.permute.xlu1 %1218  ;;  %v4054_v7 = vpop.permute.xlu0 %1222 }
 0x25c   :  { %7568 = vst [vmem:[#allocation186_spill] sm:$0xff] %v4050_v36  ;;  %v4052_v51 = vpop.permute.xlu2 %1331 }
 0x25d   :  { %7569 = vst [vmem:[#allocation187_spill] sm:$0xff] %v4052_v51 }
 0x25e   :  { %7570 = vst [vmem:[#allocation188_spill] sm:$0xff] %v4054_v7 }
 0x261   :  { %1481 = vrot.lane.b32.xlu1 %v3153_v62, %s2935_s25  ;;  %1485 = vrot.lane.b32.xlu0 %v3191_v17, %s2935_s25 }
 0x262   :  { %1489 = vrot.lane.b32.xlu2 %v3255_v44, %s2935_s25 }
 0x263   :  { %v4062_v2 = vpop.permute.xlu1 %1224  ;;  %v4066_v1 = vpop.permute.xlu0 %1228 }
 0x264   :  { %7571 = vst [vmem:[#allocation189_spill] sm:$0xff] %v4062_v2  ;;  %v4064_v26 = vpop.permute.xlu2 %1346  ;;  %v2804_v2 = vld [vmem:[%s7083_s3 + $0x150] sm:$0xff] }
 0x265   :  { %7572 = vst [vmem:[#allocation190_spill] sm:$0xff] %v4064_v26  ;;  %v2802_v26 = vld [vmem:[%s7083_s3 + $0x140] sm:$0xff] }
 0x266   :  { %7573 = vst [vmem:[#allocation191_spill] sm:$0xff] %v4066_v1 }
 0x269   :  { %1487 = vrot.lane.b32.xlu1 %v3228_v34, %s2935_s25  ;;  %1491 = vrot.lane.b32.xlu0 %v3276_v57, %s2935_s25 }
 0x26a   :  { %1495 = vrot.lane.b32.xlu2 %v3359_v13, %s2935_s25 }
 0x26b   :  { %v4074_v7 = vpop.permute.xlu1 %1230  ;;  %v4078_v51 = vpop.permute.xlu0 %1234 }
 0x26c   :  { %7574 = vst [vmem:[#allocation192_spill] sm:$0xff] %v4074_v7  ;;  %v4076_v36 = vpop.permute.xlu2 %1361 }
 0x26d   :  { %7575 = vst [vmem:[#allocation193_spill] sm:$0xff] %v4076_v36 }
 0x26e   :  { %7576 = vst [vmem:[#allocation194_spill] sm:$0xff] %v4078_v51  ;;  %v2803_v51 = vld [vmem:[%s7083_s3 + $0x148] sm:$0xff] }
 0x271   :  { %1493 = vrot.lane.b32.xlu1 %v3315_v24, %s2935_s25  ;;  %1584 = vperm.xlu0 %2866, %v2802_v26  }
 0x272   :  { %1594 = vperm.xlu2 %2868, %v2804_v2  }
 0x273   :  { %v4088_v1 = vpop.permute.xlu1 %1236  ;;  %v4092_v36 = vpop.permute.xlu0 %1240 }
 0x274   :  { %7577 = vst [vmem:[#allocation195_spill] sm:$0xff] %v4088_v1  ;;  %v4090_v7 = vpop.permute.xlu2 %1435 }
 0x275   :  { %7578 = vst [vmem:[#allocation196_spill] sm:$0xff] %v4090_v7 }
 0x276   :  { %7579 = vst [vmem:[#allocation197_spill] sm:$0xff] %v4092_v36 }
 0x279   :  { %1589 = vperm.xlu1 %2867, %v2803_v51   ;;  %1599 = vperm.xlu0 %2866, %v2805_v4   ;;  %v1265_v4 = vsel %vm1244_vm4, %v3990_v16, %v4018_v59  ;;  %v1273_v51 = vsel %vm1244_vm4, %v4088_v1, %v3990_v16  ;;  %v2809_v16 = vld [vmem:[%s7083_s3 + $0x178] sm:$0xff] }
 0x27a   :  { %1609 = vperm.xlu2 %2868, %v2807_v11   ;;  %v2808_v11 = vld [vmem:[%s7083_s3 + $0x170] sm:$0xff] }
 0x27b   :  { %v4103_v2 = vpop.permute.xlu1 %1242  ;;  %v4107_v36 = vpop.permute.xlu0 %1336 }
 0x27c   :  { %7580 = vst [vmem:[#allocation198_spill] sm:$0xff] %v4103_v2  ;;  %v4105_v26 = vpop.permute.xlu2 %1441  ;;  %v4127_v2 = vperm.slane %v2792_v29, 1 }
 0x27d   :  { %7581 = vst [vmem:[#allocation199_spill] sm:$0xff] %v4105_v26 }
 0x27e   :  { %7582 = vst [vmem:[#allocation200_spill] sm:$0xff] %v4107_v36  ;;  %v4129_v36 = vperm.slane %v2792_v29, 0  ;;  %v1305_v7 = vmul.f32 %v4127_v2, %v1265_v4  ;;  %v1274_v4 = vsel %vm1244_vm4, %v4040_v48, %v3924_v47 }
 0x27f   :  { %7583 = vst [vmem:[#allocation201_spill] sm:$0xff] %v4127_v2 }
 0x280   :  { %7584 = vst [vmem:[#allocation202_spill] sm:$0xff] %v4129_v36  ;;  %v1304_v59 = vmul.f32 %v4129_v36, %v1273_v51 }
 0x281   :  { %1604 = vperm.xlu1 %2867, %v2806_v56   ;;  %1614 = vperm.xlu0 %2866, %v2808_v11   ;;  %v1266_v11 = vsel %vm1244_vm4, %v3924_v47, %v4026_v0 }
 0x282   :  { %1686 = vrot.lane.b32.xlu2 %v3139_v53, %s2936_s17 }
 0x283   :  { %v4133_v26 = vpop.permute.xlu1 %1341  ;;  %v4139_v21 = vpop.permute.xlu0 %1351 }
 0x284   :  { %7585 = vst [vmem:[#allocation203_spill] sm:$0xff] %v4133_v26  ;;  %v4137_v28 = vpop.permute.xlu2 %1447  ;;  %v1385_v56 = vmul.f32 %v4139_v21, %v1304_v59  ;;  %v1386_v29 = vmul.f32 %v4139_v21, %v1305_v7  ;;  %v1309_v7 = vmul.f32 %v4127_v2, %v1266_v11 }
 0x285   :  { %7586 = vst [vmem:[#allocation204_spill] sm:$0xff] %v4137_v28 }
 0x286   :  { %7587 = vst [vmem:[#allocation205_spill] sm:$0xff] %v4139_v21  ;;  %v4155_v51 = vadd.f32 %v1385_v56, %v3905_v19  ;;  %v4158_v59 = vadd.f32 %v1386_v29, %v3874_v43  ;;  %v1308_v21 = vmul.f32 %v4129_v36, %v1274_v4  ;;  %v7602_v36 = vld [vmem:[#allocation7_spill] sm:$0xff] }
 0x287   :  { %v309_v0 = vmul.f32 %v7602_v36, %v3139_v53  ;;  %v310_v48 = vmul.f32 %v7602_v36, %v3141_v55  ;;  %v311_v2 = vmul.f32 %v7602_v36, %v3151_v61  ;;  %v7607_v53 = vld [vmem:[#allocation23_spill] sm:$0xff] }
 0x288   :  { %7588 = vst [vmem:[#allocation206_spill] sm:$0xff] %v4155_v51 }
 0x289   :  { %7589 = vst [vmem:[#allocation207_spill] sm:$0xff] %v4158_v59  ;;  %1619 = vperm.xlu1 %2867, %v2809_v16   ;;  %1688 = vrot.lane.b32.xlu0 %v3155_v63, %s2936_s17 }
 0x28a   :  { %1692 = vrot.lane.b32.xlu2 %v3207_v23, %s2936_s17 }
 0x28b   :  { %v4166_v26 = vpop.permute.xlu1 %1356  ;;  %v4172_v56 = vpop.permute.xlu0 %1366 }
 0x28c   :  { %7590 = vst [vmem:[#allocation208_spill] sm:$0xff] %v4166_v26  ;;  %v4168_v47 = vpop.permute.xlu2 %1453  ;;  %v1389_v19 = vmul.f32 %v4166_v26, %v1308_v21  ;;  %v1390_v43 = vmul.f32 %v4166_v26, %v1309_v7  ;;  %v315_v26 = vmul.f32 %v3205_v22, %v3167_v5 }
 0x28d   :  { %7591 = vst [vmem:[#allocation209_spill] sm:$0xff] %v4168_v47 }
 0x28e   :  { %7592 = vst [vmem:[#allocation210_spill] sm:$0xff] %v4172_v56  ;;  %v4175_v29 = vadd.f32 %v1389_v19, %v3955_v15  ;;  %v4178_v16 = vadd.f32 %v1390_v43, %v3958_v52  ;;  %v313_v19 = vmul.f32 %v3205_v22, %v3155_v63  ;;  %v314_v43 = vmul.f32 %v3205_v22, %v3165_v3 }
 0x28f   :  { %v316_v56 = vmul.f32 %v3205_v22, %v3177_v9  ;;  %v7604_v22 = vld [vmem:[#allocation11_spill] sm:$0xff] }
 0x290   :  { %7593 = vst [vmem:[#allocation211_spill] sm:$0xff] %v4175_v29  ;;  %v323_v28 = vmul.f32 %v7604_v22, %v3223_v32 }
 0x291   :  { %7594 = vst [vmem:[#allocation212_spill] sm:$0xff] %v4178_v16  ;;  %1690 = vrot.lane.b32.xlu1 %v3175_v8, %s2936_s17  ;;  %1694 = vrot.lane.b32.xlu0 %v3226_v33, %s2936_s17  ;;  %v321_v33 = vmul.f32 %v7604_v22, %v3207_v23  ;;  %v318_v23 = vmul.f32 %v7607_v53, %v3189_v14 }
 0x292   :  { %1698 = vrot.lane.b32.xlu2 %v3294_v50, %s2936_s17 }
 0x293   :  { %v4186_v21 = vpop.permute.xlu1 %1433  ;;  %v4190_v4 = vpop.permute.xlu0 %1437 }
 0x294   :  { %7595 = vst [vmem:[#allocation213_spill] sm:$0xff] %v4186_v21  ;;  %v4188_v11 = vpop.permute.xlu2 %1459 }
 0x295   :  { %7596 = vst [vmem:[#allocation214_spill] sm:$0xff] %v4188_v11  ;;  %v7623_v11 = vld [vmem:[#allocation64_spill] sm:$0xff] }
 0x296   :  { %7597 = vst [vmem:[#allocation215_spill] sm:$0xff] %v4190_v4 }
 0x299   :  { %1696 = vrot.lane.b32.xlu1 %v3260_v46, %s2936_s17  ;;  %1700 = vrot.lane.b32.xlu0 %v3326_v35, %s2936_s17  ;;  %v7605_v46 = vld [vmem:[#allocation20_spill] sm:$0xff] }
 0x29a   :  { %1704 = vrot.lane.b32.xlu2 %v3165_v3, %s2936_s17  ;;  %v312_v3 = vmul.f32 %v7602_v36, %v3153_v62  ;;  %v4233_v63 = vadd.f32 %v7605_v46, %v314_v43  ;;  %v4236_v59 = vadd.f32 %v7605_v46, %v313_v19  ;;  %v317_v36 = vmul.f32 %v7607_v53, %v3175_v8 }
 0x29b   :  { %v4198_v52 = vpop.permute.xlu1 %1439  ;;  %v4202_v7 = vpop.permute.xlu0 %1443  ;;  %v319_v19 = vmul.f32 %v7607_v53, %v3193_v18  ;;  %v4257_v21 = vadd.f32 %v7605_v46, %v316_v56  ;;  %v320_v8 = vmul.f32 %v7607_v53, %v3191_v17  ;;  %v7609_v56 = vld [vmem:[#allocation40_spill] sm:$0xff]  ;;  %v7621_v17 = vld [vmem:[#allocation29_spill] sm:$0xff] }
 0x29c   :  { %7598 = vst [vmem:[#allocation216_spill] sm:$0xff] %v4198_v52  ;;  %v4200_v15 = vpop.permute.xlu2 %1465  ;;  %v4254_v52 = vadd.f32 %v7605_v46, %v315_v26 }
 0x29d   :  { %7599 = vst [vmem:[#allocation217_spill] sm:$0xff] %v4200_v15 }
 0x29e   :  { %7600 = vst [vmem:[#allocation218_spill] sm:$0xff] %v4202_v7  ;;  %v7622_v7 = vld [vmem:[#allocation61_spill] sm:$0xff] }
 0x2a1   :  { %1702 = vrot.lane.b32.xlu1 %v3141_v55, %s2936_s17  ;;  %1706 = vrot.lane.b32.xlu0 %v3189_v14, %s2936_s17  ;;  %v322_v55 = vmul.f32 %v7604_v22, %v3209_v25  ;;  %v327_v14 = vmul.f32 %v3221_v31, %v3241_v39 }
 0x2a2   :  { %1710 = vrot.lane.b32.xlu2 %v3246_v41, %s2936_s17 }
 0x2a3   :  { %v4218_v1 = vpop.permute.xlu1 %1445  ;;  %v4238_v51 = vpop.permute.xlu0 %1449  ;;  %v4282_v53 = vadd.f32 %v7609_v56, %v322_v55  ;;  %v4317_v29 = vadd.f32 %v3217_v27, %v327_v14 }
 0x2a4   :  { %7601 = vst [vmem:[#allocation219_spill] sm:$0xff] %v4218_v1  ;;  %v4226_v41 = vpop.permute.xlu2 %1471  ;;  %v7608_v1 = vld [vmem:[#allocation34_spill] sm:$0xff] }
 0x2a5   :  { %7603 = vst [vmem:[#allocation7_spill] sm:$0xff] %v4226_v41  ;;  %v4249_v43 = vadd.f32 %v7608_v1, %v309_v0  ;;  %v328_v0 = vmul.f32 %v3221_v31, %v3255_v44  ;;  %v4268_v41 = vadd.f32 %v7608_v1, %v310_v48  ;;  %v4271_v26 = vadd.f32 %v7608_v1, %v311_v2  ;;  %v7610_v48 = vld [vmem:[#allocation35_spill] sm:$0xff] }
 0x2a6   :  { %7606 = vst [vmem:[#allocation11_spill] sm:$0xff] %v4238_v51  ;;  %v324_v51 = vmul.f32 %v7604_v22, %v3228_v34  ;;  %v4274_v46 = vadd.f32 %v7608_v1, %v312_v3  ;;  %v4277_v22 = vadd.f32 %v7609_v56, %v321_v33  ;;  %v4285_v31 = vadd.f32 %v7609_v56, %v323_v28  ;;  %v7611_v33 = vld [vmem:[#allocation49_spill] sm:$0xff]  ;;  %v7612_v1 = vld [vmem:[#allocation60_spill] sm:$0xff] }
 0x2a7   :  { %v4288_v16 = vadd.f32 %v7610_v48, %v317_v36  ;;  %v4291_v2 = vadd.f32 %v7610_v48, %v318_v23  ;;  %v4296_v3 = vadd.f32 %v7610_v48, %v319_v19  ;;  %v504_v55 = vsel %vm487_vm1, %v7612_v1, %v7611_v33 }
 0x2a8   :  { %v331_v28 = vmul.f32 %v3238_v38, %v3279_v58  ;;  %v332_v36 = vmul.f32 %v3238_v38, %v3276_v57  ;;  %v4314_v19 = vadd.f32 %v7610_v48, %v320_v8  ;;  %v4320_v4 = vadd.f32 %v3217_v27, %v328_v0  ;;  %v7617_v27 = vld [vmem:[#allocation62_spill] sm:$0xff]  ;;  %v7618_v48 = vld [vmem:[#allocation63_spill] sm:$0xff] }
 0x2a9   :  { %1708 = vrot.lane.b32.xlu1 %v3209_v25, %s2936_s17  ;;  %1712 = vrot.lane.b32.xlu0 %v3273_v54, %s2936_s17  ;;  %v4311_v25 = vadd.f32 %v7609_v56, %v324_v51  ;;  %v4325_v38 = vperm.slane %v3590_v40, 2  ;;  %v7615_v54 = vld [vmem:[#allocation16_spill] sm:$0xff]  ;;  %v531_v14 = vmul.f32 %v3602_v10, %v504_v55  ;;  %v496_v0 = vsel %vm487_vm1, %v7611_v33, %v7617_v27 }
 0x2aa   :  { %1716 = vrot.lane.b32.xlu2 %v3331_v12, %s2936_s17  ;;  %v335_v51 = vmul.f32 %v7615_v54, %v3312_v20  ;;  %v333_v8 = vmul.f32 %v7615_v54, %v3294_v50  ;;  %v336_v57 = vmul.f32 %v7615_v54, %v3315_v24  ;;  %v4347_v44 = vperm.slane %v3590_v40, 3  ;;  %v7619_v50 = vld [vmem:[#allocation41_spill] sm:$0xff] }
 0x2ab   :  { %v4308_v23 = vpop.permute.xlu1 %1451  ;;  %v4333_v56 = vpop.permute.xlu0 %1455  ;;  %v4353_v55 = vadd.f32 %v7619_v50, %v332_v36  ;;  %v337_v33 = vmul.f32 %v7621_v17, %v3326_v35  ;;  %v338_v40 = vmul.f32 %v7621_v17, %v3331_v12  ;;  %v7624_v35 = vld [vmem:[#allocation45_spill] sm:$0xff] }
 0x2ac   :  { %7613 = vst [vmem:[#allocation20_spill] sm:$0xff] %v4308_v23  ;;  %v4322_v15 = vpop.permute.xlu2 %1477  ;;  %v334_v23 = vmul.f32 %v7615_v54, %v3297_v6  ;;  %v488_v54 = vsel %vm487_vm1, %v7617_v27, %v7618_v48  ;;  %v4372_v24 = vadd.f32 %v7624_v35, %v333_v8  ;;  %v7626_v27 = vld [vmem:[#allocation32_spill] sm:$0xff]  ;;  %v4383_v9 = vadd.f32 %v7624_v35, %v335_v51  ;;  %v7629_v8 = vld [vmem:[#allocation57_spill] sm:$0xff] }
 0x2ad   :  { %7614 = vst [vmem:[#allocation23_spill] sm:$0xff] %v4322_v15  ;;  %v512_v15 = vsel %vm487_vm1, %v7618_v48, %v7612_v1  ;;  %v514_v1 = vsel %vm487_vm1, %v7623_v11, %v7622_v7  ;;  %v611_v48 = vmul.f32 %v7626_v27, %v531_v14 }
 0x2ae   :  { %7616 = vst [vmem:[#allocation34_spill] sm:$0xff] %v4333_v56  ;;  %v4350_v56 = vadd.f32 %v7619_v50, %v331_v28  ;;  %v339_v50 = vmul.f32 %v7621_v17, %v3344_v49  ;;  %v532_v28 = vmul.f32 %v4325_v38, %v496_v0  ;;  %v530_v36 = vmul.f32 %v3649_v60, %v512_v15 }
 0x2af   :  { %7620 = vst [vmem:[#allocation40_spill] sm:$0xff] %v4353_v55  ;;  %v340_v55 = vmul.f32 %v7621_v17, %v3359_v13  ;;  %v4380_v12 = vadd.f32 %v7624_v35, %v334_v23  ;;  %v4386_v0 = vadd.f32 %v7624_v35, %v336_v57  ;;  %v538_v15 = vmul.f32 %v3649_v60, %v514_v1  ;;  %v7631_v23 = vld [vmem:[#allocation65_spill] sm:$0xff]  ;;  %v7632_v35 = vld [vmem:[#allocation68_spill] sm:$0xff] }
 0x2b0   :  { %7625 = vst [vmem:[#allocation35_spill] sm:$0xff] %v4372_v24  ;;  %v533_v17 = vmul.f32 %v4347_v44, %v488_v54  ;;  %v513_v1 = vsel %vm487_vm1, %v7632_v35, %v7631_v23  ;;  %v7633_v54 = vld [vmem:[#allocation27_spill] sm:$0xff]  ;;  %v610_v24 = vmul.f32 %v7626_v27, %v530_v36 }
 0x2b1   :  { %1714 = vrot.lane.b32.xlu1 %v3297_v6, %s2936_s17  ;;  %7627 = vst [vmem:[#allocation49_spill] sm:$0xff] %v4383_v9  ;;  %v7630_v6 = vld [vmem:[#allocation66_spill] sm:$0xff]  ;;  %1718 = vrot.lane.b32.xlu0 %v3151_v61, %s2936_s17  ;;  %v4412_v13 = vadd.f32 %v7633_v54, %v339_v50  ;;  %v612_v61 = vmul.f32 %v7626_v27, %v532_v28 }
 0x2b2   :  { %7628 = vst [vmem:[#allocation60_spill] sm:$0xff] %v4386_v0  ;;  %1722 = vrot.lane.b32.xlu2 %v3193_v18, %s2936_s17  ;;  %v497_v14 = vsel %vm487_vm1, %v7630_v6, %v7629_v8  ;;  %v505_v51 = vsel %vm487_vm1, %v7631_v23, %v7630_v6  ;;  %v4409_v18 = vadd.f32 %v7633_v54, %v338_v40  ;;  %v7638_v28 = vld [vmem:[#allocation70_spill] sm:$0xff] }
 0x2b3   :  { %v4402_v57 = vpop.permute.xlu1 %1457  ;;  %7635 = vst [vmem:[#allocation62_spill] sm:$0xff] %v4412_v13  ;;  %v4415_v0 = vadd.f32 %v7633_v54, %v337_v33  ;;  %v489_v23 = vsel %vm487_vm1, %v7629_v8, %v7632_v35  ;;  %v4426_v40 = vadd.f32 %v7633_v54, %v340_v55  ;;  %v4431_v50 = vadd.f32 %v611_v48, %v4268_v41  ;;  %v7639_v13 = vld [vmem:[#allocation51_spill] sm:$0xff]  ;;  %v7640_v35 = vld [vmem:[#allocation72_spill] sm:$0xff] }
 0x2b4   :  { %7634 = vst [vmem:[#allocation16_spill] sm:$0xff] %v4409_v18  ;;  %v4417_v6 = vpop.permute.xlu2 %1483  ;;  %v4428_v18 = vpop.permute.xlu0 %1461  ;;  %v535_v33 = vmul.f32 %v3602_v10, %v505_v51  ;;  %v506_v36 = vsel %vm487_vm1, %v7622_v7, %v7638_v28  ;;  %v618_v9 = vmul.f32 %v7639_v13, %v538_v15  ;;  %v613_v8 = vmul.f32 %v7626_v27, %v533_v17  ;;  %v7641_v51 = vld [vmem:[#allocation67_spill] sm:$0xff]  ;;  %v7642_v7 = vld [vmem:[#allocation74_spill] sm:$0xff] }
 0x2b5   :  { %7636 = vst [vmem:[#allocation63_spill] sm:$0xff] %v4415_v0  ;;  %v536_v0 = vmul.f32 %v4325_v38, %v497_v14  ;;  %v534_v55 = vmul.f32 %v3649_v60, %v513_v1  ;;  %v498_v41 = vsel %vm487_vm1, %v7638_v28, %v7640_v35  ;;  %v537_v48 = vmul.f32 %v4347_v44, %v489_v23  ;;  %v7643_v27 = vld [vmem:[#allocation75_spill] sm:$0xff] }
 0x2b6   :  { %7637 = vst [vmem:[#allocation41_spill] sm:$0xff] %v4428_v18  ;;  %v490_v14 = vsel %vm487_vm1, %v7640_v35, %v7623_v11  ;;  %v507_v15 = vsel %vm487_vm1, %v7642_v7, %v7641_v51  ;;  %v499_v17 = vsel %vm487_vm1, %v7641_v51, %v7643_v27  ;;  %v4460_v1 = vadd.f32 %v612_v61, %v4271_v26  ;;  %v7644_v11 = vld [vmem:[#allocation77_spill] sm:$0xff]  ;;  %v7645_v35 = vld [vmem:[#allocation46_spill] sm:$0xff] }
 0x2b7   :  { %v4463_v54 = vadd.f32 %v610_v24, %v4249_v43  ;;  %v539_v23 = vmul.f32 %v3602_v10, %v506_v36  ;;  %v515_v28 = vsel %vm487_vm1, %v7644_v11, %v7642_v7  ;;  %v615_v18 = vmul.f32 %v7645_v35, %v535_v33 }
 0x2b8   :  { %v616_v51 = vmul.f32 %v7645_v35, %v536_v0  ;;  %v540_v61 = vmul.f32 %v4325_v38, %v498_v41  ;;  %v491_v24 = vsel %vm487_vm1, %v7643_v27, %v7644_v11  ;;  %v4482_v43 = vadd.f32 %v613_v8, %v4274_v46 }
 0x2b9   :  { %1720 = vrot.lane.b32.xlu1 %v3167_v5, %s2936_s17  ;;  %v541_v26 = vmul.f32 %v4347_v44, %v490_v14  ;;  %v543_v36 = vmul.f32 %v3602_v10, %v507_v15  ;;  %v544_v33 = vmul.f32 %v4325_v38, %v499_v17  ;;  %1724 = vrot.lane.b32.xlu0 %v3223_v32, %s2936_s17  ;;  %v7647_v17 = vld [vmem:[#allocation71_spill] sm:$0xff]  ;;  %v7674_v32 = vld [vmem:[#allocation44_spill] sm:$0xff] }
 0x2ba   :  { %1728 = vrot.lane.b32.xlu2 %v3279_v58, %s2936_s17  ;;  %v4492_v41 = vadd.f32 %v618_v9, %v4288_v16  ;;  %v614_v7 = vmul.f32 %v7645_v35, %v534_v55  ;;  %v617_v27 = vmul.f32 %v7645_v35, %v537_v48  ;;  %v542_v46 = vmul.f32 %v3649_v60, %v515_v28  ;;  %v7650_v28 = vld [vmem:[#allocation39_spill] sm:$0xff]  ;;  %v7653_v58 = vld [vmem:[#allocation80_spill] sm:$0xff] }
 0x2bb   :  { %v4489_v0 = vpop.permute.xlu1 %1463  ;;  %v619_v14 = vmul.f32 %v7639_v13, %v539_v23  ;;  %v545_v15 = vmul.f32 %v4347_v44, %v491_v24  ;;  %v500_v11 = vsel %vm487_vm1, %v3457_v45, %v7647_v17  ;;  %v4509_v16 = vadd.f32 %v615_v18, %v4233_v63 }
 0x2bc   :  { %7646 = vst [vmem:[#allocation29_spill] sm:$0xff] %v4489_v0  ;;  %v4497_v8 = vpop.permute.xlu2 %1489  ;;  %v4506_v9 = vpop.permute.xlu0 %1467  ;;  %v4512_v55 = vadd.f32 %v616_v51, %v4254_v52  ;;  %v620_v48 = vmul.f32 %v7639_v13, %v540_v61  ;;  %v621_v45 = vmul.f32 %v7639_v13, %v541_v26  ;;  %v623_v35 = vmul.f32 %v7650_v28, %v543_v36  ;;  %v7652_v61 = vld [vmem:[#allocation82_spill] sm:$0xff] }
 0x2bd   :  { %7648 = vst [vmem:[#allocation61_spill] sm:$0xff] %v4509_v16  ;;  %v4519_v23 = vsel %vm1497_vm5, %v4506_v9, %v4417_v6  ;;  %v624_v24 = vmul.f32 %v7650_v28, %v544_v33  ;;  %v492_v63 = vsel %vm487_vm1, %v7647_v17, %v3468_v37  ;;  %v4529_v18 = vadd.f32 %v614_v7, %v4236_v59  ;;  %v7655_v33 = vld [vmem:[#allocation76_spill] sm:$0xff]  ;;  %v2812_v16 = vld [vmem:[%s7083_s3 + $0x188] sm:$0xff] }
 0x2be   :  { %7649 = vst [vmem:[#allocation64_spill] sm:$0xff] %v4512_v55  ;;  %v622_v52 = vmul.f32 %v7650_v28, %v542_v46  ;;  %v548_v51 = vmul.f32 %v4325_v38, %v500_v11  ;;  %v501_v13 = vsel %vm487_vm1, %v7653_v58, %v7652_v61  ;;  %v4538_v26 = vadd.f32 %v617_v27, %v4257_v21  ;;  %v7656_v21 = vld [vmem:[#allocation78_spill] sm:$0xff]  ;;  %v7657_v27 = vld [vmem:[#allocation85_spill] sm:$0xff]  ;;  %v7722_v55 = vld [vmem:[#allocation212_spill] sm:$0xff] }
 0x2bf   :  { %7651 = vst [vmem:[#allocation45_spill] sm:$0xff] %v4529_v18  ;;  %v4541_v36 = vadd.f32 %v619_v14, %v4291_v2  ;;  %v625_v37 = vmul.f32 %v7650_v28, %v545_v15  ;;  %v493_v59 = vsel %vm487_vm1, %v7652_v61, %v7655_v33  ;;  %v4551_v7 = vadd.f32 %v620_v48, %v4296_v3  ;;  %v7658_v46 = vld [vmem:[#allocation86_spill] sm:$0xff] }
 0x2c0   :  { %7654 = vst [vmem:[#allocation32_spill] sm:$0xff] %v4538_v26  ;;  %v549_v58 = vmul.f32 %v4347_v44, %v492_v63  ;;  %v510_v2 = vsel %vm487_vm1, %v7657_v27, %v7656_v21  ;;  %v502_v14 = vsel %vm487_vm1, %v7656_v21, %v7658_v46  ;;  %v4565_v15 = vadd.f32 %v621_v45, %v4314_v19  ;;  %v7669_v21 = vld [vmem:[#allocation55_spill] sm:$0xff] }
 0x2c1   :  { %1726 = vrot.lane.b32.xlu1 %v3241_v39, %s2936_s17  ;;  %v4568_v3 = vadd.f32 %v623_v35, %v4282_v53  ;;  %v4571_v17 = vadd.f32 %v624_v24, %v4285_v31  ;;  %v552_v11 = vmul.f32 %v4325_v38, %v501_v13  ;;  %1730 = vrot.lane.b32.xlu0 %v3312_v20, %s2936_s17  ;;  %v7662_v53 = vld [vmem:[#allocation88_spill] sm:$0xff]  ;;  %v7666_v13 = vld [vmem:[#allocation69_spill] sm:$0xff] }
 0x2c2   :  { %1734 = vrot.lane.b32.xlu2 %v3153_v62, %s2936_s17  ;;  %v4579_v28 = vadd.f32 %v622_v52, %v4277_v22  ;;  %v628_v63 = vmul.f32 %v3333_v42, %v548_v51  ;;  %v553_v19 = vmul.f32 %v4347_v44, %v493_v59  ;;  %v518_v31 = vsel %vm487_vm1, %v7662_v53, %v7657_v27  ;;  %v7665_v51 = vld [vmem:[#allocation79_spill] sm:$0xff] }
 0x2c3   :  { %7659 = vst [vmem:[#allocation57_spill] sm:$0xff] %v4568_v3  ;;  %v4576_v48 = vpop.permute.xlu1 %1469  ;;  %v4590_v35 = vadd.f32 %v625_v37, %v4311_v25  ;;  %v555_v24 = vmul.f32 %v3602_v10, %v510_v2  ;;  %v556_v61 = vmul.f32 %v4325_v38, %v502_v14  ;;  %v494_v22 = vsel %vm487_vm1, %v7658_v46, %v7662_v53  ;;  %v7670_v46 = vld [vmem:[#allocation84_spill] sm:$0xff]  ;;  %v7671_v14 = vld [vmem:[#allocation91_spill] sm:$0xff] }
 0x2c4   :  { %7660 = vst [vmem:[#allocation66_spill] sm:$0xff] %v4571_v17  ;;  %v4587_v45 = vpop.permute.xlu2 %1495  ;;  %v1474_v52 = vpop.permute.xlu0 %1473  ;;  %v757_v33 = vsel %vm738_vm2, %v7666_v13, %v7665_v51  ;;  %v629_v59 = vmul.f32 %v3333_v42, %v549_v58  ;;  %v632_v27 = vmul.f32 %v7669_v21, %v552_v11  ;;  %v554_v2 = vmul.f32 %v3649_v60, %v518_v31  ;;  %v7672_v42 = vld [vmem:[#allocation89_spill] sm:$0xff]  ;;  %v4631_v11 = vld [vmem:[%s7087_s7 + $0x14] sm:$0xf]  ;;  %v7707_v17 = vld [vmem:[#allocation62_spill] sm:$0xff] }
 0x2c5   :  { %7661 = vst [vmem:[#allocation65_spill] sm:$0xff] %v4579_v28  ;;  %v4606_v25 = vsel %vm1497_vm5, %v1474_v52, %v4497_v8  ;;  %v4611_v37 = vsel %vm1497_vm5, %v4402_v57, %v1474_v52  ;;  %v503_v53 = vsel %vm487_vm1, %v7671_v14, %v7670_v46  ;;  %v511_v58 = vsel %vm487_vm1, %v7672_v42, %v7671_v14 }
 0x2c6   :  { %7663 = vst [vmem:[#allocation68_spill] sm:$0xff] %v4587_v45  ;;  %v4624_v62 = vadd.f32 %v628_v63, %v4317_v29  ;;  %v633_v52 = vmul.f32 %v7669_v21, %v553_v19  ;;  %v557_v20 = vmul.f32 %v4347_v44, %v494_v22  ;;  %v1508_v31 = vsel %vm1497_vm5, %v4168_v47, %v4576_v48  ;;  %v7675_v29 = vld [vmem:[#allocation95_spill] sm:$0xff] }
 0x2c7   :  { %7664 = vst [vmem:[#allocation27_spill] sm:$0xff] %v4590_v35  ;;  %v635_v39 = vmul.f32 %v7674_v32, %v555_v24  ;;  %v636_v14 = vmul.f32 %v7674_v32, %v556_v61  ;;  %v519_v63 = vsel %vm487_vm1, %v7675_v29, %v7672_v42  ;;  %v4644_v19 = vperm.slane %v4631_v11, 1  ;;  %v7676_v22 = vld [vmem:[#allocation111_spill] sm:$0xff]  ;;  %v7700_v35 = vld [vmem:[#allocation93_spill] sm:$0xff] }
 0x2c8   :  { %7667 = vst [vmem:[#allocation70_spill] sm:$0xff] %v4606_v25  ;;  %v4649_v21 = vmul.f32 %v7676_v22, %v757_v33  ;;  %v4652_v47 = vadd.f32 %v629_v59, %v4320_v4  ;;  %v559_v24 = vmul.f32 %v3602_v10, %v511_v58  ;;  %v560_v61 = vmul.f32 %v4325_v38, %v503_v53  ;;  %v7679_v4 = vld [vmem:[#allocation15_spill] sm:$0xff]  ;;  %v7682_v53 = vld [vmem:[#allocation40_spill] sm:$0xff] }
 0x2c9   :  { %7668 = vst [vmem:[#allocation51_spill] sm:$0xff] %v4611_v37  ;;  %1732 = vrot.lane.b32.xlu1 %v3344_v49, %s2936_s17  ;;  %v4659_v42 = vadd.f32 %v632_v27, %v4350_v56  ;;  %v634_v5 = vmul.f32 %v7674_v32, %v554_v2  ;;  %v1550_v33 = vmul.f32 %v4644_v19, %v1508_v31  ;;  %v7724_v25 = vld [vmem:[#allocation96_spill] sm:$0xff]  ;;  %v7733_v37 = vld [vmem:[#allocation117_spill] sm:$0xff] }
 0x2ca   :  { %7673 = vst [vmem:[#allocation72_spill] sm:$0xff] %v4624_v62  ;;  %1740 = vrot.lane.b32.xlu2 %v3228_v34, %s2936_s17  ;;  %v7678_v62 = vld [vmem:[#allocation110_spill] sm:$0xff]  ;;  %1736 = vrot.lane.b32.xlu0 %v7679_v4, %s2936_s17  ;;  %v637_v10 = vmul.f32 %v7674_v32, %v557_v20  ;;  %v495_v38 = vsel %vm487_vm1, %v7670_v46, %v7675_v29  ;;  %v7684_v32 = vld [vmem:[#allocation49_spill] sm:$0xff]  ;;  %v7687_v29 = vld [vmem:[#allocation56_spill] sm:$0xff] }
 0x2cb   :  { %7677 = vst [vmem:[#allocation67_spill] sm:$0xff] %v4652_v47  ;;  %v4663_v49 = vperm.slane %v7678_v62, 2  ;;  %v4668_v59 = vpop.permute.xlu1 %1475  ;;  %v558_v56 = vmul.f32 %v3649_v60, %v519_v63  ;;  %v7681_v62 = vld [vmem:[#allocation214_spill] sm:$0xff]  ;;  %v4683_v58 = vadd.f32 %v633_v52, %v7682_v53  ;;  %v4686_v31 = vadd.f32 %v635_v39, %v4380_v12  ;;  %v7690_v12 = vld [vmem:[#allocation35_spill] sm:$0xff] }
 0x2cc   :  { %v4676_v27 = vpop.permute.xlu2 %1594  ;;  %v1511_v2 = vsel %vm1497_vm5, %v7681_v62, %v4668_v59  ;;  %v4689_v20 = vadd.f32 %v636_v14, %v7684_v32  ;;  %v1480_v60 = vpop.permute.xlu0 %1479  ;;  %v639_v63 = vmul.f32 %v7687_v29, %v559_v24  ;;  %v640_v34 = vmul.f32 %v7687_v29, %v560_v61  ;;  %v7692_v14 = vld [vmem:[#allocation92_spill] sm:$0xff]  ;;  %v7694_v53 = vld [vmem:[#allocation94_spill] sm:$0xff]  ;;  %v7695_v61 = vld [vmem:[#allocation59_spill] sm:$0xff] }
 0x2cd   :  { %7680 = vst [vmem:[#allocation74_spill] sm:$0xff] %v4676_v27  ;;  %v4692_v46 = vmul.f32 %v4676_v27, %v1550_v33  ;;  %v4699_v4 = vsel %vm1497_vm5, %v1480_v60, %v4587_v45  ;;  %v4704_v39 = vsel %vm1497_vm5, %v4489_v0, %v1480_v60  ;;  %v4707_v52 = vadd.f32 %v634_v5, %v7690_v12  ;;  %v7693_v33 = vld [vmem:[#allocation53_spill] sm:$0xff]  ;;  %v7698_v60 = vld [vmem:[#allocation90_spill] sm:$0xff]  ;;  %v7719_v45 = vld [vmem:[#allocation215_spill] sm:$0xff] }
 0x2ce   :  { %7683 = vst [vmem:[#allocation75_spill] sm:$0xff] %v4686_v31  ;;  %v756_v24 = vsel %vm738_vm2, %v7693_v33, %v7692_v14  ;;  %v755_v32 = vsel %vm738_vm2, %v7695_v61, %v7694_v53  ;;  %v747_v5 = vsel %vm738_vm2, %v7694_v53, %v7698_v60  ;;  %v638_v12 = vmul.f32 %v7687_v29, %v558_v56 }
 0x2cf   :  { %7685 = vst [vmem:[#allocation77_spill] sm:$0xff] %v4689_v20  ;;  %v7696_v20 = vld [vmem:[#allocation60_spill] sm:$0xff]  ;;  %v4744_v53 = vperm.slane %v4631_v11, 0  ;;  %v4752_v3 = vadd.f32 %v640_v34, %v7707_v17  ;;  %v4758_v26 = vmul.f32 %v7676_v22, %v755_v32  ;;  %v4763_v18 = vmul.f32 %v4663_v49, %v747_v5  ;;  %v7710_v34 = vld [vmem:[#allocation31_spill] sm:$0xff] }
 0x2d0   :  { %7686 = vst [vmem:[#allocation46_spill] sm:$0xff] %v4692_v46  ;;  %v561_v46 = vmul.f32 %v4347_v44, %v495_v38  ;;  %v4719_v31 = vadd.f32 %v637_v10, %v7696_v20  ;;  %v7702_v10 = vld [vmem:[#allocation73_spill] sm:$0xff] }
 0x2d1   :  { %7688 = vst [vmem:[#allocation71_spill] sm:$0xff] %v4699_v4  ;;  %v7701_v4 = vld [vmem:[#allocation97_spill] sm:$0xff] }
 0x2d2   :  { %7689 = vst [vmem:[#allocation39_spill] sm:$0xff] %v4704_v39  ;;  %v750_v44 = vsel %vm738_vm2, %v7701_v4, %v7700_v35  ;;  %v758_v38 = vsel %vm738_vm2, %v7702_v10, %v7701_v4  ;;  %v2901_v20 = vld [vmem:[%s7087_s7 + $0x4] sm:$0xf]  ;;  %v4755_v4 = vmul.f32 %v7676_v22, %v756_v24  ;;  %1742 = vrot.lane.b32.xlu0 %v7710_v34, %s2936_s17  ;;  %v7711_v24 = vld [vmem:[#allocation63_spill] sm:$0xff] }
 0x2d3   :  { %7691 = vst [vmem:[#allocation82_spill] sm:$0xff] %v4707_v52  ;;  %v7699_v52 = vld [vmem:[#allocation218_spill] sm:$0xff]  ;;  %v4741_v56 = vperm.slane %v2901_v20, 3  ;;  %v7709_v20 = vld [vmem:[#allocation48_spill] sm:$0xff]  ;;  %v4770_v17 = vpop.permute.xlu1 %1481  ;;  %v4773_v32 = vadd.f32 %v638_v12, %v7711_v24  ;;  %v4779_v5 = vmul.f32 %v4663_v49, %v750_v44  ;;  %v7716_v24 = vld [vmem:[#allocation99_spill] sm:$0xff] }
 0x2d4   :  { %7697 = vst [vmem:[#allocation80_spill] sm:$0xff] %v4719_v31  ;;  %v1519_v47 = vsel %vm1497_vm5, %v7699_v52, %v7681_v62  ;;  %v7704_v62 = vld [vmem:[#allocation18_spill] sm:$0xff]  ;;  %v7705_v31 = vld [vmem:[#allocation16_spill] sm:$0xff]  ;;  %1746 = vrot.lane.b32.xlu2 %v7709_v20, %s2936_s17  ;;  %v4781_v20 = vpop.permute.xlu2 %1609  ;;  %v1486_v44 = vpop.permute.xlu0 %1485  ;;  %v764_v34 = vsel %vm738_vm2, %v7716_v24, %v7693_v33 }
 0x2d5   :  { %7703 = vst [vmem:[#allocation76_spill] sm:$0xff] %v4744_v53  ;;  %1738 = vrot.lane.b32.xlu1 %v7704_v62, %s2936_s17  ;;  %v4749_v39 = vadd.f32 %v639_v63, %v7705_v31  ;;  %v641_v62 = vmul.f32 %v7687_v29, %v561_v46  ;;  %v1561_v31 = vmul.f32 %v4744_v53, %v1519_v47  ;;  %v7715_v47 = vld [vmem:[#allocation217_spill] sm:$0xff]  ;;  %v4790_v46 = vperm.slane %v4631_v11, 3 }
 0x2d6   :  { %7708 = vst [vmem:[#allocation85_spill] sm:$0xff] %v4752_v3  ;;  %v1562_v63 = vmul.f32 %v4644_v19, %v1511_v2  ;;  %v4776_v3 = vmul.f32 %v7676_v22, %v758_v38  ;;  %v4787_v2 = vsel %vm1497_vm5, %v7715_v47, %v4770_v17  ;;  %v4793_v29 = vperm.slane %v4631_v11, 2 }
 0x2d7   :  { %7706 = vst [vmem:[#allocation78_spill] sm:$0xff] %v4749_v39  ;;  %v1642_v12 = vmul.f32 %v4781_v20, %v1561_v31  ;;  %v7718_v39 = vld [vmem:[#allocation83_spill] sm:$0xff]  ;;  %v1500_v11 = vsel %vm1497_vm5, %v4576_v48, %v1486_v44  ;;  %v1524_v31 = vsel %vm1497_vm5, %v1486_v44, %v7719_v45  ;;  %v7725_v44 = vld [vmem:[#allocation101_spill] sm:$0xff]  ;;  %v4854_v53 = vmul.f32 %v7733_v37, %v764_v34 }
 0x2d8   :  { %7712 = vst [vmem:[#allocation86_spill] sm:$0xff] %v4773_v32  ;;  %v1643_v38 = vmul.f32 %v4781_v20, %v1562_v63  ;;  %v7717_v32 = vld [vmem:[#allocation100_spill] sm:$0xff]  ;;  %v7720_v63 = vld [vmem:[#allocation211_spill] sm:$0xff]  ;;  %v1551_v33 = vmul.f32 %v4793_v29, %v1500_v11  ;;  %v7726_v45 = vld [vmem:[#allocation81_spill] sm:$0xff] }
 0x2d9   :  { %7713 = vst [vmem:[#allocation88_spill] sm:$0xff] %v4776_v3  ;;  %v761_v28 = vsel %vm738_vm2, %v7718_v39, %v7717_v32  ;;  %v4812_v0 = vadd.f32 %v1642_v12, %v7720_v63  ;;  %v1552_v3 = vmul.f32 %v4790_v46, %v1524_v31  ;;  %v753_v48 = vsel %vm738_vm2, %v7717_v32, %v7724_v25  ;;  %v7729_v63 = vld [vmem:[#allocation104_spill] sm:$0xff] }
 0x2da   :  { %7714 = vst [vmem:[#allocation79_spill] sm:$0xff] %v4779_v5  ;;  %v4815_v5 = vadd.f32 %v1643_v38, %v7722_v55  ;;  %v762_v12 = vsel %vm738_vm2, %v7726_v45, %v7725_v44  ;;  %v7727_v55 = vld [vmem:[#allocation103_spill] sm:$0xff]  ;;  %v4839_v31 = vadd.f32 %v641_v62, %v4426_v40  ;;  %v749_v32 = vsel %vm738_vm2, %v7665_v51, %v7729_v63  ;;  %v7736_v62 = vld [vmem:[#allocation106_spill] sm:$0xff] }
 0x2db   :  { %7721 = vst [vmem:[#allocation69_spill] sm:$0xff] %v4812_v0  ;;  %v740_v38 = vsel %vm738_vm2, %v7727_v55, %v7716_v24  ;;  %v748_v11 = vsel %vm738_vm2, %v7692_v14, %v7727_v55  ;;  %v4849_v0 = vmul.f32 %v4676_v27, %v1552_v3  ;;  %v7732_v24 = vld [vmem:[#allocation37_spill] sm:$0xff]  ;;  %v4857_v40 = vmul.f32 %v7676_v22, %v761_v28 }
 0x2dc   :  { %7723 = vst [vmem:[#allocation55_spill] sm:$0xff] %v4815_v5  ;;  %v4846_v5 = vmul.f32 %v4676_v27, %v1551_v33  ;;  %v7735_v14 = vld [vmem:[#allocation105_spill] sm:$0xff]  ;;  %v7737_v33 = vld [vmem:[#allocation98_spill] sm:$0xff]  ;;  %1842 = vperm.xlu2 %2868, %v2812_v16   ;;  %v4868_v55 = vmul.f32 %v4663_v49, %v753_v48  ;;  %v4871_v34 = vmul.f32 %v7676_v22, %v762_v12  ;;  %v4892_v12 = vpop.permute.xlu2 %1686 }
 0x2dd   :  { %7728 = vst [vmem:[#allocation84_spill] sm:$0xff] %v4839_v31  ;;  %1744 = vrot.lane.b32.xlu1 %v7732_v24, %s2936_s17  ;;  %v770_v51 = vsel %vm738_vm2, %v7735_v14, %v7726_v45  ;;  %v751_v3 = vsel %vm738_vm2, %v7737_v33, %v7736_v62  ;;  %v4874_v28 = vmul.f32 %v4663_v49, %v748_v11  ;;  %v7740_v45 = vld [vmem:[#allocation58_spill] sm:$0xff]  ;;  %v7749_v31 = vld [vmem:[#allocation108_spill] sm:$0xff] }
 0x2de   :  { %7730 = vst [vmem:[#allocation91_spill] sm:$0xff] %v4846_v5  ;;  %v4877_v24 = vmul.f32 %v4741_v56, %v740_v38  ;;  %1748 = vrot.lane.b32.xlu0 %v7740_v45, %s2936_s17  ;;  %v792_v33 = vmul.f32 %v4663_v49, %v749_v32  ;;  %v7741_v16 = vld [vmem:[#allocation114_spill] sm:$0xff]  ;;  %v7743_v38 = vld [vmem:[#allocation7_spill] sm:$0xff]  ;;  %v4901_v32 = vmul.f32 %v7733_v37, %v770_v51 }
 0x2df   :  { %7731 = vst [vmem:[#allocation89_spill] sm:$0xff] %v4849_v0  ;;  %v4881_v0 = vpop.permute.xlu1 %1487  ;;  %v741_v48 = vsel %vm738_vm2, %v7729_v63, %v7741_v16  ;;  %v765_v22 = vsel %vm738_vm2, %v7741_v16, %v7666_v13  ;;  %v7745_v45 = vld [vmem:[#allocation102_spill] sm:$0xff]  ;;  %v4908_v5 = vmul.f32 %v4663_v49, %v751_v3  ;;  %v7747_v13 = vld [vmem:[#allocation107_spill] sm:$0xff]  ;;  %v2811_v3 = vld [vmem:[%s7083_s3 + $0x180] sm:$0xff] }
 0x2e0   :  { %7734 = vst [vmem:[#allocation44_spill] sm:$0xff] %v4857_v40  ;;  %v4898_v11 = vsel %vm1497_vm5, %v7743_v38, %v4881_v0  ;;  %v743_v63 = vsel %vm738_vm2, %v7736_v62, %v7745_v45  ;;  %v7748_v16 = vld [vmem:[#allocation87_spill] sm:$0xff]  ;;  %v873_v51 = vmul.f32 %v7749_v31, %v792_v33  ;;  %v790_v45 = vmul.f32 %v7733_v37, %v765_v22 }
 0x2e1   :  { %7738 = vst [vmem:[#allocation95_spill] sm:$0xff] %v4868_v55  ;;  %v752_v27 = vsel %vm738_vm2, %v7748_v16, %v7747_v13  ;;  %v793_v16 = vmul.f32 %v4741_v56, %v741_v48  ;;  %v4934_v55 = vmul.f32 %v4741_v56, %v743_v63 }
 0x2e2   :  { %7739 = vst [vmem:[#allocation111_spill] sm:$0xff] %v4871_v34  ;;  %v872_v34 = vmul.f32 %v7749_v31, %v4649_v21 }
 0x2e3   :  { %7742 = vst [vmem:[#allocation110_spill] sm:$0xff] %v4892_v12  ;;  %v1492_v12 = vpop.permute.xlu0 %1491 }
 0x2e4   :  { %7744 = vst [vmem:[#allocation214_spill] sm:$0xff] %v4901_v32  ;;  %v1503_v32 = vsel %vm1497_vm5, %v4668_v59, %v1492_v12  ;;  %v1527_v62 = vsel %vm1497_vm5, %v1492_v12, %v7699_v52  ;;  %v2815_v59 = vld [vmem:[%s7083_s3 + $0x1a0] sm:$0xff]  ;;  %v804_v52 = vmul.f32 %v4663_v49, %v752_v27 }
 0x2e5   :  { %7746 = vst [vmem:[#allocation40_spill] sm:$0xff] %v4908_v5  ;;  %v1563_v21 = vmul.f32 %v4793_v29, %v1503_v32  ;;  %v1564_v33 = vmul.f32 %v4790_v46, %v1527_v62  ;;  %v7751_v12 = vld [vmem:[#allocation109_spill] sm:$0xff]  ;;  %v2813_v32 = vld [vmem:[%s7083_s3 + $0x190] sm:$0xff]  ;;  %1837 = vperm.xlu1 %2867, %v2811_v3   ;;  %v7756_v5 = vld [vmem:[#allocation112_spill] sm:$0xff]  ;;  %1857 = vperm.xlu2 %2868, %v2815_v59  }
 0x2e6   :  { %7750 = vst [vmem:[#allocation49_spill] sm:$0xff] %v4934_v55  ;;  %v746_v22 = vsel %vm738_vm2, %v7751_v12, %v7735_v14  ;;  %v754_v48 = vsel %vm738_vm2, %v7725_v44, %v7751_v12  ;;  %v7752_v62 = vld [vmem:[#allocation11_spill] sm:$0xff]  ;;  %v7753_v27 = vld [vmem:[#allocation213_spill] sm:$0xff]  ;;  %v4963_v44 = vadd.f32 %v872_v34, %v4541_v36  ;;  %v4966_v12 = vadd.f32 %v873_v51, %v4551_v7 }
 0x2e7   :  { %v1506_v63 = vsel %vm1497_vm5, %v7752_v62, %v7715_v47  ;;  %v1522_v40 = vsel %vm1497_vm5, %v4770_v17, %v7753_v27  ;;  %v4957_v14 = vmul.f32 %v4781_v20, %v1563_v21  ;;  %v4960_v55 = vmul.f32 %v4781_v20, %v1564_v33  ;;  %v7757_v62 = vld [vmem:[#allocation118_spill] sm:$0xff]  ;;  %v7758_v20 = vld [vmem:[#allocation113_spill] sm:$0xff]  ;;  %1847 = vperm.xlu0 %2866, %v2813_v32   ;;  %v4983_v51 = vpop.permute.xlu1 %1493  ;;  %v4989_v33 = vpop.permute.xlu2 %1692  ;;  %v7760_v59 = vld [vmem:[#allocation23_spill] sm:$0xff] }
 0x2e8   :  { %v739_v47 = vsel %vm738_vm2, %v7698_v60, %v7756_v5  ;;  %v744_v17 = vsel %vm738_vm2, %v7747_v13, %v7757_v62  ;;  %v885_v21 = vmul.f32 %v7758_v20, %v804_v52  ;;  %v763_v36 = vsel %vm738_vm2, %v7756_v5, %v7695_v61  ;;  %7759 = vst [vmem:[#allocation92_spill] sm:$0xff] %v4989_v33  ;;  %v7855_v27 = vld [vmem:[#allocation80_spill] sm:$0xff] }
 0x2e9   :  { %7754 = vst [vmem:[#allocation56_spill] sm:$0xff] %v4957_v14  ;;  %v871_v7 = vmul.f32 %v7749_v31, %v790_v45  ;;  %v874_v34 = vmul.f32 %v7749_v31, %v793_v16  ;;  %v1542_v60 = vmul.f32 %v4644_v19, %v1506_v63  ;;  %v1543_v13 = vmul.f32 %v4793_v29, %v4787_v2  ;;  %v7761_v45 = vld [vmem:[#allocation115_spill] sm:$0xff]  ;;  %v7766_v63 = vld [vmem:[#allocation196_spill] sm:$0xff] }
 0x2ea   :  { %7755 = vst [vmem:[#allocation35_spill] sm:$0xff] %v4960_v55  ;;  %v1544_v3 = vmul.f32 %v4790_v46, %v1522_v40  ;;  %v4995_v61 = vsel %vm1497_vm5, %v7760_v59, %v4983_v51  ;;  %v4998_v5 = vmul.f32 %v4663_v49, %v754_v48  ;;  %v5001_v31 = vmul.f32 %v4741_v56, %v746_v22  ;;  %v7769_v14 = vld [vmem:[#allocation119_spill] sm:$0xff] }
 0x2eb   :  { %v766_v2 = vsel %vm738_vm2, %v7761_v45, %v7702_v10  ;;  %v805_v40 = vmul.f32 %v4741_v56, %v744_v17  ;;  %v5008_v16 = vpop.permute.xlu0 %1584  ;;  %v742_v52 = vsel %vm738_vm2, %v7700_v35, %v7761_v45  ;;  %v2814_v10 = vld [vmem:[%s7083_s3 + $0x198] sm:$0xff]  ;;  %v782_v32 = vmul.f32 %v7733_v37, %v763_v36  ;;  %v2816_v45 = vld [vmem:[%s7083_s3 + $0x1a8] sm:$0xff] }
 0x2ec   :  { %7762 = vst [vmem:[#allocation53_spill] sm:$0xff] %v5008_v16  ;;  %v5015_v49 = vmul.f32 %v5008_v16, %v1542_v60  ;;  %v5018_v22 = vmul.f32 %v5008_v16, %v1543_v13  ;;  %v5021_v48 = vmul.f32 %v5008_v16, %v1544_v3  ;;  %v785_v62 = vmul.f32 %v4741_v56, %v739_v47  ;;  %v7767_v17 = vld [vmem:[#allocation20_spill] sm:$0xff] }
 0x2ed   :  { %v1523_v35 = vsel %vm1497_vm5, %v4417_v6, %v7766_v63  ;;  %v1507_v60 = vsel %vm1497_vm5, %v7767_v17, %v4506_v9  ;;  %v2818_v13 = vld [vmem:[%s7083_s3 + $0x1b8] sm:$0xff]  ;;  %v5040_v3 = vadd.f32 %v885_v21, %v4659_v42  ;;  %v5043_v36 = vadd.f32 %v871_v7, %v4492_v41  ;;  %v7770_v42 = vld [vmem:[#allocation34_spill] sm:$0xff]  ;;  %1852 = vperm.xlu1 %2867, %v2814_v10   ;;  %v7876_v63 = vld [vmem:[#allocation123_spill] sm:$0xff] }
 0x2ee   :  { %7763 = vst [vmem:[#allocation94_spill] sm:$0xff] %v5015_v49  ;;  %v5046_v47 = vadd.f32 %v874_v34, %v4565_v15  ;;  %v794_v6 = vmul.f32 %v7733_v37, %v766_v2  ;;  %v5053_v9 = vmul.f32 %v4741_v56, %v742_v52  ;;  %v886_v55 = vmul.f32 %v7758_v20, %v805_v40  ;;  %v7771_v2 = vld [vmem:[#allocation216_spill] sm:$0xff]  ;;  %v7877_v17 = vld [vmem:[#allocation143_spill] sm:$0xff] }
 0x2ef   :  { %7764 = vst [vmem:[#allocation59_spill] sm:$0xff] %v5018_v22  ;;  %v745_v41 = vsel %vm738_vm2, %v7724_v25, %v7769_v14  ;;  %v1509_v15 = vsel %vm1497_vm5, %v7770_v42, %v7743_v38  ;;  %v1548_v21 = vmul.f32 %v4790_v46, %v1523_v35  ;;  %v1546_v7 = vmul.f32 %v4644_v19, %v1507_v60  ;;  %v7772_v38 = vld [vmem:[#allocation121_spill] sm:$0xff]  ;;  %v7845_v42 = vld [vmem:[#allocation130_spill] sm:$0xff] }
 0x2f0   :  { %7765 = vst [vmem:[#allocation60_spill] sm:$0xff] %v5021_v48  ;;  %v1547_v34 = vmul.f32 %v4793_v29, %v4519_v23  ;;  %v1525_v20 = vsel %vm1497_vm5, %v4881_v0, %v7771_v2  ;;  %1872 = vperm.xlu2 %2868, %v2818_v13   ;;  %v769_v25 = vsel %vm738_vm2, %v7769_v14, %v7718_v39  ;;  %v5081_v23 = vpop.permute.xlu1 %1589  ;;  %v5084_v0 = vpop.permute.xlu2 %1698  ;;  %v7844_v2 = vld [vmem:[#allocation126_spill] sm:$0xff] }
 0x2f1   :  { %7768 = vst [vmem:[#allocation90_spill] sm:$0xff] %v5040_v3  ;;  %v863_v40 = vmul.f32 %v7772_v38, %v782_v32  ;;  %v864_v52 = vmul.f32 %v7772_v38, %v4758_v26  ;;  %v865_v10 = vmul.f32 %v7772_v38, %v4763_v18  ;;  %1862 = vperm.xlu0 %2866, %v2816_v45  }
 0x2f2   :  { %7773 = vst [vmem:[#allocation218_spill] sm:$0xff] %v5081_v23  ;;  %v866_v35 = vmul.f32 %v7772_v38, %v785_v62  ;;  %v5087_v60 = vmul.f32 %v5081_v23, %v1546_v7  ;;  %v5090_v39 = vmul.f32 %v5081_v23, %v1547_v34  ;;  %v5093_v14 = vmul.f32 %v5081_v23, %v1548_v21  ;;  %v7780_v21 = vld [vmem:[#allocation122_spill] sm:$0xff] }
 0x2f3   :  { %7774 = vst [vmem:[#allocation93_spill] sm:$0xff] %v5084_v0  ;;  %v5096_v26 = vadd.f32 %v886_v55, %v4683_v58  ;;  %v1554_v18 = vmul.f32 %v4644_v19, %v1509_v15  ;;  %v1555_v32 = vmul.f32 %v4793_v29, %v4898_v11  ;;  %v1556_v62 = vmul.f32 %v4790_v46, %v1525_v20  ;;  %v5102_v13 = vpop.permute.xlu0 %1599  ;;  %v7781_v58 = vld [vmem:[#allocation199_spill] sm:$0xff]  ;;  %v7869_v23 = vld [vmem:[#allocation42_spill] sm:$0xff] }
 0x2f4   :  { %7775 = vst [vmem:[#allocation97_spill] sm:$0xff] %v5087_v60  ;;  %v806_v45 = vmul.f32 %v7733_v37, %v769_v25  ;;  %v5106_v7 = vmul.f32 %v4741_v56, %v745_v41  ;;  %v868_v34 = vmul.f32 %v7780_v21, %v4755_v4  ;;  %v1518_v55 = vsel %vm1497_vm5, %v7781_v58, %v4402_v57  ;;  %v2817_v11 = vld [vmem:[%s7083_s3 + $0x1b0] sm:$0xff] }
 0x2f5   :  { %7776 = vst [vmem:[#allocation73_spill] sm:$0xff] %v5090_v39  ;;  %v1526_v37 = vsel %vm1497_vm5, %v4497_v8, %v7781_v58  ;;  %v5122_v56 = vmul.f32 %v5102_v13, %v1554_v18  ;;  %v5125_v41 = vmul.f32 %v5102_v13, %v1555_v32  ;;  %v5128_v4 = vmul.f32 %v5102_v13, %v1556_v62  ;;  %v7785_v18 = vld [vmem:[#allocation76_spill] sm:$0xff]  ;;  %v7791_v62 = vld [vmem:[#allocation61_spill] sm:$0xff] }
 0x2f6   :  { %7777 = vst [vmem:[#allocation16_spill] sm:$0xff] %v5093_v14  ;;  %v5131_v57 = vadd.f32 %v863_v40, %v4463_v54  ;;  %v5134_v15 = vadd.f32 %v864_v52, %v4431_v50  ;;  %v5137_v20 = vadd.f32 %v865_v10, %v4460_v1  ;;  %v5140_v8 = vadd.f32 %v866_v35, %v4482_v43  ;;  %v7786_v54 = vld [vmem:[#allocation41_spill] sm:$0xff]  ;;  %v7787_v40 = vld [vmem:[#allocation51_spill] sm:$0xff]  ;;  %v7788_v52 = vld [vmem:[#allocation70_spill] sm:$0xff] }
 0x2f7   :  { %7778 = vst [vmem:[#allocation62_spill] sm:$0xff] %v5096_v26  ;;  %v867_v25 = vmul.f32 %v7780_v21, %v4854_v53  ;;  %v869_v38 = vmul.f32 %v7780_v21, %v4874_v28  ;;  %v1557_v32 = vmul.f32 %v7785_v18, %v1518_v55  ;;  %v1512_v50 = vsel %vm1497_vm5, %v7786_v54, %v7760_v59  ;;  %v7789_v53 = vld [vmem:[#allocation219_spill] sm:$0xff]  ;;  %v7790_v35 = vld [vmem:[#allocation14_spill] sm:$0xff]  ;;  %v7792_v55 = vld [vmem:[#allocation124_spill] sm:$0xff] }
 0x2f8   :  { %7779 = vst [vmem:[#allocation63_spill] sm:$0xff] %v5102_v13  ;;  %1867 = vperm.xlu1 %2867, %v2817_v11   ;;  %v1560_v1 = vmul.f32 %v4790_v46, %v1526_v37  ;;  %v1558_v43 = vmul.f32 %v4644_v19, %v7787_v40  ;;  %v1559_v10 = vmul.f32 %v4793_v29, %v7788_v52  ;;  %v7793_v37 = vld [vmem:[#allocation88_spill] sm:$0xff]  ;;  %v7794_v52 = vld [vmem:[#allocation5_spill] sm:$0xff] }
 0x2f9   :  { %7782 = vst [vmem:[#allocation217_spill] sm:$0xff] %v5122_v56  ;;  %v1528_v28 = vsel %vm1497_vm5, %v4983_v51, %v7789_v53  ;;  %1943 = vrot.lane.b32.xlu2 %v7790_v35, %s2937_s14  ;;  %v870_v59 = vmul.f32 %v7780_v21, %v4877_v24  ;;  %v5165_v58 = vadd.f32 %v868_v34, %v7791_v62  ;;  %v5172_v51 = vpop.permute.xlu2 %1704  ;;  %v7798_v24 = vld [vmem:[#allocation79_spill] sm:$0xff]  ;;  %v7814_v53 = vld [vmem:[#allocation32_spill] sm:$0xff]  ;;  %v7861_v39 = vld [vmem:[#allocation25_spill] sm:$0xff] }
 0x2fa   :  { %7783 = vst [vmem:[#allocation99_spill] sm:$0xff] %v5125_v41  ;;  %v875_v11 = vmul.f32 %v7792_v55, %v794_v6  ;;  %v876_v40 = vmul.f32 %v7792_v55, %v7793_v37  ;;  %1939 = vrot.lane.b32.xlu0 %v7794_v52, %s2937_s14  ;;  %v877_v21 = vmul.f32 %v7792_v55, %v7798_v24  ;;  %v7800_v52 = vld [vmem:[#allocation64_spill] sm:$0xff]  ;;  %v7805_v24 = vld [vmem:[#allocation207_spill] sm:$0xff] }
 0x2fb   :  { %7784 = vst [vmem:[#allocation100_spill] sm:$0xff] %v5128_v4  ;;  %v1605_v4 = vpop.permute.xlu1 %1604  ;;  %v1566_v6 = vmul.f32 %v4644_v19, %v1512_v50  ;;  %v1567_v34 = vmul.f32 %v4793_v29, %v4995_v61  ;;  %v1568_v62 = vmul.f32 %v4790_v46, %v1528_v28  ;;  %v5184_v37 = vpop.permute.xlu0 %1614  ;;  %v5187_v22 = vadd.f32 %v869_v38, %v7800_v52  ;;  %v7807_v61 = vld [vmem:[#allocation68_spill] sm:$0xff] }
 0x2fc   :  { %7795 = vst [vmem:[#allocation83_spill] sm:$0xff] %v5172_v51  ;;  %v1638_v41 = vmul.f32 %v1605_v4, %v1557_v32  ;;  %v1639_v56 = vmul.f32 %v1605_v4, %v1558_v43  ;;  %v5174_v13 = vmul.f32 %v1605_v4, %v1559_v10  ;;  %v5176_v48 = vmul.f32 %v1605_v4, %v1560_v1  ;;  %v7801_v32 = vld [vmem:[#allocation29_spill] sm:$0xff]  ;;  %v7802_v43 = vld [vmem:[#allocation204_spill] sm:$0xff]  ;;  %v7803_v1 = vld [vmem:[#allocation206_spill] sm:$0xff] }
 0x2fd   :  { %7799 = vst [vmem:[#allocation96_spill] sm:$0xff] %v5184_v37  ;;  %v1521_v4 = vsel %vm1497_vm5, %v7802_v43, %v7801_v32  ;;  %v1529_v28 = vsel %vm1497_vm5, %v7807_v61, %v7802_v43  ;;  %v5204_v49 = vmul.f32 %v5184_v37, %v1566_v6  ;;  %v5207_v38 = vmul.f32 %v5184_v37, %v1567_v34  ;;  %v7811_v32 = vld [vmem:[#allocation65_spill] sm:$0xff]  ;;  %v7816_v34 = vld [vmem:[#allocation66_spill] sm:$0xff] }
 0x2fe   :  { %7796 = vst [vmem:[#allocation211_spill] sm:$0xff] %v5174_v13  ;;  %v5194_v10 = vadd.f32 %v1638_v41, %v7803_v1  ;;  %v5197_v50 = vadd.f32 %v1639_v56, %v7805_v24  ;;  %v5210_v52 = vmul.f32 %v5184_v37, %v1568_v62  ;;  %v878_v41 = vmul.f32 %v7792_v55, %v5053_v9  ;;  %v7813_v1 = vld [vmem:[#allocation45_spill] sm:$0xff]  ;;  %v7818_v62 = vld [vmem:[#allocation40_spill] sm:$0xff]  ;;  %v7821_v55 = vld [vmem:[#allocation10_spill] sm:$0xff] }
 0x2ff   :  { %7797 = vst [vmem:[#allocation212_spill] sm:$0xff] %v5176_v48  ;;  %v5215_v56 = vadd.f32 %v875_v11, %v7811_v32  ;;  %v5218_v24 = vadd.f32 %v867_v25, %v7813_v1  ;;  %v5221_v43 = vadd.f32 %v870_v59, %v7814_v53  ;;  %v7815_v6 = vld [vmem:[#allocation57_spill] sm:$0xff]  ;;  %v1569_v25 = vmul.f32 %v7785_v18, %v1521_v4  ;;  %v7822_v59 = vld [vmem:[#allocation39_spill] sm:$0xff]  ;;  %v7854_v48 = vld [vmem:[#allocation116_spill] sm:$0xff] }
 0x300   :  { %7804 = vst [vmem:[#allocation101_spill] sm:$0xff] %v5194_v10  ;;  %v5224_v61 = vadd.f32 %v876_v40, %v7815_v6  ;;  %v7820_v37 = vld [vmem:[#allocation49_spill] sm:$0xff]  ;;  %1941 = vrot.lane.b32.xlu1 %v7821_v55, %s2937_s14  ;;  %v1572_v53 = vmul.f32 %v4790_v46, %v1529_v28  ;;  %v1570_v11 = vmul.f32 %v4644_v19, %v7822_v59  ;;  %v7823_v40 = vld [vmem:[#allocation71_spill] sm:$0xff]  ;;  %v7837_v55 = vld [vmem:[#allocation128_spill] sm:$0xff] }
 0x301   :  { %7806 = vst [vmem:[#allocation81_spill] sm:$0xff] %v5197_v50  ;;  %v7824_v32 = vld [vmem:[#allocation33_spill] sm:$0xff]  ;;  %v7825_v1 = vld [vmem:[#allocation127_spill] sm:$0xff]  ;;  %v5251_v19 = vpop.permute.xlu2 %1710 }
 0x302   :  { %7808 = vst [vmem:[#allocation103_spill] sm:$0xff] %v5204_v49  ;;  %1949 = vrot.lane.b32.xlu2 %v7824_v32, %s2937_s14  ;;  %v887_v6 = vmul.f32 %v7825_v1, %v806_v45  ;;  %v7828_v4 = vld [vmem:[#allocation21_spill] sm:$0xff]  ;;  %v7836_v32 = vld [vmem:[#allocation111_spill] sm:$0xff] }
 0x303   :  { %7809 = vst [vmem:[#allocation104_spill] sm:$0xff] %v5207_v38  ;;  %v5227_v38 = vadd.f32 %v877_v21, %v7816_v34  ;;  %v1571_v21 = vmul.f32 %v4793_v29, %v7823_v40  ;;  %v7826_v34 = vld [vmem:[#allocation44_spill] sm:$0xff]  ;;  %1945 = vrot.lane.b32.xlu0 %v7828_v4, %s2937_s14  ;;  %v1620_v46 = vpop.permute.xlu1 %1619  ;;  %v7834_v40 = vld [vmem:[#allocation27_spill] sm:$0xff]  ;;  %v892_v54 = vmul.f32 %v7837_v55, %v7836_v32  ;;  %v7842_v32 = vld [vmem:[#allocation82_spill] sm:$0xff] }
 0x304   :  { %7810 = vst [vmem:[#allocation117_spill] sm:$0xff] %v5210_v52  ;;  %v7819_v52 = vld [vmem:[#allocation125_spill] sm:$0xff]  ;;  %v5253_v29 = vmul.f32 %v1620_v46, %v1569_v25  ;;  %v5255_v28 = vmul.f32 %v1620_v46, %v1570_v11  ;;  %v5259_v45 = vmul.f32 %v1620_v46, %v1572_v53  ;;  %v2902_v25 = vld [vmem:[%s7087_s7 + $0x8] sm:$0xf]  ;;  %v5273_v11 = vpop.permute.xlu0 %1688 }
 0x305   :  { %7812 = vst [vmem:[#allocation105_spill] sm:$0xff] %v5215_v56  ;;  %v881_v49 = vmul.f32 %v7819_v52, %v7818_v62  ;;  %v882_v9 = vmul.f32 %v7819_v52, %v7820_v37  ;;  %v888_v37 = vmul.f32 %v7825_v1, %v7826_v34  ;;  %v7827_v52 = vld [vmem:[#allocation95_spill] sm:$0xff]  ;;  %v5257_v59 = vmul.f32 %v1620_v46, %v1571_v21  ;;  %v7839_v21 = vld [vmem:[#allocation72_spill] sm:$0xff]  ;;  %v7840_v46 = vld [vmem:[#allocation214_spill] sm:$0xff] }
 0x306   :  { %7817 = vst [vmem:[#allocation106_spill] sm:$0xff] %v5227_v38  ;;  %v889_v62 = vmul.f32 %v7825_v1, %v7827_v52  ;;  %v5262_v34 = vadd.f32 %v878_v41, %v7834_v40  ;;  %v890_v52 = vmul.f32 %v7825_v1, %v5106_v7  ;;  %v5271_v16 = vperm.slane %v2902_v25, 2  ;;  %v7841_v1 = vld [vmem:[#allocation67_spill] sm:$0xff]  ;;  %v7862_v50 = vld [vmem:[#allocation85_spill] sm:$0xff]  ;;  %v7866_v4 = vld [vmem:[#allocation86_spill] sm:$0xff] }
 0x307   :  { %7829 = vst [vmem:[#allocation98_spill] sm:$0xff] %v5251_v19  ;;  %v5276_v53 = vadd.f32 %v881_v49, %v7839_v21  ;;  %v891_v41 = vmul.f32 %v7837_v55, %v7840_v46  ;;  %v893_v7 = vmul.f32 %v7837_v55, %v4998_v5  ;;  %v5283_v40 = vadd.f32 %v882_v9, %v7841_v1  ;;  %v7847_v5 = vld [vmem:[#allocation75_spill] sm:$0xff]  ;;  %v7849_v46 = vld [vmem:[#allocation77_spill] sm:$0xff]  ;;  %v7851_v1 = vld [vmem:[#allocation132_spill] sm:$0xff] }
 0x308   :  { %7830 = vst [vmem:[#allocation114_spill] sm:$0xff] %v5253_v29  ;;  %v1009_v49 = vsel %vm991_vm3, %v7845_v42, %v7844_v2  ;;  %v5298_v21 = vsel %vm1750_vm6, %v5273_v11, %v5172_v51  ;;  %v5301_v9 = vadd.f32 %v888_v37, %v7847_v5  ;;  %v7857_v29 = vld [vmem:[#allocation78_spill] sm:$0xff]  ;;  %v7858_v37 = vld [vmem:[#allocation133_spill] sm:$0xff]  ;;  %1947 = vrot.lane.b32.xlu1 %v7861_v39, %s2937_s14 }
 0x309   :  { %7831 = vst [vmem:[#allocation7_spill] sm:$0xff] %v5255_v28  ;;  %v5315_v28 = vadd.f32 %v890_v52, %v7855_v27  ;;  %v5318_v35 = vadd.f32 %v892_v54, %v7857_v29  ;;  %v7859_v5 = vld [vmem:[#allocation137_spill] sm:$0xff]  ;;  %v5331_v10 = vadd.f32 %v893_v7, %v7862_v50  ;;  %v7863_v27 = vld [vmem:[#allocation150_spill] sm:$0xff]  ;;  %v7865_v29 = vld [vmem:[#allocation120_spill] sm:$0xff]  ;;  %v5339_v60 = vadd.f32 %v891_v41, %v7866_v4 }
 0x30a   :  { %7832 = vst [vmem:[#allocation102_spill] sm:$0xff] %v5257_v59  ;;  %v894_v59 = vmul.f32 %v7837_v55, %v5001_v31  ;;  %v7853_v55 = vld [vmem:[#allocation135_spill] sm:$0xff]  ;;  %v1040_v52 = vmul.f32 %v7863_v27, %v1009_v49  ;;  %v7864_v54 = vld [vmem:[#allocation138_spill] sm:$0xff]  ;;  %v5347_v50 = vperm.slane %v2902_v25, 3  ;;  %v7868_v7 = vld [vmem:[#allocation84_spill] sm:$0xff] }
 0x30b   :  { %7833 = vst [vmem:[#allocation107_spill] sm:$0xff] %v5259_v45  ;;  %v5286_v45 = vadd.f32 %v887_v6, %v7842_v32  ;;  %v5304_v6 = vadd.f32 %v889_v62, %v7849_v46  ;;  %v7852_v32 = vld [vmem:[#allocation134_spill] sm:$0xff]  ;;  %v1008_v13 = vsel %vm991_vm3, %v7854_v48, %v7853_v55  ;;  %v1002_v62 = vsel %vm991_vm3, %v7859_v5, %v7858_v37  ;;  %v7860_v46 = vld [vmem:[#allocation131_spill] sm:$0xff]  ;;  %v5354_v18 = vpop.permute.xlu1 %1690  ;;  %v7872_v25 = vld [vmem:[#allocation136_spill] sm:$0xff] }
 0x30c   :  { %7835 = vst [vmem:[#allocation87_spill] sm:$0xff] %v5262_v34  ;;  %v1015_v31 = vsel %vm991_vm3, %v7852_v32, %v7851_v1  ;;  %v1010_v14 = vsel %vm991_vm3, %v7860_v46, %v7859_v5  ;;  %v5345_v39 = vmul.f32 %v7863_v27, %v1008_v13  ;;  %v5350_v49 = vadd.f32 %v894_v59, %v7868_v7  ;;  %v5370_v7 = vpop.permute.xlu2 %1716  ;;  %v7875_v51 = vld [vmem:[#allocation141_spill] sm:$0xff]  ;;  %v5387_v0 = vpop.permute.xlu0 %1694 }
 0x30d   :  { %7838 = vst [vmem:[#allocation108_spill] sm:$0xff] %v5273_v11  ;;  %v1011_v11 = vsel %vm991_vm3, %v7865_v29, %v7864_v54  ;;  %v1064_v5 = vmul.f32 %v7863_v27, %v1015_v31  ;;  %1951 = vrot.lane.b32.xlu0 %v7869_v23, %s2937_s14  ;;  %v5357_v4 = vmul.f32 %v7863_v27, %v1010_v14  ;;  %v7871_v31 = vld [vmem:[#allocation139_spill] sm:$0xff]  ;;  %v7874_v14 = vld [vmem:[#allocation142_spill] sm:$0xff] }
 0x30e   :  { %7843 = vst [vmem:[#allocation109_spill] sm:$0xff] %v5286_v45  ;;  %v5360_v41 = vmul.f32 %v5271_v16, %v1002_v62  ;;  %v1016_v13 = vsel %vm991_vm3, %v7871_v31, %v7854_v48  ;;  %v5373_v23 = vmul.f32 %v7863_v27, %v1011_v11  ;;  %v1019_v62 = vsel %vm991_vm3, %v7874_v14, %v7865_v29  ;;  %v7880_v45 = vld [vmem:[#allocation153_spill] sm:$0xff] }
 0x30f   :  { %7846 = vst [vmem:[#allocation112_spill] sm:$0xff] %v5298_v21  ;;  %v7867_v21 = vld [vmem:[#allocation6_spill] sm:$0xff]  ;;  %v1014_v48 = vsel %vm991_vm3, %v7876_v63, %v7875_v51  ;;  %v1000_v11 = vsel %vm991_vm3, %v7853_v55, %v7877_v17  ;;  %v7883_v55 = vld [vmem:[#allocation145_spill] sm:$0xff] }
 0x310   :  { %7848 = vst [vmem:[#allocation118_spill] sm:$0xff] %v5301_v9  ;;  %1955 = vrot.lane.b32.xlu2 %v7867_v21, %s2937_s14  ;;  %v7873_v21 = vld [vmem:[#allocation140_spill] sm:$0xff]  ;;  %v1037_v34 = vmul.f32 %v5271_v16, %v1000_v11 }
 0x311   :  { %7850 = vst [vmem:[#allocation113_spill] sm:$0xff] %v5304_v6  ;;  %v1005_v59 = vsel %vm991_vm3, %v7873_v21, %v7872_v25  ;;  %v992_v21 = vsel %vm991_vm3, %v7877_v17, %v7871_v31  ;;  %v1017_v6 = vsel %vm991_vm3, %v7880_v45, %v7845_v42  ;;  %v5405_v31 = vsel %vm1750_vm6, %v5387_v0, %v5251_v19  ;;  %v7882_v9 = vld [vmem:[#allocation156_spill] sm:$0xff]  ;;  %v7887_v19 = vld [vmem:[#allocation129_spill] sm:$0xff] }
 0x312   :  { %7856 = vst [vmem:[#allocation23_spill] sm:$0xff] %v5315_v28  ;;  %v7879_v28 = vld [vmem:[#allocation144_spill] sm:$0xff]  ;;  %v5408_v26 = vmul.f32 %v7882_v9, %v1016_v13  ;;  %v5411_v17 = vmul.f32 %v5271_v16, %v1005_v59  ;;  %v5422_v3 = vmul.f32 %v7882_v9, %v1019_v62  ;;  %v7885_v13 = vld [vmem:[#allocation146_spill] sm:$0xff]  ;;  %v1039_v62 = vmul.f32 %v7882_v9, %v1017_v6 }
 0x313   :  { %7870 = vst [vmem:[#allocation115_spill] sm:$0xff] %v5354_v18  ;;  %v1001_v29 = vsel %vm991_vm3, %v7844_v2, %v7879_v28  ;;  %v1022_v2 = vsel %vm991_vm3, %v7883_v55, %v7876_v63  ;;  %v993_v42 = vsel %vm991_vm3, %v7879_v28, %v7880_v45  ;;  %v1003_v59 = vsel %vm991_vm3, %v7864_v54, %v7885_v13  ;;  %v7891_v6 = vld [vmem:[#allocation22_spill] sm:$0xff] }
 0x314   :  { %7878 = vst [vmem:[#allocation119_spill] sm:$0xff] %v5387_v0  ;;  %v5425_v0 = vmul.f32 %v7863_v27, %v1014_v48  ;;  %v1038_v28 = vmul.f32 %v5347_v50, %v992_v21  ;;  %v1041_v45 = vmul.f32 %v5271_v16, %v1001_v29  ;;  %v7888_v27 = vld [vmem:[#allocation50_spill] sm:$0xff]  ;;  %v5442_v48 = vmul.f32 %v7882_v9, %v1022_v2  ;;  %v7892_v2 = vld [vmem:[#allocation148_spill] sm:$0xff] }
 0x315   :  { %7881 = vst [vmem:[#allocation121_spill] sm:$0xff] %v5405_v31  ;;  %v7886_v31 = vld [vmem:[#allocation147_spill] sm:$0xff]  ;;  %1953 = vrot.lane.b32.xlu1 %v7888_v27, %s2937_s14  ;;  %v995_v54 = vsel %vm991_vm3, %v7885_v13, %v7874_v14  ;;  %v1042_v11 = vmul.f32 %v5347_v50, %v993_v42  ;;  %v5456_v29 = vmul.f32 %v5271_v16, %v1003_v59  ;;  %v7893_v14 = vld [vmem:[#allocation12_spill] sm:$0xff]  ;;  %v5463_v13 = vpop.permute.xlu1 %1696 }
 0x316   :  { %7884 = vst [vmem:[#allocation122_spill] sm:$0xff] %v5425_v0  ;;  %v1004_v63 = vsel %vm991_vm3, %v7887_v19, %v7886_v31  ;;  %v7890_v19 = vld [vmem:[#allocation151_spill] sm:$0xff]  ;;  %v1121_v27 = vmul.f32 %v7892_v2, %v1040_v52  ;;  %1957 = vrot.lane.b32.xlu0 %v7893_v14, %s2937_s14  ;;  %v7896_v52 = vld [vmem:[#allocation157_spill] sm:$0xff]  ;;  %v1120_v0 = vmul.f32 %v7892_v2, %v1039_v62 }
 0x317   :  { %7889 = vst [vmem:[#allocation199_spill] sm:$0xff] %v5442_v48  ;;  %v1007_v21 = vsel %vm991_vm3, %v7851_v1, %v7890_v19  ;;  %v1122_v48 = vmul.f32 %v7892_v2, %v1041_v45  ;;  %v1053_v33 = vmul.f32 %v5271_v16, %v1004_v63  ;;  %v7895_v1 = vld [vmem:[#allocation149_spill] sm:$0xff]  ;;  %v996_v63 = vsel %vm991_vm3, %v7886_v31, %v7896_v52  ;;  %v7897_v45 = vld [vmem:[#allocation160_spill] sm:$0xff]  ;;  %v7901_v52 = vld [vmem:[#allocation155_spill] sm:$0xff] }
 0x318   :  { %1961 = vrot.lane.b32.xlu2 %v7891_v6, %s2937_s14  ;;  %7894 = vst [vmem:[#allocation51_spill] sm:$0xff] %v5463_v13  ;;  %v998_v42 = vsel %vm991_vm3, %v7895_v1, %v7883_v55  ;;  %v1006_v59 = vsel %vm991_vm3, %v7875_v51, %v7895_v1  ;;  %v1023_v14 = vsel %vm991_vm3, %v7897_v45, %v7852_v32  ;;  %v5481_v6 = vpop.permute.xlu2 %1722  ;;  %v7899_v13 = vld [vmem:[#allocation152_spill] sm:$0xff]  ;;  %v5490_v1 = vpop.permute.xlu0 %1700  ;;  %v7902_v32 = vld [vmem:[#allocation154_spill] sm:$0xff] }
 0x319   :  { %7898 = vst [vmem:[#allocation70_spill] sm:$0xff] %v5481_v6  ;;  %v1134_v56 = vmul.f32 %v7899_v13, %v1053_v33  ;;  %v1065_v55 = vmul.f32 %v5271_v16, %v1007_v21  ;;  %v999_v51 = vsel %vm991_vm3, %v7890_v19, %v7897_v45  ;;  %v1123_v31 = vmul.f32 %v7892_v2, %v1042_v11 }
 0x31a   :  { %7900 = vst [vmem:[#allocation61_spill] sm:$0xff] %v5490_v1  ;;  %v1145_v38 = vmul.f32 %v7901_v52, %v1064_v5  ;;  %v994_v33 = vsel %vm991_vm3, %v7858_v37, %v7902_v32  ;;  %v5502_v62 = vsel %vm1750_vm6, %v5490_v1, %v5370_v7  ;;  %v1018_v19 = vsel %vm991_vm3, %v7902_v32, %v7860_v46  ;;  %v7914_v32 = vld [vmem:[#allocation162_spill] sm:$0xff] }
 0x31b   :  { %7903 = vst [vmem:[#allocation124_spill] sm:$0xff] %v5502_v62  ;;  %v1146_v21 = vmul.f32 %v7901_v52, %v1065_v55  ;;  %v1054_v5 = vmul.f32 %v5347_v50, %v996_v63  ;;  %v1063_v11 = vmul.f32 %v7882_v9, %v1023_v14  ;;  %v1050_v2 = vmul.f32 %v5347_v50, %v995_v54  ;;  %v7904_v54 = vld [vmem:[#allocation17_spill] sm:$0xff] }
 0x31c   :  { %v5513_v37 = vadd.f32 %v1121_v27, %v5165_v58  ;;  %v5516_v45 = vadd.f32 %v1122_v48, %v5187_v22  ;;  %v1066_v1 = vmul.f32 %v5347_v50, %v999_v51  ;;  %v1061_v55 = vmul.f32 %v5271_v16, %v1006_v59  ;;  %v7906_v48 = vld [vmem:[#allocation43_spill] sm:$0xff]  ;;  %v7910_v14 = vld [vmem:[#allocation161_spill] sm:$0xff]  ;;  %v7912_v59 = vld [vmem:[#allocation110_spill] sm:$0xff] }
 0x31d   :  { %v1062_v62 = vmul.f32 %v5347_v50, %v998_v42  ;;  %v5522_v46 = vadd.f32 %v1134_v56, %v5276_v53  ;;  %v5525_v63 = vadd.f32 %v1120_v0, %v5218_v24  ;;  %1959 = vrot.lane.b32.xlu1 %v7904_v54, %s2937_s14  ;;  %v5530_v58 = vadd.f32 %v1123_v31, %v5221_v43  ;;  %v7908_v24 = vld [vmem:[#allocation158_spill] sm:$0xff]  ;;  %v5550_v53 = vpop.permute.xlu1 %1702 }
 0x31e   :  { %v5533_v22 = vadd.f32 %v1145_v38, %v5318_v35  ;;  %v1043_v27 = vmul.f32 %v7882_v9, %v1018_v19  ;;  %v1046_v16 = vmul.f32 %v5347_v50, %v994_v33  ;;  %v5540_v56 = vadd.f32 %v1146_v21, %v5331_v10  ;;  %v7909_v38 = vld [vmem:[#allocation30_spill] sm:$0xff] }
 0x31f   :  { %v1135_v0 = vmul.f32 %v7899_v13, %v1054_v5  ;;  %v997_v43 = vsel %vm991_vm3, %v7872_v25, %v7908_v24  ;;  %v1144_v35 = vmul.f32 %v7901_v52, %v1063_v11  ;;  %1963 = vrot.lane.b32.xlu0 %v7909_v38, %s2937_s14  ;;  %v1147_v9 = vmul.f32 %v7901_v52, %v1066_v1  ;;  %v7948_v38 = vld [vmem:[#allocation173_spill] sm:$0xff] }
 0x320   :  { %7905 = vst [vmem:[#allocation88_spill] sm:$0xff] %v5533_v22  ;;  %1967 = vrot.lane.b32.xlu2 %v7906_v48, %s2937_s14  ;;  %v1116_v10 = vmul.f32 %v7910_v14, %v5408_v26  ;;  %v1117_v13 = vmul.f32 %v7910_v14, %v5345_v39  ;;  %v5557_v42 = vpop.permute.xlu2 %1728  ;;  %v5563_v25 = vsel %vm1750_vm6, %v7912_v59, %v5550_v53  ;;  %v1707_v52 = vpop.permute.xlu0 %1706  ;;  %v7949_v48 = vld [vmem:[#allocation118_spill] sm:$0xff] }
 0x321   :  { %7907 = vst [vmem:[#allocation79_spill] sm:$0xff] %v5540_v56  ;;  %v1118_v51 = vmul.f32 %v7910_v14, %v1037_v34  ;;  %v1119_v31 = vmul.f32 %v7910_v14, %v1038_v28  ;;  %v1124_v1 = vmul.f32 %v7914_v32, %v1043_v27  ;;  %v1125_v26 = vmul.f32 %v7914_v32, %v5357_v4  ;;  %v7929_v14 = vld [vmem:[#allocation166_spill] sm:$0xff] }
 0x322   :  { %7911 = vst [vmem:[#allocation64_spill] sm:$0xff] %v5557_v42  ;;  %v1126_v39 = vmul.f32 %v7914_v32, %v5360_v41  ;;  %v1127_v33 = vmul.f32 %v7914_v32, %v1046_v16  ;;  %v5576_v21 = vsel %vm1750_vm6, %v1707_v52, %v5481_v6  ;;  %v5581_v34 = vsel %vm1750_vm6, %v5354_v18, %v1707_v52  ;;  %v7918_v41 = vld [vmem:[#allocation163_spill] sm:$0xff]  ;;  %v7977_v6 = vld [vmem:[#allocation186_spill] sm:$0xff] }
 0x323   :  { %7913 = vst [vmem:[#allocation29_spill] sm:$0xff] %v5563_v25  ;;  %v5584_v28 = vadd.f32 %v1135_v0, %v5283_v40  ;;  %v1058_v4 = vmul.f32 %v5347_v50, %v997_v43  ;;  %v5588_v19 = vadd.f32 %v1144_v35, %v5339_v60  ;;  %v1129_v5 = vmul.f32 %v7918_v41, %v5373_v23  ;;  %v7925_v0 = vld [vmem:[#allocation165_spill] sm:$0xff]  ;;  %v7927_v35 = vld [vmem:[#allocation106_spill] sm:$0xff]  ;;  %v7976_v18 = vld [vmem:[#allocation187_spill] sm:$0xff] }
 0x324   :  { %7915 = vst [vmem:[#allocation204_spill] sm:$0xff] %v5576_v21  ;;  %v5593_v11 = vadd.f32 %v1147_v9, %v5350_v49  ;;  %v5596_v27 = vadd.f32 %v1117_v13, %v5134_v15  ;;  %v1128_v16 = vmul.f32 %v7918_v41, %v5422_v3  ;;  %v1130_v40 = vmul.f32 %v7918_v41, %v5456_v29  ;;  %v7920_v15 = vld [vmem:[#allocation36_spill] sm:$0xff] }
 0x325   :  { %7916 = vst [vmem:[#allocation206_spill] sm:$0xff] %v5581_v34  ;;  %v5603_v50 = vadd.f32 %v1118_v51, %v5137_v20  ;;  %v5606_v60 = vadd.f32 %v1124_v1, %v5043_v36  ;;  %v5609_v23 = vadd.f32 %v1119_v31, %v5140_v8  ;;  %v5612_v49 = vadd.f32 %v1116_v10, %v5131_v57  ;;  %v7924_v8 = vld [vmem:[#allocation13_spill] sm:$0xff]  ;;  %v7931_v31 = vld [vmem:[#allocation92_spill] sm:$0xff]  ;;  %v7933_v1 = vld [vmem:[#allocation199_spill] sm:$0xff] }
 0x326   :  { %7917 = vst [vmem:[#allocation207_spill] sm:$0xff] %v5584_v28  ;;  %1965 = vrot.lane.b32.xlu1 %v7920_v15, %s2937_s14  ;;  %v5617_v3 = vadd.f32 %v1125_v26, %v4963_v44  ;;  %v5620_v29 = vadd.f32 %v1126_v39, %v4966_v12  ;;  %v5623_v20 = vadd.f32 %v1127_v33, %v5046_v47  ;;  %v2903_v12 = vld [vmem:[%s7087_s7 + $0xc] sm:$0xf]  ;;  %v7926_v47 = vld [vmem:[#allocation52_spill] sm:$0xff]  ;;  %v7946_v15 = vld [vmem:[#allocation171_spill] sm:$0xff] }
 0x327   :  { %7919 = vst [vmem:[#allocation68_spill] sm:$0xff] %v5593_v11  ;;  %v1131_v36 = vmul.f32 %v7918_v41, %v1050_v2  ;;  %v5629_v57 = vadd.f32 %v1129_v5, %v5224_v61  ;;  %v1138_v24 = vmul.f32 %v7925_v0, %v5411_v17  ;;  %v1139_v44 = vmul.f32 %v7925_v0, %v1058_v4  ;;  %v5641_v2 = vpop.permute.xlu1 %1708  ;;  %v7928_v61 = vld [vmem:[#allocation122_spill] sm:$0xff]  ;;  %v7930_v17 = vld [vmem:[#allocation105_spill] sm:$0xff]  ;;  %v7935_v41 = vld [vmem:[#allocation164_spill] sm:$0xff] }
 0x328   :  { %7921 = vst [vmem:[#allocation65_spill] sm:$0xff] %v5617_v3  ;;  %1973 = vrot.lane.b32.xlu2 %v7924_v8, %s2937_s14  ;;  %v5637_v43 = vperm.slane %v2903_v12, 2  ;;  %1969 = vrot.lane.b32.xlu0 %v7926_v47, %s2937_s14  ;;  %v5644_v9 = vadd.f32 %v1130_v40, %v7927_v35  ;;  %v1141_v10 = vmul.f32 %v7929_v14, %v7928_v61  ;;  %v1735_v51 = vpop.permute.xlu2 %1734  ;;  %v1713_v4 = vpop.permute.xlu0 %1712  ;;  %v7936_v5 = vld [vmem:[#allocation168_spill] sm:$0xff]  ;;  %v7937_v40 = vld [vmem:[#allocation87_spill] sm:$0xff] }
 0x329   :  { %7922 = vst [vmem:[#allocation45_spill] sm:$0xff] %v5620_v29  ;;  %v5649_v13 = vadd.f32 %v1128_v16, %v7930_v17  ;;  %v5655_v32 = vsel %vm1750_vm6, %v7931_v31, %v5641_v2  ;;  %v1140_v26 = vmul.f32 %v7929_v14, %v7933_v1  ;;  %v1142_v52 = vmul.f32 %v7929_v14, %v1061_v55  ;;  %v7945_v1 = vld [vmem:[#allocation167_spill] sm:$0xff]  ;;  %v7962_v11 = vld [vmem:[#allocation8_spill] sm:$0xff] }
 0x32a   :  { %7923 = vst [vmem:[#allocation32_spill] sm:$0xff] %v5623_v20  ;;  %v1143_v39 = vmul.f32 %v7929_v14, %v1062_v62  ;;  %v5664_v33 = vsel %vm1750_vm6, %v1735_v51, %v7912_v59  ;;  %v1261_v16 = vsel %vm1244_vm4, %v7936_v5, %v7935_v41  ;;  %v5671_v0 = vadd.f32 %v1131_v36, %v7937_v40  ;;  %v7939_v62 = vld [vmem:[#allocation51_spill] sm:$0xff]  ;;  %v7941_v59 = vld [vmem:[#allocation90_spill] sm:$0xff] }
 0x32b   :  { %7932 = vst [vmem:[#allocation57_spill] sm:$0xff] %v5655_v32  ;;  %v5676_v55 = vsel %vm1750_vm6, %v1713_v4, %v5557_v42  ;;  %v5681_v35 = vsel %vm1750_vm6, %v7939_v62, %v1713_v4  ;;  %v5684_v61 = vadd.f32 %v1138_v24, %v7941_v59  ;;  %v7943_v14 = vld [vmem:[#allocation62_spill] sm:$0xff]  ;;  %v1264_v36 = vsel %vm1244_vm4, %v7946_v15, %v7945_v1  ;;  %v7951_v4 = vld [vmem:[#allocation172_spill] sm:$0xff]  ;;  %v7956_v32 = vld [vmem:[#allocation113_spill] sm:$0xff] }
 0x32c   :  { %7934 = vst [vmem:[#allocation66_spill] sm:$0xff] %v5664_v33  ;;  %v5687_v17 = vadd.f32 %v1139_v44, %v7943_v14  ;;  %v7947_v40 = vld [vmem:[#allocation170_spill] sm:$0xff]  ;;  %v5698_v54 = vadd.f32 %v1141_v10, %v7949_v48  ;;  %v7953_v44 = vld [vmem:[#allocation169_spill] sm:$0xff]  ;;  %v5713_v21 = vadd.f32 %v1142_v52, %v7956_v32  ;;  %v7960_v33 = vld [vmem:[#allocation23_spill] sm:$0xff]  ;;  %v5732_v52 = vperm.slane %v2903_v12, 3 }
 0x32d   :  { %7938 = vst [vmem:[#allocation40_spill] sm:$0xff] %v5676_v55  ;;  %v1267_v47 = vsel %vm1244_vm4, %v7948_v38, %v7947_v40  ;;  %v7952_v55 = vld [vmem:[#allocation176_spill] sm:$0xff]  ;;  %v7954_v14 = vld [vmem:[#allocation177_spill] sm:$0xff]  ;;  %v5720_v25 = vadd.f32 %v1143_v39, %v7960_v33 }
 0x32e   :  { %7940 = vst [vmem:[#allocation125_spill] sm:$0xff] %v5681_v35  ;;  %v1254_v24 = vsel %vm1244_vm4, %v7952_v55, %v7951_v4  ;;  %v1262_v59 = vsel %vm1244_vm4, %v7953_v44, %v7952_v55  ;;  %v7955_v35 = vld [vmem:[#allocation159_spill] sm:$0xff]  ;;  %v7958_v48 = vld [vmem:[#allocation201_spill] sm:$0xff]  ;;  %1971 = vrot.lane.b32.xlu1 %v7962_v11, %s2937_s14  ;;  %v7970_v11 = vld [vmem:[#allocation182_spill] sm:$0xff] }
 0x32f   :  { %7942 = vst [vmem:[#allocation49_spill] sm:$0xff] %v5684_v61  ;;  %v1263_v8 = vsel %vm1244_vm4, %v7955_v35, %v7954_v14  ;;  %v1289_v10 = vmul.f32 %v7958_v48, %v1261_v16  ;;  %v1301_v55 = vmul.f32 %v7958_v48, %v1264_v36  ;;  %v5726_v56 = vmul.f32 %v7958_v48, %v1267_v47  ;;  %v7965_v47 = vld [vmem:[#allocation175_spill] sm:$0xff]  ;;  %v5749_v12 = vpop.permute.xlu1 %1714  ;;  %v7972_v62 = vld [vmem:[#allocation93_spill] sm:$0xff] }
 0x330   :  { %7944 = vst [vmem:[#allocation39_spill] sm:$0xff] %v5687_v17  ;;  %v7963_v17 = vld [vmem:[#allocation183_spill] sm:$0xff]  ;;  %v5738_v39 = vmul.f32 %v5637_v43, %v1254_v24  ;;  %v5741_v33 = vmul.f32 %v7958_v48, %v1263_v8  ;;  %v7969_v24 = vld [vmem:[#allocation178_spill] sm:$0xff]  ;;  %v5767_v42 = vsel %vm1750_vm6, %v7972_v62, %v5749_v12  ;;  %v1719_v3 = vpop.permute.xlu0 %1718 }
 0x331   :  { %7950 = vst [vmem:[#allocation71_spill] sm:$0xff] %v5698_v54  ;;  %v7959_v54 = vld [vmem:[#allocation109_spill] sm:$0xff]  ;;  %v1253_v32 = vsel %vm1244_vm4, %v7935_v41, %v7963_v17  ;;  %v7966_v16 = vld [vmem:[#allocation179_spill] sm:$0xff]  ;;  %v1260_v8 = vsel %vm1244_vm4, %v7970_v11, %v7969_v24 }
 0x332   :  { %7957 = vst [vmem:[#allocation127_spill] sm:$0xff] %v5713_v21  ;;  %v5717_v34 = vadd.f32 %v1140_v26, %v7959_v54  ;;  %v7964_v54 = vld [vmem:[#allocation28_spill] sm:$0xff]  ;;  %v1293_v26 = vmul.f32 %v7958_v48, %v1262_v59  ;;  %v1257_v36 = vsel %vm1244_vm4, %v7966_v16, %v7965_v47  ;;  %v7967_v41 = vld [vmem:[#allocation19_spill] sm:$0xff]  ;;  %v7971_v21 = vld [vmem:[#allocation174_spill] sm:$0xff]  ;;  %v1290_v61 = vmul.f32 %v5637_v43, %v1253_v32 }
 0x333   :  { %7961 = vst [vmem:[#allocation44_spill] sm:$0xff] %v5720_v25  ;;  %1979 = vrot.lane.b32.xlu2 %v7964_v54, %s2937_s14  ;;  %1975 = vrot.lane.b32.xlu0 %v7967_v41, %s2937_s14  ;;  %v7968_v54 = vld [vmem:[#allocation181_spill] sm:$0xff]  ;;  %v1268_v16 = vsel %vm1244_vm4, %v7971_v21, %v7970_v11  ;;  %v1741_v25 = vpop.permute.xlu2 %1740  ;;  %v1256_v32 = vsel %vm1244_vm4, %v7945_v1, %v7977_v6  ;;  %v7982_v1 = vld [vmem:[#allocation180_spill] sm:$0xff] }
 0x334   :  { %v1271_v59 = vsel %vm1244_vm4, %v7968_v54, %v7955_v35  ;;  %7973 = vst [vmem:[#allocation95_spill] sm:$0xff] %v5767_v42  ;;  %v7974_v35 = vld [vmem:[#allocation185_spill] sm:$0xff]  ;;  %v5781_v11 = vsel %vm1750_vm6, %v1741_v25, %v7931_v31  ;;  %v1370_v42 = vmul.f32 %v7976_v18, %v1289_v10  ;;  %v5798_v31 = vmul.f32 %v5637_v43, %v1257_v36  ;;  %v7980_v10 = vld [vmem:[#allocation184_spill] sm:$0xff] }
 0x335   :  { %v1247_v20 = vsel %vm1244_vm4, %v7974_v35, %v7968_v54  ;;  %v1255_v29 = vsel %vm1244_vm4, %v7954_v14, %v7974_v35  ;;  %7975 = vst [vmem:[#allocation27_spill] sm:$0xff] %v5781_v11  ;;  %v5790_v54 = vsel %vm1750_vm6, %v1719_v3, %v1735_v51  ;;  %v5795_v14 = vsel %vm1750_vm6, %v5550_v53, %v1719_v3  ;;  %v7981_v11 = vld [vmem:[#allocation188_spill] sm:$0xff] }
 0x336   :  { %7978 = vst [vmem:[#allocation111_spill] sm:$0xff] %v5790_v54  ;;  %v1371_v35 = vmul.f32 %v7976_v18, %v1290_v61  ;;  %v1250_v28 = vsel %vm1244_vm4, %v7981_v11, %v7980_v10  ;;  %v1258_v51 = vsel %vm1244_vm4, %v7982_v1, %v7981_v11  ;;  %v7983_v54 = vld [vmem:[#allocation202_spill] sm:$0xff]  ;;  %v5813_v53 = vmul.f32 %v7958_v48, %v1268_v16  ;;  %v7989_v16 = vld [vmem:[#allocation192_spill] sm:$0xff] }
 0x337   :  { %7979 = vst [vmem:[#allocation128_spill] sm:$0xff] %v5795_v14  ;;  %v5810_v41 = vmul.f32 %v7983_v54, %v1271_v59  ;;  %v5816_v3 = vmul.f32 %v5637_v43, %v1260_v8  ;;  %v5819_v61 = vmul.f32 %v5637_v43, %v1255_v29  ;;  %v5822_v36 = vmul.f32 %v5732_v52, %v1247_v20  ;;  %v7985_v14 = vld [vmem:[#allocation191_spill] sm:$0xff]  ;;  %v7986_v8 = vld [vmem:[#allocation24_spill] sm:$0xff] }
 0x338   :  { %v1302_v10 = vmul.f32 %v5637_v43, %v1256_v32  ;;  %v1245_v59 = vsel %vm1244_vm4, %v7963_v17, %v7985_v14  ;;  %v1269_v48 = vsel %vm1244_vm4, %v7985_v14, %v7936_v5  ;;  %1977 = vrot.lane.b32.xlu1 %v7986_v8, %s2937_s14  ;;  %v5836_v29 = vmul.f32 %v5637_v43, %v1258_v51  ;;  %v7991_v32 = vld [vmem:[#allocation54_spill] sm:$0xff]  ;;  %v7993_v51 = vld [vmem:[#allocation189_spill] sm:$0xff] }
 0x339   :  { %7984 = vst [vmem:[#allocation72_spill] sm:$0xff] %v5816_v3  ;;  %v5839_v20 = vmul.f32 %v5732_v52, %v1250_v28  ;;  %v1270_v11 = vsel %vm1244_vm4, %v7989_v16, %v7953_v44  ;;  %v5846_v17 = vadd.f32 %v1370_v42, %v5596_v27  ;;  %v7992_v5 = vld [vmem:[#allocation190_spill] sm:$0xff]  ;;  %v1259_v28 = vsel %vm1244_vm4, %v7947_v40, %v7993_v51  ;;  %v5861_v42 = vpop.permute.xlu1 %1720  ;;  %v5872_v40 = vld [vmem:[%s7087_s7 + $0x18] sm:$0xf]  ;;  %v1725_v3 = vpop.permute.xlu0 %1724 }
 0x33a   :  { %7987 = vst [vmem:[#allocation214_spill] sm:$0xff] %v5836_v29  ;;  %v1382_v14 = vmul.f32 %v7992_v5, %v1301_v55  ;;  %v1383_v1 = vmul.f32 %v7992_v5, %v1302_v10  ;;  %v5857_v8 = vadd.f32 %v1371_v35, %v5603_v50  ;;  %v7995_v44 = vld [vmem:[#allocation38_spill] sm:$0xff]  ;;  %v1288_v27 = vmul.f32 %v7983_v54, %v1269_v48  ;;  %v7996_v55 = vld [vmem:[#allocation20_spill] sm:$0xff]  ;;  %v7998_v35 = vld [vmem:[#allocation83_spill] sm:$0xff] }
 0x33b   :  { %7988 = vst [vmem:[#allocation67_spill] sm:$0xff] %v5839_v20  ;;  %1985 = vrot.lane.b32.xlu2 %v7991_v32, %s2937_s14  ;;  %1981 = vrot.lane.b32.xlu0 %v7995_v44, %s2937_s14  ;;  %v1291_v32 = vmul.f32 %v5732_v52, %v1245_v59  ;;  %v1747_v50 = vpop.permute.xlu2 %1746  ;;  %v1760_v44 = vsel %vm1750_vm6, %v7998_v35, %v5861_v42  ;;  %v8001_v35 = vld [vmem:[#allocation197_spill] sm:$0xff]  ;;  %v8005_v29 = vld [vmem:[#allocation76_spill] sm:$0xff] }
 0x33c   :  { %7990 = vst [vmem:[#allocation82_spill] sm:$0xff] %v5846_v17  ;;  %v7997_v17 = vld [vmem:[#allocation196_spill] sm:$0xff]  ;;  %v1292_v48 = vmul.f32 %v7983_v54, %v1270_v11  ;;  %v1246_v11 = vsel %vm1244_vm4, %v7951_v4, %v7989_v16  ;;  %v5902_v20 = vsel %vm1750_vm6, %v1725_v3, %v1741_v25  ;;  %v5913_v16 = vperm.slane %v5872_v40, 0 }
 0x33d   :  { %7994 = vst [vmem:[#allocation126_spill] sm:$0xff] %v5857_v8  ;;  %v1515_v10 = vsel %vm1497_vm5, %v7997_v17, %v7996_v55  ;;  %v7999_v8 = vld [vmem:[#allocation194_spill] sm:$0xff]  ;;  %v5890_v55 = vsel %vm1750_vm6, %v1747_v50, %v7972_v62  ;;  %v8004_v62 = vld [vmem:[#allocation200_spill] sm:$0xff] }
 0x33e   :  { %v1248_v59 = vsel %vm1244_vm4, %v7977_v6, %v7999_v8  ;;  %v1272_v17 = vsel %vm1244_vm4, %v7999_v8, %v7946_v15  ;;  %8000 = vst [vmem:[#allocation130_spill] sm:$0xff] %v5890_v55  ;;  %v1275_v6 = vsel %vm1244_vm4, %v8001_v35, %v7948_v38  ;;  %v5907_v15 = vsel %vm1750_vm6, %v5641_v2, %v1725_v3  ;;  %v8006_v3 = vld [vmem:[#allocation218_spill] sm:$0xff] }
 0x33f   :  { %8002 = vst [vmem:[#allocation75_spill] sm:$0xff] %v5902_v20  ;;  %v1373_v8 = vmul.f32 %v8004_v62, %v1292_v48  ;;  %v1374_v55 = vmul.f32 %v8004_v62, %v1293_v26  ;;  %v1545_v4 = vmul.f32 %v8005_v29, %v1515_v10  ;;  %v1314_v38 = vmul.f32 %v5637_v43, %v1259_v28 }
 0x340   :  { %8003 = vst [vmem:[#allocation77_spill] sm:$0xff] %v5907_v15  ;;  %v1300_v22 = vmul.f32 %v7983_v54, %v1272_v17  ;;  %v1303_v25 = vmul.f32 %v5732_v52, %v1248_v59  ;;  %v5919_v20 = vadd.f32 %v1382_v14, %v5629_v57  ;;  %v1369_v2 = vmul.f32 %v7976_v18, %v1288_v27  ;;  %v8008_v15 = vld [vmem:[#allocation47_spill] sm:$0xff]  ;;  %v8010_v59 = vld [vmem:[#allocation112_spill] sm:$0xff] }
 0x341   :  { %v1626_v48 = vmul.f32 %v8006_v3, %v1545_v4  ;;  %v5924_v26 = vadd.f32 %v1383_v1, %v5644_v9  ;;  %v5927_v10 = vperm.slane %v5872_v40, 1  ;;  %1983 = vrot.lane.b32.xlu1 %v8008_v15, %s2937_s14  ;;  %v1372_v43 = vmul.f32 %v7976_v18, %v1291_v32  ;;  %v8009_v9 = vld [vmem:[#allocation18_spill] sm:$0xff]  ;;  %v8011_v32 = vld [vmem:[#allocation9_spill] sm:$0xff] }
 0x342   :  { %v1295_v28 = vmul.f32 %v5732_v52, %v1246_v11  ;;  %v1251_v57 = vsel %vm1244_vm4, %v7993_v51, %v8001_v35  ;;  %v1312_v14 = vmul.f32 %v7983_v54, %v1275_v6  ;;  %v1405_v1 = vadd.f32 %v1373_v8, %v5525_v63  ;;  %v5947_v11 = vpop.permute.xlu1 %1726  ;;  %v8012_v6 = vld [vmem:[#allocation195_spill] sm:$0xff]  ;;  %v8014_v4 = vld [vmem:[#allocation97_spill] sm:$0xff] }
 0x343   :  { %8007 = vst [vmem:[#allocation132_spill] sm:$0xff] %v5924_v26  ;;  %1991 = vrot.lane.b32.xlu2 %v8009_v9, %s2937_s14  ;;  %v1406_v27 = vadd.f32 %v1374_v55, %v5513_v37  ;;  %v1798_v17 = vmul.f32 %v5913_v16, %v8010_v59  ;;  %v1799_v18 = vmul.f32 %v5927_v10, %v1760_v44  ;;  %v1843_v37 = vpop.permute.xlu2 %1842  ;;  %v8013_v55 = vld [vmem:[#allocation98_spill] sm:$0xff] }
 0x344   :  { %1987 = vrot.lane.b32.xlu0 %v8011_v32, %s2937_s14  ;;  %v1381_v51 = vmul.f32 %v7992_v5, %v1300_v22  ;;  %v1384_v35 = vmul.f32 %v7992_v5, %v1303_v25  ;;  %v1249_v63 = vsel %vm1244_vm4, %v7965_v47, %v8012_v6  ;;  %v1763_v44 = vsel %vm1750_vm6, %v8013_v55, %v5947_v11  ;;  %v1731_v32 = vpop.permute.xlu0 %1730  ;;  %v8015_v5 = vld [vmem:[#allocation193_spill] sm:$0xff] }
 0x345   :  { %v1658_v8 = vadd.f32 %v1626_v48, %v1405_v1  ;;  %v1659_v3 = vadd.f32 %v8014_v4, %v1406_v27  ;;  %v1879_v59 = vmul.f32 %v1843_v37, %v1798_v17  ;;  %v1880_v15 = vmul.f32 %v1843_v37, %v1799_v18  ;;  %v8016_v48 = vld [vmem:[#allocation198_spill] sm:$0xff]  ;;  %v8022_v6 = vld [vmem:[#allocation205_spill] sm:$0xff] }
 0x346   :  { %v1315_v22 = vmul.f32 %v5732_v52, %v1251_v57  ;;  %v1393_v25 = vmul.f32 %v8015_v5, %v1312_v14  ;;  %v5964_v26 = vsel %vm1750_vm6, %v1731_v32, %v1747_v50  ;;  %v5969_v47 = vsel %vm1750_vm6, %v5749_v12, %v1731_v32 }
 0x347   :  { %v1276_v1 = vsel %vm1244_vm4, %v8016_v48, %v7971_v21  ;;  %v1375_v27 = vmul.f32 %v8004_v62, %v5738_v39  ;;  %v5977_v57 = vadd.f32 %v1879_v59, %v1658_v8  ;;  %v5979_v14 = vadd.f32 %v1880_v15, %v1659_v3  ;;  %v8023_v59 = vld [vmem:[#allocation210_spill] sm:$0xff] }
 0x348   :  { %v5982_v50 = vadd.f32 %v1369_v2, %v5612_v49  ;;  %v5985_v17 = vadd.f32 %v1372_v43, %v5609_v23  ;;  %v1252_v12 = vsel %vm1244_vm4, %v7969_v24, %v8016_v48  ;;  %v1376_v21 = vmul.f32 %v8004_v62, %v1295_v28  ;;  %v8017_v2 = vld [vmem:[#allocation15_spill] sm:$0xff]  ;;  %v8019_v28 = vld [vmem:[#allocation121_spill] sm:$0xff] }
 0x349   :  { %v5994_v39 = vmul.f32 %v8015_v5, %v5726_v56  ;;  %v5997_v15 = vmul.f32 %v8015_v5, %v1314_v38  ;;  %v6000_v49 = vadd.f32 %v1381_v51, %v5649_v13  ;;  %v6003_v23 = vadd.f32 %v1384_v35, %v5671_v0  ;;  %1989 = vrot.lane.b32.xlu1 %v8017_v2, %s2937_s14  ;;  %v8018_v13 = vld [vmem:[#allocation21_spill] sm:$0xff]  ;;  %v8020_v51 = vld [vmem:[#allocation26_spill] sm:$0xff] }
 0x34a   :  { %v1307_v24 = vmul.f32 %v5732_v52, %v1249_v63  ;;  %v6009_v62 = vmul.f32 %v8015_v5, %v1315_v22  ;;  %v6012_v56 = vadd.f32 %v1393_v25, %v5717_v34  ;;  %v1316_v38 = vmul.f32 %v7983_v54, %v1276_v1  ;;  %v6026_v34 = vpop.permute.xlu1 %1732  ;;  %v8021_v54 = vld [vmem:[#allocation203_spill] sm:$0xff]  ;;  %v8024_v5 = vld [vmem:[#allocation108_spill] sm:$0xff]  ;;  %v8025_v25 = vld [vmem:[#allocation101_spill] sm:$0xff] }
 0x34b   :  { %2198 = vrot.lane.b32.xlu2 %v8018_v13, %s2938_s21  ;;  %v6018_v0 = vmul.f32 %v5732_v52, %v1252_v12  ;;  %v1407_v43 = vadd.f32 %v1375_v27, %v5516_v45  ;;  %v1810_v18 = vmul.f32 %v5913_v16, %v8019_v28  ;;  %v1811_v32 = vmul.f32 %v5927_v10, %v1763_v44  ;;  %v1858_v55 = vpop.permute.xlu2 %1857  ;;  %v8029_v13 = vld [vmem:[#allocation73_spill] sm:$0xff] }
 0x34c   :  { %1993 = vrot.lane.b32.xlu0 %v8020_v51, %s2937_s14  ;;  %v1377_v35 = vmul.f32 %v8021_v54, %v5810_v41  ;;  %v1387_v63 = vmul.f32 %v8022_v6, %v5798_v31  ;;  %v1408_v52 = vadd.f32 %v1376_v21, %v5530_v58  ;;  %v1766_v45 = vsel %vm1750_vm6, %v5370_v7, %v6026_v34  ;;  %v1737_v41 = vpop.permute.xlu0 %1736 }
 0x34d   :  { %v6038_v44 = vperm.slane %v5872_v40, 3  ;;  %v6041_v8 = vperm.slane %v5872_v40, 2  ;;  %v1891_v4 = vmul.f32 %v1858_v55, %v1810_v18  ;;  %v1892_v3 = vmul.f32 %v1858_v55, %v1811_v32  ;;  %v8027_v40 = vld [vmem:[#allocation81_spill] sm:$0xff]  ;;  %v8030_v18 = vld [vmem:[#allocation16_spill] sm:$0xff] }
 0x34e   :  { %v1397_v22 = vmul.f32 %v8023_v59, %v1316_v38  ;;  %v1398_v58 = vmul.f32 %v8023_v59, %v5813_v53  ;;  %v1752_v31 = vsel %vm1750_vm6, %v5861_v42, %v1737_v41  ;;  %v1776_v7 = vsel %vm1750_vm6, %v1737_v41, %v8024_v5  ;;  %v8031_v41 = vld [vmem:[#allocation14_spill] sm:$0xff]  ;;  %v8032_v5 = vld [vmem:[#allocation88_spill] sm:$0xff] }
 0x34f   :  { %v6053_v48 = vadd.f32 %v1891_v4, %v8025_v25  ;;  %v6056_v1 = vadd.f32 %v1892_v3, %v8027_v40  ;;  %v1800_v27 = vmul.f32 %v6041_v8, %v1752_v31  ;;  %v1801_v12 = vmul.f32 %v6038_v44, %v1776_v7  ;;  %v8040_v40 = vld [vmem:[#allocation114_spill] sm:$0xff] }
 0x350   :  { %v1378_v53 = vmul.f32 %v8021_v54, %v5741_v33  ;;  %v1379_v42 = vmul.f32 %v8021_v54, %v5819_v61  ;;  %v1380_v21 = vmul.f32 %v8021_v54, %v5822_v36  ;;  %v1388_v38 = vmul.f32 %v8022_v6, %v1307_v24  ;;  %v8033_v36 = vld [vmem:[#allocation124_spill] sm:$0xff] }
 0x351   :  { %8026 = vst [vmem:[#allocation134_spill] sm:$0xff] %v6053_v48  ;;  %v1660_v28 = vadd.f32 %v8029_v13, %v1407_v43  ;;  %v1661_v32 = vadd.f32 %v8030_v18, %v1408_v52  ;;  %v1881_v4 = vmul.f32 %v1843_v37, %v1800_v27  ;;  %v1882_v3 = vmul.f32 %v1843_v37, %v1801_v12  ;;  %v8041_v12 = vld [vmem:[#allocation7_spill] sm:$0xff] }
 0x352   :  { %8028 = vst [vmem:[#allocation135_spill] sm:$0xff] %v6056_v1  ;;  %2196 = vrot.lane.b32.xlu1 %v8031_v41, %s2938_s21  ;;  %v1409_v31 = vadd.f32 %v1377_v35, %v5606_v60  ;;  %v1419_v33 = vadd.f32 %v1387_v63, %v5522_v46  ;;  %v1429_v61 = vadd.f32 %v1397_v22, %v5588_v19  ;;  %v8034_v60 = vld [vmem:[#allocation19_spill] sm:$0xff]  ;;  %v1739_v46 = vpop.permute.xlu1 %1738  ;;  %v8035_v35 = vld [vmem:[#allocation209_spill] sm:$0xff]  ;;  %v8038_v22 = vld [vmem:[#allocation70_spill] sm:$0xff] }
 0x353   :  { %v1430_v7 = vadd.f32 %v1398_v58, %v8032_v5  ;;  %2244 = vrot.lane.b32.xlu2 %v8009_v9, %s2938_s21  ;;  %v1822_v24 = vmul.f32 %v5913_v16, %v8033_v36  ;;  %v1823_v43 = vmul.f32 %v5927_v10, %v1766_v45  ;;  %v6080_v37 = vadd.f32 %v1881_v4, %v1660_v28  ;;  %v8036_v19 = vld [vmem:[#allocation215_spill] sm:$0xff]  ;;  %v6091_v52 = vpop.permute.xlu2 %1872  ;;  %v8043_v4 = vld [vmem:[#allocation208_spill] sm:$0xff]  ;;  %v8045_v5 = vld [vmem:[#allocation213_spill] sm:$0xff] }
 0x354   :  { %v6082_v54 = vadd.f32 %v1882_v3, %v1661_v32  ;;  %2228 = vrot.lane.b32.xlu0 %v8034_v60, %s2938_s21  ;;  %v1516_v6 = vsel %vm1497_vm5, %v8036_v19, %v8035_v35  ;;  %v8037_v63 = vld [vmem:[#allocation207_spill] sm:$0xff]  ;;  %v6096_v45 = vsel %vm1750_vm6, %v8038_v22, %v1739_v46  ;;  %v1682_v27 = vadd.f32 %v8040_v40, %v1429_v61  ;;  %v1743_v18 = vpop.permute.xlu0 %1742  ;;  %v8042_v32 = vld [vmem:[#allocation214_spill] sm:$0xff]  ;;  %v2823_v19 = vld [vmem:[%s7083_s3 + $0x1d8] sm:$0xff] }
 0x355   :  { %v1420_v9 = vadd.f32 %v1388_v38, %v8037_v63  ;;  %v8039_v58 = vld [vmem:[#allocation115_spill] sm:$0xff]  ;;  %v1683_v13 = vadd.f32 %v8041_v12, %v1430_v7  ;;  %v1903_v28 = vmul.f32 %v6091_v52, %v1822_v24  ;;  %v1904_v38 = vmul.f32 %v6091_v52, %v1823_v43  ;;  %v8090_v1 = vld [vmem:[#allocation204_spill] sm:$0xff] }
 0x356   :  { %v6101_v25 = vsel %vm1750_vm6, %v1739_v46, %v8039_v58  ;;  %v1391_v3 = vmul.f32 %v8043_v4, %v8042_v32  ;;  %v8044_v41 = vld [vmem:[#allocation11_spill] sm:$0xff]  ;;  %v1755_v60 = vsel %vm1750_vm6, %v5947_v11, %v1743_v18  ;;  %v8050_v11 = vld [vmem:[#allocation72_spill] sm:$0xff]  ;;  %v1400_v40 = vmul.f32 %v8023_v59, %v6018_v0 }
 0x357   :  { %v1514_v36 = vsel %vm1497_vm5, %v8045_v5, %v8044_v41  ;;  %v8046_v61 = vld [vmem:[#allocation119_spill] sm:$0xff]  ;;  %v6119_v24 = vadd.f32 %v1903_v28, %v1682_v27  ;;  %v6121_v43 = vadd.f32 %v1904_v38, %v1683_v13  ;;  %v1812_v46 = vmul.f32 %v6041_v8, %v1755_v60  ;;  %v8052_v28 = vld [vmem:[#allocation212_spill] sm:$0xff] }
 0x358   :  { %v1779_v7 = vsel %vm1750_vm6, %v1743_v18, %v8046_v61  ;;  %v8049_v63 = vld [vmem:[#allocation67_spill] sm:$0xff]  ;;  %v1399_v58 = vmul.f32 %v8023_v59, %v8050_v11  ;;  %v1549_v27 = vmul.f32 %v8005_v29, %v1516_v6  ;;  %v1673_v38 = vadd.f32 %v8052_v28, %v1420_v9  ;;  %v8053_v41 = vld [vmem:[#allocation24_spill] sm:$0xff]  ;;  %v8057_v59 = vld [vmem:[#allocation74_spill] sm:$0xff] }
 0x359   :  { %8047 = vst [vmem:[#allocation116_spill] sm:$0xff] %v6119_v24  ;;  %v1813_v35 = vmul.f32 %v6038_v44, %v1779_v7  ;;  %v1392_v22 = vmul.f32 %v8043_v4, %v8049_v63  ;;  %v8051_v12 = vld [vmem:[#allocation211_spill] sm:$0xff]  ;;  %v1893_v18 = vmul.f32 %v1858_v55, %v1812_v46  ;;  %v1541_v5 = vmul.f32 %v8005_v29, %v1514_v36  ;;  %v8054_v4 = vld [vmem:[#allocation34_spill] sm:$0xff]  ;;  %v8055_v60 = vld [vmem:[#allocation216_spill] sm:$0xff] }
 0x35a   :  { %8048 = vst [vmem:[#allocation80_spill] sm:$0xff] %v6121_v43  ;;  %v1672_v13 = vadd.f32 %v8051_v12, %v1419_v33  ;;  %2230 = vrot.lane.b32.xlu1 %v8053_v41, %s2938_s21  ;;  %v1517_v61 = vsel %vm1497_vm5, %v8055_v60, %v8054_v4  ;;  %v8056_v7 = vld [vmem:[#allocation65_spill] sm:$0xff]  ;;  %v1630_v6 = vmul.f32 %v8057_v59, %v1549_v27  ;;  %v8059_v9 = vld [vmem:[#allocation32_spill] sm:$0xff]  ;;  %v1745_v36 = vpop.permute.xlu1 %1744 }
 0x35b   :  { %v1894_v32 = vmul.f32 %v1858_v55, %v1813_v35  ;;  %v1410_v0 = vadd.f32 %v1378_v53, %v8056_v7  ;;  %2105 = vperm.xlu2 %2868, %v2823_v19   ;;  %v8058_v33 = vld [vmem:[#allocation45_spill] sm:$0xff]  ;;  %v1412_v46 = vadd.f32 %v1380_v21, %v8059_v9  ;;  %v6156_v53 = vpop.permute.xlu2 %1943  ;;  %v8064_v27 = vld [vmem:[#allocation64_spill] sm:$0xff]  ;;  %v8065_v21 = vld [vmem:[#allocation51_spill] sm:$0xff] }
 0x35c   :  { %v1411_v63 = vadd.f32 %v1379_v42, %v8058_v33  ;;  %v6148_v55 = vadd.f32 %v1893_v18, %v1672_v13  ;;  %2246 = vrot.lane.b32.xlu0 %v8020_v51, %s2938_s21  ;;  %v8062_v11 = vld [vmem:[#allocation49_spill] sm:$0xff]  ;;  %v6161_v42 = vsel %vm1750_vm6, %v8064_v27, %v1745_v36  ;;  %v6166_v19 = vsel %vm1750_vm6, %v1745_v36, %v8065_v21  ;;  %v8066_v51 = vld [vmem:[#allocation39_spill] sm:$0xff]  ;;  %v1749_v4 = vpop.permute.xlu0 %1748 }
 0x35d   :  { %v6150_v35 = vadd.f32 %v1894_v32, %v1673_v38  ;;  %v1423_v12 = vadd.f32 %v1391_v3, %v8062_v11  ;;  %v8063_v28 = vld [vmem:[#allocation53_spill] sm:$0xff]  ;;  %v1553_v13 = vmul.f32 %v8005_v29, %v1517_v61  ;;  %v1424_v38 = vadd.f32 %v1392_v22, %v8066_v51  ;;  %v8067_v18 = vld [vmem:[#allocation79_spill] sm:$0xff]  ;;  %v8068_v32 = vld [vmem:[#allocation68_spill] sm:$0xff] }
 0x35e   :  { %8060 = vst [vmem:[#allocation78_spill] sm:$0xff] %v6148_v55  ;;  %v1622_v41 = vmul.f32 %v8063_v28, %v1541_v5  ;;  %v1431_v3 = vadd.f32 %v1399_v58, %v8067_v18  ;;  %v1432_v5 = vadd.f32 %v1400_v40, %v8068_v32  ;;  %v8069_v60 = vld [vmem:[#allocation41_spill] sm:$0xff]  ;;  %v8070_v7 = vld [vmem:[#allocation219_spill] sm:$0xff]  ;;  %v1662_v33 = vadd.f32 %v1630_v6, %v1409_v31  ;;  %v8072_v58 = vld [vmem:[#allocation46_spill] sm:$0xff] }
 0x35f   :  { %8061 = vst [vmem:[#allocation133_spill] sm:$0xff] %v6150_v35  ;;  %v1520_v59 = vsel %vm1497_vm5, %v8070_v7, %v8069_v60  ;;  %v1758_v9 = vsel %vm1750_vm6, %v6026_v34, %v1749_v4  ;;  %v8071_v36 = vld [vmem:[#allocation61_spill] sm:$0xff]  ;;  %v2822_v22 = vld [vmem:[%s7083_s3 + $0x1d0] sm:$0xff]  ;;  %v1663_v40 = vadd.f32 %v8072_v58, %v1410_v0  ;;  %v8075_v51 = vld [vmem:[#allocation82_spill] sm:$0xff] }
 0x360   :  { %v1782_v61 = vsel %vm1750_vm6, %v1749_v4, %v8071_v36  ;;  %v8073_v11 = vld [vmem:[#allocation91_spill] sm:$0xff]  ;;  %v1824_v27 = vmul.f32 %v6041_v8, %v1758_v9  ;;  %v8074_v6 = vld [vmem:[#allocation89_spill] sm:$0xff]  ;;  %v1654_v34 = vadd.f32 %v1622_v41, %v5982_v50  ;;  %v8076_v18 = vld [vmem:[#allocation94_spill] sm:$0xff] }
 0x361   :  { %v1664_v28 = vadd.f32 %v8073_v11, %v1411_v63  ;;  %v1825_v31 = vmul.f32 %v6038_v44, %v1782_v61  ;;  %v1665_v21 = vadd.f32 %v8074_v6, %v1412_v46  ;;  %v1655_v32 = vadd.f32 %v8076_v18, %v8075_v51  ;;  %v8077_v4 = vld [vmem:[#allocation126_spill] sm:$0xff]  ;;  %v8078_v60 = vld [vmem:[#allocation59_spill] sm:$0xff]  ;;  %v8081_v50 = vld [vmem:[#allocation29_spill] sm:$0xff] }
 0x362   :  { %v1656_v7 = vadd.f32 %v8078_v60, %v8077_v4  ;;  %v2831_v0 = vld [vmem:[%s7083_s3 + $0x210] sm:$0xff]  ;;  %v8079_v36 = vld [vmem:[#allocation102_spill] sm:$0xff]  ;;  %v1905_v61 = vmul.f32 %v6091_v52, %v1824_v27  ;;  %2100 = vperm.xlu1 %2867, %v2822_v22   ;;  %v1794_v41 = vmul.f32 %v5913_v16, %v8081_v50  ;;  %v8083_v51 = vld [vmem:[#allocation128_spill] sm:$0xff] }
 0x363   :  { %v1684_v63 = vadd.f32 %v8079_v36, %v1431_v3  ;;  %v8080_v58 = vld [vmem:[#allocation107_spill] sm:$0xff]  ;;  %v1906_v46 = vmul.f32 %v6091_v52, %v1825_v31  ;;  %v8082_v11 = vld [vmem:[#allocation66_spill] sm:$0xff]  ;;  %v1795_v18 = vmul.f32 %v5927_v10, %v8083_v51  ;;  %v8085_v3 = vld [vmem:[#allocation5_spill] sm:$0xff]  ;;  %v6219_v50 = vpop.permute.xlu2 %1949 }
 0x364   :  { %v1685_v9 = vadd.f32 %v8080_v58, %v1432_v5  ;;  %v1797_v6 = vmul.f32 %v6038_v44, %v8082_v11  ;;  %v8084_v4 = vld [vmem:[#allocation111_spill] sm:$0xff]  ;;  %2192 = vrot.lane.b32.xlu2 %v8085_v3, %s2938_s21  ;;  %v8086_v5 = vld [vmem:[#allocation60_spill] sm:$0xff]  ;;  %2353 = vperm.xlu0 %2866, %v2831_v0   ;;  %v1838_v58 = vpop.permute.xlu1 %1837  ;;  %8088 = vst [vmem:[#allocation137_spill] sm:$0xff] %v6219_v50  ;;  %v8089_v55 = vld [vmem:[#allocation206_spill] sm:$0xff]  ;;  %v1848_v0 = vpop.permute.xlu0 %1847 }
 0x365   :  { %v1796_v60 = vmul.f32 %v6041_v8, %v8084_v4  ;;  %v1657_v27 = vadd.f32 %v8086_v5, %v5985_v17  ;;  %v8087_v52 = vld [vmem:[#allocation63_spill] sm:$0xff]  ;;  %v6215_v31 = vadd.f32 %v1905_v61, %v1684_v63  ;;  %v1875_v11 = vmul.f32 %v1838_v58, %v1794_v41 }
 0x366   :  { %v1634_v22 = vmul.f32 %v8087_v52, %v1553_v13  ;;  %v6217_v36 = vadd.f32 %v1906_v46, %v1685_v9  ;;  %v1876_v51 = vmul.f32 %v1838_v58, %v1795_v18  ;;  %v1878_v4 = vmul.f32 %v1838_v58, %v1797_v6 }
 0x367   :  { %v1877_v35 = vmul.f32 %v1838_v58, %v1796_v60  ;;  %v1802_v3 = vmul.f32 %v5913_v16, %v8089_v55  ;;  %v1803_v17 = vmul.f32 %v5927_v10, %v8090_v1  ;;  %v1804_v13 = vmul.f32 %v6041_v8, %v6096_v45  ;;  %v2832_v55 = vld [vmem:[%s7083_s3 + $0x218] sm:$0xff] }
 0x368   :  { %v1805_v63 = vmul.f32 %v6038_v44, %v6101_v25  ;;  %v6229_v9 = vadd.f32 %v1875_v11, %v1654_v34  ;;  %v6231_v61 = vadd.f32 %v1876_v51, %v1655_v32  ;;  %v6235_v41 = vadd.f32 %v1878_v4, %v1657_v27  ;;  %v8091_v25 = vld [vmem:[#allocation56_spill] sm:$0xff]  ;;  %v8092_v34 = vld [vmem:[#allocation35_spill] sm:$0xff]  ;;  %v8093_v11 = vld [vmem:[#allocation57_spill] sm:$0xff] }
 0x369   :  { %v6233_v46 = vadd.f32 %v1877_v35, %v1656_v7  ;;  %v1883_v1 = vmul.f32 %v1848_v0, %v1802_v3  ;;  %v1884_v6 = vmul.f32 %v1848_v0, %v1803_v17  ;;  %v1885_v18 = vmul.f32 %v1848_v0, %v1804_v13  ;;  %v8094_v4 = vld [vmem:[#allocation27_spill] sm:$0xff]  ;;  %v8101_v17 = vld [vmem:[#allocation100_spill] sm:$0xff] }
 0x36a   :  { %v1886_v45 = vmul.f32 %v1848_v0, %v1805_v63  ;;  %v1565_v60 = vmul.f32 %v8005_v29, %v1520_v59  ;;  %v1676_v5 = vadd.f32 %v8091_v25, %v1423_v12  ;;  %v1677_v52 = vadd.f32 %v8092_v34, %v1424_v38  ;;  %2358 = vperm.xlu1 %2867, %v2832_v55   ;;  %v8095_v12 = vld [vmem:[#allocation77_spill] sm:$0xff]  ;;  %v8096_v59 = vld [vmem:[#allocation75_spill] sm:$0xff]  ;;  %v8102_v63 = vld [vmem:[#allocation96_spill] sm:$0xff] }
 0x36b   :  { %v1666_v32 = vadd.f32 %v1634_v22, %v6000_v49  ;;  %v6244_v35 = vadd.f32 %v1883_v1, %v1662_v33  ;;  %v6246_v7 = vadd.f32 %v1884_v6, %v1663_v40  ;;  %v6248_v27 = vadd.f32 %v1885_v18, %v1664_v28  ;;  %v8097_v33 = vld [vmem:[#allocation13_spill] sm:$0xff]  ;;  %v8100_v22 = vld [vmem:[#allocation99_spill] sm:$0xff]  ;;  %v8103_v55 = vld [vmem:[#allocation10_spill] sm:$0xff]  ;;  %v6271_v6 = vpop.permute.xlu2 %1955 }
 0x36c   :  { %v6250_v58 = vadd.f32 %v1886_v45, %v1665_v21  ;;  %v1806_v51 = vmul.f32 %v5913_v16, %v8093_v11  ;;  %v1809_v29 = vmul.f32 %v6038_v44, %v8094_v4  ;;  %v1807_v38 = vmul.f32 %v5927_v10, %v8095_v12  ;;  %2226 = vrot.lane.b32.xlu2 %v8097_v33, %s2938_s21  ;;  %v8098_v40 = vld [vmem:[#allocation217_spill] sm:$0xff]  ;;  %v8099_v21 = vld [vmem:[#allocation132_spill] sm:$0xff]  ;;  %v1853_v1 = vpop.permute.xlu1 %1852 }
 0x36d   :  { %v1808_v49 = vmul.f32 %v6041_v8, %v8096_v59  ;;  %v1667_v28 = vadd.f32 %v8098_v40, %v5919_v20  ;;  %v1668_v3 = vadd.f32 %v8100_v22, %v8099_v21  ;;  %v1669_v13 = vadd.f32 %v8101_v17, %v6003_v23  ;;  %2194 = vrot.lane.b32.xlu0 %v8103_v55, %s2938_s21  ;;  %v8104_v11 = vld [vmem:[#allocation125_spill] sm:$0xff]  ;;  %v8105_v4 = vld [vmem:[#allocation40_spill] sm:$0xff]  ;;  %v1863_v59 = vpop.permute.xlu0 %1862 }
 0x36e   :  { %v1646_v0 = vmul.f32 %v8102_v63, %v1565_v60  ;;  %v1887_v18 = vmul.f32 %v1853_v1, %v1806_v51  ;;  %v1888_v45 = vmul.f32 %v1853_v1, %v1807_v38  ;;  %v1890_v34 = vmul.f32 %v1853_v1, %v1809_v29  ;;  %v8106_v17 = vld [vmem:[#allocation44_spill] sm:$0xff]  ;;  %v8107_v63 = vld [vmem:[#allocation71_spill] sm:$0xff]  ;;  %v8109_v55 = vld [vmem:[#allocation69_spill] sm:$0xff] }
 0x36f   :  { %v1889_v25 = vmul.f32 %v1853_v1, %v1808_v49  ;;  %v1814_v20 = vmul.f32 %v5913_v16, %v8104_v11  ;;  %v1815_v12 = vmul.f32 %v5927_v10, %v8105_v4  ;;  %v1816_v23 = vmul.f32 %v6041_v8, %v6161_v42  ;;  %v2820_v42 = vld [vmem:[%s7083_s3 + $0x1c0] sm:$0xff]  ;;  %v8116_v11 = vld [vmem:[#allocation95_spill] sm:$0xff] }
 0x370   :  { %v1817_v60 = vmul.f32 %v6038_v44, %v6166_v19  ;;  %v6281_v33 = vadd.f32 %v1887_v18, %v1666_v32  ;;  %v6283_v40 = vadd.f32 %v1888_v45, %v1667_v28  ;;  %v6287_v29 = vadd.f32 %v1890_v34, %v1669_v13  ;;  %v8108_v28 = vld [vmem:[#allocation127_spill] sm:$0xff] }
 0x371   :  { %v6285_v51 = vadd.f32 %v1889_v25, %v1668_v3  ;;  %v1895_v38 = vmul.f32 %v1863_v59, %v1814_v20  ;;  %v1896_v49 = vmul.f32 %v1863_v59, %v1815_v12  ;;  %v1897_v21 = vmul.f32 %v1863_v59, %v1816_v23  ;;  %v8111_v18 = vld [vmem:[#allocation55_spill] sm:$0xff]  ;;  %v8117_v20 = vld [vmem:[#allocation130_spill] sm:$0xff]  ;;  %v8120_v23 = vld [vmem:[#allocation117_spill] sm:$0xff] }
 0x372   :  { %v1898_v22 = vmul.f32 %v1863_v59, %v1817_v60  ;;  %v1428_v19 = vadd.f32 %v6009_v62, %v8106_v17  ;;  %v1426_v32 = vadd.f32 %v5994_v39, %v8107_v63  ;;  %v1427_v3 = vadd.f32 %v5997_v15, %v8108_v28  ;;  %v8115_v62 = vld [vmem:[#allocation8_spill] sm:$0xff]  ;;  %v8121_v59 = vld [vmem:[#allocation9_spill] sm:$0xff]  ;;  %v8124_v63 = vld [vmem:[#allocation22_spill] sm:$0xff] }
 0x373   :  { %v1678_v13 = vadd.f32 %v1646_v0, %v6012_v56  ;;  %v6300_v1 = vadd.f32 %v1895_v38, %v8109_v55  ;;  %v6303_v45 = vadd.f32 %v1896_v49, %v8111_v18  ;;  %v6305_v25 = vadd.f32 %v1897_v21, %v1676_v5  ;;  %2224 = vrot.lane.b32.xlu1 %v8115_v62, %s2938_s21  ;;  %v8118_v5 = vld [vmem:[#allocation103_spill] sm:$0xff]  ;;  %v2829_v55 = vld [vmem:[%s7083_s3 + $0x200] sm:$0xff]  ;;  %v8126_v18 = vld [vmem:[#allocation6_spill] sm:$0xff] }
 0x374   :  { %v6307_v34 = vadd.f32 %v1898_v22, %v1677_v52  ;;  %v1818_v39 = vmul.f32 %v5913_v16, %v8116_v11  ;;  %v1821_v15 = vmul.f32 %v6038_v44, %v8117_v20  ;;  %v1819_v56 = vmul.f32 %v5927_v10, %v5969_v47  ;;  %2090 = vperm.xlu2 %2868, %v2820_v42   ;;  %v8119_v52 = vld [vmem:[#allocation104_spill] sm:$0xff]  ;;  %v1868_v16 = vpop.permute.xlu1 %1867  ;;  %v6325_v44 = vpop.permute.xlu2 %1961  ;;  %v2830_v20 = vld [vmem:[%s7083_s3 + $0x208] sm:$0xff] }
 0x375   :  { %8110 = vst [vmem:[#allocation131_spill] sm:$0xff] %v6300_v1  ;;  %v1820_v0 = vmul.f32 %v6041_v8, %v5964_v26  ;;  %v1679_v4 = vadd.f32 %v8118_v5, %v1426_v32  ;;  %v1680_v12 = vadd.f32 %v8119_v52, %v1427_v3  ;;  %v1681_v60 = vadd.f32 %v8120_v23, %v1428_v19  ;;  %v6327_v26 = vpop.permute.xlu0 %1939  ;;  %v2821_v19 = vld [vmem:[%s7083_s3 + $0x1c8] sm:$0xff]  ;;  %v8131_v23 = vld [vmem:[#allocation48_spill] sm:$0xff] }
 0x376   :  { %8112 = vst [vmem:[#allocation85_spill] sm:$0xff] %v6303_v45  ;;  %2240 = vrot.lane.b32.xlu0 %v8121_v59, %s2938_s21  ;;  %v1899_v38 = vmul.f32 %v1868_v16, %v1818_v39  ;;  %v1900_v10 = vmul.f32 %v1868_v16, %v1819_v56  ;;  %v1902_v49 = vmul.f32 %v1868_v16, %v1821_v15  ;;  %v8128_v15 = vld [vmem:[#allocation58_spill] sm:$0xff]  ;;  %v8129_v56 = vld [vmem:[#allocation12_spill] sm:$0xff] }
 0x377   :  { %8113 = vst [vmem:[#allocation150_spill] sm:$0xff] %v6305_v25  ;;  %v1901_v47 = vmul.f32 %v1868_v16, %v1820_v0  ;;  %v6341_v17 = vsel %vm2003_vm7, %v6327_v26, %v6271_v6  ;;  %v8133_v59 = vld [vmem:[#allocation42_spill] sm:$0xff]  ;;  %v2836_v45 = vld [vmem:[%s7083_s3 + $0x238] sm:$0xff] }
 0x378   :  { %8114 = vst [vmem:[#allocation138_spill] sm:$0xff] %v6307_v34  ;;  %v6329_v8 = vadd.f32 %v1899_v38, %v1678_v13  ;;  %v6331_v21 = vadd.f32 %v1900_v10, %v1679_v4  ;;  %v6335_v42 = vadd.f32 %v1902_v49, %v1681_v60  ;;  %v8132_v60 = vld [vmem:[#allocation47_spill] sm:$0xff]  ;;  %v2819_v34 = vld [vmem:[%s7087_s7 + $0x1c] sm:$0xf] }
 0x379   :  { %v6333_v22 = vadd.f32 %v1901_v47, %v1680_v12  ;;  %v6481_v25 = vperm.slane %v2819_v34, 0  ;;  %v6483_v48 = vperm.slane %v2819_v34, 1 }
 0x37a   :  { %8123 = vst [vmem:[#allocation86_spill] sm:$0xff] %v6335_v42 }
 0x37b   :  { %8122 = vst [vmem:[#allocation120_spill] sm:$0xff] %v6333_v22  ;;  %2242 = vrot.lane.b32.xlu1 %v8017_v2, %s2938_s21  ;;  %v8125_v2 = vld [vmem:[#allocation17_spill] sm:$0xff] }
 0x37c   :  { %2214 = vrot.lane.b32.xlu2 %v8124_v63, %s2938_s21  ;;  %v6350_v32 = vpop.permute.xlu1 %1941  ;;  %v6352_v28 = vpop.permute.xlu2 %1967  ;;  %v8136_v63 = vld [vmem:[#allocation50_spill] sm:$0xff]  ;;  %8143 = vst [vmem:[#allocation143_spill] sm:$0xff] %v6483_v48 }
 0x37d   :  { %v6354_v3 = vpop.permute.xlu0 %1945 }
 0x37e   :  { %2095 = vperm.xlu0 %2866, %v2821_v19   ;;  %v2023_v13 = vsel %vm2003_vm7, %v6354_v3, %v6325_v44 }
 0x383   :  { %2212 = vrot.lane.b32.xlu1 %v8125_v2, %s2938_s21 }
 0x384   :  { %2208 = vrot.lane.b32.xlu2 %v8126_v18, %s2938_s21  ;;  %v6367_v62 = vpop.permute.xlu1 %1947  ;;  %v6369_v11 = vpop.permute.xlu2 %1973 }
 0x385   :  { %8127 = vst [vmem:[#allocation84_spill] sm:$0xff] %v6367_v62  ;;  %v6371_v39 = vpop.permute.xlu0 %1951 }
 0x386   :  { %2343 = vperm.xlu0 %2866, %v2829_v55   ;;  %v8137_v55 = vld [vmem:[#allocation54_spill] sm:$0xff] }
 0x38b   :  { %2348 = vperm.xlu1 %2867, %v2830_v20  }
 0x38c   :  { %2001 = vrot.lane.b32.xlu2 %v8128_v15, %s2937_s14  ;;  %v6380_v0 = vpop.permute.xlu1 %1953 }
 0x38d   :  { %v6382_v5 = vpop.permute.xlu2 %1979  ;;  %v1958_v4 = vpop.permute.xlu0 %1957 }
 0x38e   :  { %2210 = vrot.lane.b32.xlu0 %v8129_v56, %s2938_s21  ;;  %8130 = vst [vmem:[#allocation139_spill] sm:$0xff] %v6382_v5  ;;  %v6387_v52 = vsel %vm2003_vm7, %v1958_v4, %v6369_v11  ;;  %v6392_v12 = vsel %vm2003_vm7, %v6350_v32, %v1958_v4 }
 0x393   :  { %1999 = vrot.lane.b32.xlu1 %v8131_v23, %s2937_s14 }
 0x394   :  { %2236 = vrot.lane.b32.xlu2 %v8132_v60, %s2938_s21  ;;  %v1960_v16 = vpop.permute.xlu1 %1959  ;;  %v8139_v60 = vld [vmem:[#allocation31_spill] sm:$0xff] }
 0x395   :  { %v6400_v38 = vpop.permute.xlu2 %1985  ;;  %v6405_v10 = vsel %vm2003_vm7, %v6156_v53, %v1960_v16  ;;  %v1964_v47 = vpop.permute.xlu0 %1963 }
 0x396   :  { %2204 = vrot.lane.b32.xlu0 %v8133_v59, %s2938_s21  ;;  %v6410_v49 = vsel %vm2003_vm7, %v1964_v47, %v6382_v5  ;;  %v6415_v19 = vsel %vm2003_vm7, %v6367_v62, %v1964_v47 }
 0x397   :  { %8134 = vst [vmem:[#allocation136_spill] sm:$0xff] %v6410_v49  ;;  %v8145_v49 = vld [vmem:[#allocation25_spill] sm:$0xff] }
 0x398   :  { %8135 = vst [vmem:[#allocation140_spill] sm:$0xff] %v6415_v19 }
 0x39b   :  { %2206 = vrot.lane.b32.xlu1 %v8136_v63, %s2938_s21 }
 0x39c   :  { %2254 = vrot.lane.b32.xlu2 %v8128_v15, %s2938_s21  ;;  %v1966_v2 = vpop.permute.xlu1 %1965  ;;  %v2826_v15 = vld [vmem:[%s7083_s3 + $0x1f0] sm:$0xff] }
 0x39d   :  { %v1992_v18 = vpop.permute.xlu2 %1991  ;;  %v6426_v20 = vsel %vm2003_vm7, %v6219_v50, %v1966_v2  ;;  %v6433_v4 = vpop.permute.xlu0 %1969  ;;  %v2059_v50 = vmul.f32 %v6481_v25, %v2023_v13 }
 0x39e   :  { %2238 = vrot.lane.b32.xlu0 %v8137_v55, %s2938_s21  ;;  %8138 = vst [vmem:[#allocation142_spill] sm:$0xff] %v6426_v20  ;;  %v6431_v56 = vsel %vm2003_vm7, %v1992_v18, %v6156_v53 }
 0x3a3   :  { %2252 = vrot.lane.b32.xlu1 %v8131_v23, %s2938_s21 }
 0x3a4   :  { %1995 = vrot.lane.b32.xlu2 %v8139_v60, %s2937_s14  ;;  %v1972_v59 = vpop.permute.xlu1 %1971 }
 0x3a5   :  { %v6442_v47 = vpop.permute.xlu2 %2198  ;;  %v6447_v53 = vsel %vm2003_vm7, %v6271_v6, %v1972_v59  ;;  %v1976_v63 = vpop.permute.xlu0 %1975  ;;  %v8140_v6 = vld [vmem:[#allocation37_spill] sm:$0xff] }
 0x3a6   :  { %2120 = vperm.xlu0 %2866, %v2826_v15   ;;  %v6451_v55 = vsel %vm2003_vm7, %v1976_v63, %v1992_v18  ;;  %v6455_v23 = vsel %vm2003_vm7, %v1960_v16, %v1976_v63  ;;  %v2827_v15 = vld [vmem:[%s7083_s3 + $0x1f8] sm:$0xff] }
 0x3ab   :  { %2125 = vperm.xlu1 %2867, %v2827_v15  }
 0x3ac   :  { %2378 = vperm.xlu2 %2868, %v2836_v45   ;;  %v1978_v1 = vpop.permute.xlu1 %1977  ;;  %v2835_v45 = vld [vmem:[%s7083_s3 + $0x230] sm:$0xff] }
 0x3ad   :  { %v2245_v18 = vpop.permute.xlu2 %2244  ;;  %v2015_v16 = vsel %vm2003_vm7, %v6325_v44, %v1978_v1  ;;  %v6468_v63 = vpop.permute.xlu0 %1981  ;;  %v8144_v44 = vld [vmem:[#allocation28_spill] sm:$0xff] }
 0x3ae   :  { %1997 = vrot.lane.b32.xlu0 %v8140_v6, %s2937_s14  ;;  %8141 = vst [vmem:[#allocation141_spill] sm:$0xff] %v6468_v63  ;;  %v6476_v15 = vsel %vm2003_vm7, %v1966_v2, %v6468_v63  ;;  %v2060_v20 = vmul.f32 %v6483_v48, %v2015_v16 }
 0x3af   :  { %8142 = vst [vmem:[#allocation123_spill] sm:$0xff] %v6476_v15 }
 0x3b3   :  { %2373 = vperm.xlu1 %2867, %v2835_v45  }
 0x3b4   :  { %2232 = vrot.lane.b32.xlu2 %v8144_v44, %s2938_s21  ;;  %v6491_v2 = vpop.permute.xlu1 %1983 }
 0x3b5   :  { %v2106_v63 = vpop.permute.xlu2 %2105 }
 0x3b6   :  { %2200 = vrot.lane.b32.xlu0 %v8145_v49, %s2938_s21  ;;  %v2140_v15 = vmul.f32 %v2106_v63, %v2059_v50  ;;  %v2141_v19 = vmul.f32 %v2106_v63, %v2060_v20  ;;  %v1988_v62 = vpop.permute.xlu0 %1987  ;;  %v8146_v49 = vld [vmem:[#allocation33_spill] sm:$0xff]  ;;  %v8147_v50 = vld [vmem:[#allocation38_spill] sm:$0xff] }
 0x3b7   :  { %v2004_v5 = vsel %vm2003_vm7, %v1972_v59, %v1988_v62  ;;  %v2028_v45 = vsel %vm2003_vm7, %v1988_v62, %v6327_v26  ;;  %v6522_v26 = vperm.slane %v2819_v34, 3  ;;  %v6524_v62 = vperm.slane %v2819_v34, 2 }
 0x3b8   :  { %v6499_v13 = vadd.f32 %v2140_v15, %v6281_v33  ;;  %v6502_v16 = vadd.f32 %v2141_v19, %v6283_v40 }
 0x3bb   :  { %2202 = vrot.lane.b32.xlu1 %v8146_v49, %s2938_s21 }
 0x3bc   :  { %2250 = vrot.lane.b32.xlu2 %v8140_v6, %s2938_s21  ;;  %v1990_v20 = vpop.permute.xlu1 %1989 }
 0x3bd   :  { %v6515_v33 = vsel %vm2003_vm7, %v6369_v11, %v1990_v20  ;;  %v6520_v40 = vsel %vm2003_vm7, %v1990_v20, %v6350_v32  ;;  %v2824_v32 = vld [vmem:[%s7083_s3 + $0x1e0] sm:$0xff] }
 0x3be   :  { %2234 = vrot.lane.b32.xlu0 %v8147_v50, %s2938_s21  ;;  %v6510_v59 = vpop.permute.xlu2 %2192  ;;  %v1994_v19 = vpop.permute.xlu0 %1993 }
 0x3bf   :  { %v2007_v6 = vsel %vm2003_vm7, %v1978_v1, %v1994_v19  ;;  %v2031_v15 = vsel %vm2003_vm7, %v1994_v19, %v6354_v3  ;;  %v8148_v1 = vld [vmem:[#allocation43_spill] sm:$0xff] }
 0x3c0   :  { %v2061_v11 = vmul.f32 %v6524_v62, %v2007_v6  ;;  %v2062_v44 = vmul.f32 %v6522_v26, %v2031_v15  ;;  %v2047_v15 = vmul.f32 %v6481_v25, %v6341_v17  ;;  %v2828_v17 = vld [vmem:[%s7087_s7 + $0x20] sm:$0xf] }
 0x3c2   :  { %v2142_v49 = vmul.f32 %v2106_v63, %v2061_v11  ;;  %v2143_v50 = vmul.f32 %v2106_v63, %v2062_v44  ;;  %v2048_v11 = vmul.f32 %v6483_v48, %v6447_v53  ;;  %v2049_v44 = vmul.f32 %v6524_v62, %v2004_v5  ;;  %v2833_v5 = vld [vmem:[%s7083_s3 + $0x220] sm:$0xff] }
 0x3c3   :  { %2248 = vrot.lane.b32.xlu1 %v8139_v60, %s2938_s21 }
 0x3c4   :  { %2220 = vrot.lane.b32.xlu2 %v8148_v1, %s2938_s21  ;;  %v6542_v34 = vadd.f32 %v2142_v49, %v6285_v51  ;;  %v6545_v3 = vadd.f32 %v2143_v50, %v6287_v29  ;;  %v6547_v20 = vpop.permute.xlu1 %2196  ;;  %v2825_v51 = vld [vmem:[%s7083_s3 + $0x1e8] sm:$0xff] }
 0x3c5   :  { %v2283_v60 = vsel %vm2256_vm8, %v2245_v18, %v6547_v20  ;;  %v2834_v29 = vld [vmem:[%s7083_s3 + $0x228] sm:$0xff] }
 0x3c6   :  { %2110 = vperm.xlu0 %2866, %v2824_v32   ;;  %v6549_v19 = vpop.permute.xlu2 %2226  ;;  %v6554_v63 = vpop.permute.xlu0 %2228  ;;  %v8149_v32 = vld [vmem:[#allocation52_spill] sm:$0xff] }
 0x3c7   :  { %v2259_v6 = vsel %vm2256_vm8, %v6554_v63, %v2245_v18  ;;  %v2050_v18 = vmul.f32 %v6522_v26, %v2028_v45 }
 0x3cb   :  { %2115 = vperm.xlu1 %2867, %v2825_v51  }
 0x3cc   :  { %2368 = vperm.xlu2 %2868, %v2834_v29   ;;  %v2231_v49 = vpop.permute.xlu1 %2230 }
 0x3ce   :  { %2222 = vrot.lane.b32.xlu0 %v8149_v32, %s2938_s21  ;;  %v2091_v50 = vpop.permute.xlu2 %2090  ;;  %v2247_v29 = vpop.permute.xlu0 %2246  ;;  %v6596_v32 = vperm.slane %v2828_v17, 2 }
 0x3cf   :  { %v2128_v1 = vmul.f32 %v2091_v50, %v2047_v15  ;;  %v2129_v42 = vmul.f32 %v2091_v50, %v2048_v11  ;;  %v2130_v22 = vmul.f32 %v2091_v50, %v2049_v44  ;;  %v2131_v51 = vmul.f32 %v2091_v50, %v2050_v18  ;;  %v2615_v44 = vld [vmem:[%s7086_s6] sm:$0xff] }
 0x3d0   :  { %v6594_v18 = vperm.slane %v2828_v17, 3  ;;  %v6610_v50 = vperm.slane %v2828_v17, 1 }
 0x3d1   :  { %v6580_v53 = vadd.f32 %v2128_v1, %v6229_v9  ;;  %v6583_v45 = vadd.f32 %v2129_v42, %v6231_v61  ;;  %v6586_v15 = vadd.f32 %v2130_v22, %v6233_v46  ;;  %v6589_v11 = vadd.f32 %v2131_v51, %v6235_v41  ;;  %v8150_v22 = vld [vmem:[#allocation30_spill] sm:$0xff] }
 0x3d2   :  { %v2055_v9 = vmul.f32 %v6481_v25, %v6405_v10  ;;  %v2058_v61 = vmul.f32 %v6522_v26, %v6431_v56  ;;  %v2056_v46 = vmul.f32 %v6483_v48, %v6455_v23  ;;  %v2057_v41 = vmul.f32 %v6524_v62, %v6451_v55 }
 0x3d3   :  { %2363 = vperm.xlu1 %2867, %v2833_v5   ;;  %v6608_v42 = vperm.slane %v2828_v17, 0  ;;  %v2311_v24 = vmul.f32 %v6594_v18, %v2283_v60  ;;  %v2310_v23 = vmul.f32 %v6596_v32, %v2259_v6  ;;  %v2260_v55 = vsel %vm2256_vm8, %v2231_v49, %v2247_v29 }
 0x3d4   :  { %2619 = vperm.xlu2 %2868, %v2615_v44   ;;  %v2101_v1 = vpop.permute.xlu1 %2100  ;;  %v2284_v44 = vsel %vm2256_vm8, %v2247_v29, %v6442_v47 }
 0x3d5   :  { %v2136_v10 = vmul.f32 %v2101_v1, %v2055_v9  ;;  %v2137_v5 = vmul.f32 %v2101_v1, %v2056_v46  ;;  %v2138_v43 = vmul.f32 %v2101_v1, %v2057_v41  ;;  %v2139_v56 = vmul.f32 %v2101_v1, %v2058_v61 }
 0x3d6   :  { %2216 = vrot.lane.b32.xlu0 %v8150_v22, %s2938_s21  ;;  %v2215_v51 = vpop.permute.xlu2 %2214  ;;  %v6619_v22 = vpop.permute.xlu0 %2353 }
 0x3d7   :  { %v2268_v17 = vsel %vm2256_vm8, %v2215_v51, %v2231_v49  ;;  %v2276_v9 = vsel %vm2256_vm8, %v6442_v47, %v2215_v51  ;;  %v6627_v60 = vadd.f32 %v2136_v10, %v6244_v35  ;;  %v6630_v6 = vadd.f32 %v2137_v5, %v6246_v7  ;;  %v2616_v49 = vld [vmem:[%s7086_s6 + $0x8] sm:$0xff]  ;;  %v8151_v35 = vld [vmem:[#allocation36_spill] sm:$0xff] }
 0x3d8   :  { %v2170_v61 = vadd.f32 %v2138_v43, %v6248_v27  ;;  %v2171_v46 = vadd.f32 %v2139_v56, %v6250_v58  ;;  %v2391_v29 = vmul.f32 %v6619_v22, %v2310_v23  ;;  %v2392_v41 = vmul.f32 %v6619_v22, %v2311_v24 }
 0x3d9   :  { %v2314_v7 = vmul.f32 %v6596_v32, %v2260_v55  ;;  %v2315_v43 = vmul.f32 %v6594_v18, %v2284_v44  ;;  %v2312_v27 = vmul.f32 %v6608_v42, %v2276_v9  ;;  %v2313_v58 = vmul.f32 %v6610_v50, %v2268_v17 }
 0x3da   :  { %v6639_v1 = vadd.f32 %v2391_v29, %v2170_v61  ;;  %v6641_v47 = vadd.f32 %v2392_v41, %v2171_v46 }
 0x3db   :  { %2218 = vrot.lane.b32.xlu1 %v8151_v35, %s2938_s21 }
 0x3dc   :  { %v2359_v24 = vpop.permute.xlu1 %2358 }
 0x3dd   :  { %v2393_v10 = vmul.f32 %v2359_v24, %v2312_v27  ;;  %v2394_v5 = vmul.f32 %v2359_v24, %v2313_v58  ;;  %v2395_v56 = vmul.f32 %v2359_v24, %v2314_v7  ;;  %v2396_v23 = vmul.f32 %v2359_v24, %v2315_v43 }
 0x3de   :  { %2624 = vperm.xlu0 %2866, %v2616_v49   ;;  %v2209_v51 = vpop.permute.xlu2 %2208  ;;  %v2054_v7 = vmul.f32 %v6522_v26, %v6520_v40 }
 0x3df   :  { %v6649_v61 = vpop.permute.xlu0 %2194  ;;  %v6652_v46 = vadd.f32 %v2393_v10, %v6499_v13  ;;  %v6655_v55 = vadd.f32 %v2394_v5, %v6502_v16  ;;  %v6658_v44 = vadd.f32 %v2395_v56, %v6542_v34  ;;  %v6661_v17 = vadd.f32 %v2396_v23, %v6545_v3 }
 0x3e0   :  { %v2051_v16 = vmul.f32 %v6481_v25, %v6392_v12  ;;  %v2052_v34 = vmul.f32 %v6483_v48, %v6387_v52  ;;  %v2053_v3 = vmul.f32 %v6524_v62, %v6515_v33  ;;  %v2273_v33 = vsel %vm2256_vm8, %v6510_v59, %v2209_v51 }
 0x3e1   :  { %8152 = vst [vmem:[#allocation144_spill] sm:$0xff] %v6655_v55 }
 0x3e5   :  { %v2225_v9 = vpop.permute.xlu1 %2224 }
 0x3e6   :  { %v6663_v29 = vpop.permute.xlu2 %2001  ;;  %v2265_v40 = vsel %vm2256_vm8, %v2209_v51, %v2225_v9 }
 0x3e7   :  { %v2301_v51 = vmul.f32 %v6610_v50, %v2265_v40 }
 0x3e8   :  { %v2241_v41 = vpop.permute.xlu0 %2240 }
 0x3e9   :  { %v2257_v49 = vsel %vm2256_vm8, %v2225_v9, %v2241_v41  ;;  %v2281_v13 = vsel %vm2256_vm8, %v2241_v41, %v6510_v59  ;;  %v2300_v59 = vmul.f32 %v6608_v42, %v2273_v33 }
 0x3ed   :  { %v2243_v35 = vpop.permute.xlu1 %2242 }
 0x3ee   :  { %v6678_v43 = vpop.permute.xlu2 %2236  ;;  %v2258_v27 = vsel %vm2256_vm8, %v6549_v19, %v2243_v35  ;;  %v2282_v12 = vsel %vm2256_vm8, %v2243_v35, %v6649_v61  ;;  %v2472_v35 = vmul.f32 %v6641_v47, %v6641_v47 }
 0x3f0   :  { %v2096_v58 = vpop.permute.xlu0 %2095 }
 0x3f1   :  { %v2132_v24 = vmul.f32 %v2096_v58, %v2051_v16  ;;  %v2133_v52 = vmul.f32 %v2096_v58, %v2052_v34  ;;  %v2134_v10 = vmul.f32 %v2096_v58, %v2053_v3  ;;  %v2135_v5 = vmul.f32 %v2096_v58, %v2054_v7 }
 0x3f2   :  { %v2471_v34 = vmul.f32 %v6639_v1, %v6639_v1 }
 0x3f3   :  { %v6692_v56 = vadd.f32 %v2132_v24, %v5977_v57  ;;  %v6695_v23 = vadd.f32 %v2133_v52, %v5979_v14  ;;  %v2166_v41 = vadd.f32 %v2134_v10, %v6080_v37  ;;  %v2167_v16 = vadd.f32 %v2135_v5, %v6082_v54 }
 0x3f4   :  { %v2302_v57 = vmul.f32 %v6596_v32, %v2257_v49  ;;  %v2303_v14 = vmul.f32 %v6594_v18, %v2281_v13  ;;  %v2487_v52 = vmul.f32 %v2471_v34, %v6639_v1  ;;  %v2488_v49 = vmul.f32 %v2472_v35, %v6641_v47 }
 0x3f5   :  { %v2213_v9 = vpop.permute.xlu1 %2212 }
 0x3f6   :  { %v6707_v3 = vpop.permute.xlu2 %2254  ;;  %v2267_v37 = vsel %vm2256_vm8, %v2213_v9, %v6554_v63  ;;  %v2275_v54 = vsel %vm2256_vm8, %v6547_v20, %v2213_v9  ;;  %v2475_v20 = vmul.f32 %v6658_v44, %v6658_v44  ;;  %v2476_v9 = vmul.f32 %v6661_v17, %v6661_v17 }
 0x3f7   :  { %v2308_v7 = vmul.f32 %v6608_v42, %v2275_v54  ;;  %v2309_v58 = vmul.f32 %v6610_v50, %v2267_v37  ;;  %v2504_v54 = vmul.f32 0.044715, %v2488_v49 }
 0x3f8   :  { %v2344_v24 = vpop.permute.xlu0 %2343 }
 0x3f9   :  { %v2381_v13 = vmul.f32 %v2344_v24, %v2300_v59  ;;  %v2382_v10 = vmul.f32 %v2344_v24, %v2301_v51  ;;  %v2383_v5 = vmul.f32 %v2344_v24, %v2302_v57  ;;  %v2384_v33 = vmul.f32 %v2344_v24, %v2303_v14 }
 0x3fa   :  { %v2389_v40 = vmul.f32 %v6619_v22, %v2308_v7  ;;  %v2390_v63 = vmul.f32 %v6619_v22, %v2309_v58  ;;  %v2306_v57 = vmul.f32 %v6596_v32, %v2258_v27  ;;  %v2503_v14 = vmul.f32 0.044715, %v2487_v52 }
 0x3fb   :  { %v6726_v37 = vadd.f32 %v2381_v13, %v6580_v53  ;;  %v6729_v34 = vadd.f32 %v2382_v10, %v6583_v45  ;;  %v6732_v35 = vadd.f32 %v2383_v5, %v6586_v15  ;;  %v6735_v59 = vadd.f32 %v2384_v33, %v6589_v11 }
 0x3fc   :  { %v6738_v22 = vadd.f32 %v2389_v40, %v6627_v60  ;;  %v6741_v51 = vadd.f32 %v2390_v63, %v6630_v6  ;;  %v2307_v53 = vmul.f32 %v6594_v18, %v2282_v12  ;;  %v2491_v7 = vmul.f32 %v2475_v20, %v6658_v44 }
 0x3fd   :  { %v2349_v45 = vpop.permute.xlu1 %2348  ;;  %v2492_v24 = vmul.f32 %v2476_v9, %v6661_v17  ;;  %v2473_v6 = vmul.f32 %v6652_v46, %v6652_v46  ;;  %v2519_v12 = vadd.f32 %v2503_v14, %v6639_v1  ;;  %v2520_v52 = vadd.f32 %v2504_v54, %v6641_v47 }
 0x3fe   :  { %v6746_v15 = vpop.permute.xlu2 %1995  ;;  %v2387_v58 = vmul.f32 %v2349_v45, %v2306_v57  ;;  %v2388_v11 = vmul.f32 %v2349_v45, %v2307_v53  ;;  %v2507_v5 = vmul.f32 0.044715, %v2491_v7  ;;  %v2474_v33 = vmul.f32 %v6655_v55, %v6655_v55 }
 0x3ff   :  { %v2508_v40 = vmul.f32 0.044715, %v2492_v24  ;;  %v2535_v9 = vmul.f32 0.7978846, %v2519_v12  ;;  %v2489_v57 = vmul.f32 %v2473_v6, %v6652_v46  ;;  %v2536_v14 = vmul.f32 0.7978846, %v2520_v52 }
 0x400   :  { %v2211_v60 = vpop.permute.xlu0 %2210  ;;  %v6751_v13 = vadd.f32 %v2387_v58, %v2166_v41  ;;  %v6753_v27 = vadd.f32 %v2388_v11, %v2167_v16  ;;  %v2490_v54 = vmul.f32 %v2474_v33, %v6655_v55  ;;  %v2470_v24 = vmul.f32 %v6741_v51, %v6741_v51 }
 0x401   :  { %v2266_v49 = vsel %vm2256_vm8, %v2211_v60, %v6549_v19  ;;  %v2274_v10 = vsel %vm2256_vm8, %v6649_v61, %v2211_v60  ;;  %v2523_v19 = vadd.f32 %v2507_v5, %v6658_v44  ;;  %v2469_v61 = vmul.f32 %v6738_v22, %v6738_v22 }
 0x402   :  { %v2304_v41 = vmul.f32 %v6608_v42, %v2274_v10  ;;  %v2305_v16 = vmul.f32 %v6610_v50, %v2266_v49  ;;  %v2524_v11 = vadd.f32 %v2508_v40, %v6661_v17  ;;  %2869 = vtanh.f32 %v2535_v9 }
 0x403   :  { %v2539_v6 = vmul.f32 0.7978846, %v2523_v19  ;;  %2871 = vtanh.f32 %v2536_v14  ;;  %v2485_v12 = vmul.f32 %v2469_v61, %v6738_v22  ;;  %v2505_v52 = vmul.f32 0.044715, %v2489_v57 }
 0x404   :  { %v2385_v63 = vmul.f32 %v2349_v45, %v2304_v41  ;;  %v2386_v20 = vmul.f32 %v2349_v45, %v2305_v16  ;;  %v2486_v49 = vmul.f32 %v2470_v24, %v6741_v51  ;;  %v2026_v10 = vsel %vm2003_vm7, %v6371_v39, %v6352_v28 }
 0x405   :  { %v6768_v53 = vpop.permute.xlu1 %1999  ;;  %2873 = vtanh.f32 %v2539_v6  ;;  %v2501_v33 = vmul.f32 0.044715, %v2485_v12  ;;  %v2521_v41 = vadd.f32 %v2505_v52, %v6652_v46  ;;  %v2071_v19 = vmul.f32 %v6481_v25, %v2026_v10 }
 0x406   :  { %v6775_v7 = vadd.f32 %v2385_v63, %v6692_v56  ;;  %v6778_v58 = vadd.f32 %v2386_v20, %v6695_v23  ;;  %v6780_v45 = vpop.permute.xlu2 %2378  ;;  %v2540_v56 = vmul.f32 0.7978846, %v2524_v11  ;;  %v2506_v23 = vmul.f32 0.044715, %v2490_v54 }
 0x407   :  { %8153 = vst [vmem:[#allocation153_spill] sm:$0xff] %v6780_v45  ;;  %v2502_v63 = vmul.f32 0.044715, %v2486_v49  ;;  %v2019_v14 = vsel %vm2003_vm7, %v6433_v4, %v6400_v38  ;;  %v2027_v61 = vsel %vm2003_vm7, %v6380_v0, %v6433_v4  ;;  %v2018_v54 = vsel %vm2003_vm7, %v6352_v28, %v6491_v2 }
 0x408   :  { %v6785_v60 = vpop.permute.xlu0 %2204  ;;  %v2870_v16 = vpop.eup %2869  ;;  %2875 = vtanh.f32 %v2540_v56  ;;  %v2522_v20 = vadd.f32 %v2506_v23, %v6655_v55  ;;  %v2011_v11 = vsel %vm2003_vm7, %v6400_v38, %v6663_v29  ;;  %v2035_v24 = vsel %vm2003_vm7, %v6663_v29, %v6380_v0 }
 0x409   :  { %v2872_v9 = vpop.eup %2871  ;;  %v2517_v6 = vadd.f32 %v2501_v33, %v6738_v22  ;;  %v2537_v12 = vmul.f32 0.7978846, %v2521_v41  ;;  %v2567_v52 = vadd.f32 1.0, %v2870_v16  ;;  %v2518_v56 = vadd.f32 %v2502_v63, %v6741_v51 }
 0x40a   :  { %v2568_v4 = vadd.f32 1.0, %v2872_v9  ;;  %v2538_v49 = vmul.f32 0.7978846, %v2522_v20  ;;  %v2075_v28 = vmul.f32 %v6481_v25, %v2027_v61  ;;  %v2076_v10 = vmul.f32 %v6483_v48, %v2019_v14 }
 0x40b   :  { %v2874_v23 = vpop.eup %2873  ;;  %v2072_v38 = vmul.f32 %v6483_v48, %v2018_v54  ;;  %v2077_v0 = vmul.f32 %v6524_v62, %v2011_v11  ;;  %v2459_v29 = vmul.f32 0.5, %v6658_v44  ;;  %v2456_v33 = vmul.f32 0.5, %v6641_v47 }
 0x40c   :  { %v2460_v41 = vmul.f32 0.5, %v6661_v17  ;;  %v2078_v16 = vmul.f32 %v6522_v26, %v2035_v24  ;;  %v2533_v20 = vmul.f32 0.7978846, %v2517_v6  ;;  %2877 = vtanh.f32 %v2537_v12 }
 0x40d   :  { %v6793_v5 = vpop.permute.xlu1 %2206  ;;  %v2467_v9 = vmul.f32 %v6751_v13, %v6751_v13  ;;  %v6839_v61 = vmul.f32 %v2568_v4, %v2456_v33  ;;  %v2534_v54 = vmul.f32 0.7978846, %v2518_v56  ;;  %2879 = vtanh.f32 %v2538_v49 }
 0x40e   :  { %8154 = vst [vmem:[#allocation156_spill] sm:$0xff] %v6793_v5  ;;  %v6796_v40 = vpop.permute.xlu2 %2232  ;;  %v2876_v55 = vpop.eup %2875  ;;  %v2571_v47 = vadd.f32 1.0, %v2874_v23  ;;  %v2463_v17 = vmul.f32 %v6732_v35, %v6732_v35  ;;  %v2464_v24 = vmul.f32 %v6735_v59, %v6735_v59  ;;  %v2288_v6 = vsel %vm2256_vm8, %v6707_v3, %v6793_v5 }
 0x40f   :  { %8155 = vst [vmem:[#allocation145_spill] sm:$0xff] %v6796_v40  ;;  %v2455_v40 = vmul.f32 0.5, %v6639_v1  ;;  %v2572_v11 = vadd.f32 1.0, %v2876_v55  ;;  %v2010_v55 = vsel %vm2003_vm7, %v6491_v2, %v6768_v53  ;;  %2881 = vtanh.f32 %v2533_v20 }
 0x410   :  { %v6799_v57 = vpop.permute.xlu0 %2238  ;;  %v2483_v4 = vmul.f32 %v2467_v9, %v6751_v13  ;;  %v2468_v56 = vmul.f32 %v6753_v27, %v6753_v27  ;;  %v2034_v49 = vsel %vm2003_vm7, %v6768_v53, %v6371_v39  ;;  %2883 = vtanh.f32 %v2534_v54 }
 0x411   :  { %8156 = vst [vmem:[#allocation146_spill] sm:$0xff] %v6799_v57  ;;  %v6837_v1 = vmul.f32 %v2567_v52, %v2455_v40  ;;  %v2264_v40 = vsel %vm2256_vm8, %v6799_v57, %v6707_v3  ;;  %v2331_v2 = vmul.f32 %v6594_v18, %v2288_v6  ;;  %v2479_v33 = vmul.f32 %v2463_v17, %v6732_v35 }
 0x412   :  { %v6870_v23 = vpop.eup %2877  ;;  %v2480_v20 = vmul.f32 %v2464_v24, %v6735_v59  ;;  %v2587_v39 = vmul.f32 %v2571_v47, %v2459_v29  ;;  %v2588_v53 = vmul.f32 %v2572_v11, %v2460_v41  ;;  %v2073_v54 = vmul.f32 %v6524_v62, %v2010_v55 }
 0x413   :  { %v6876_v9 = vpop.eup %2879  ;;  %v2499_v6 = vmul.f32 0.044715, %v2483_v4  ;;  %v2412_v29 = vmul.f32 %v6780_v45, %v2331_v2  ;;  %v8158_v2 = vld [vmem:[#allocation116_spill] sm:$0xff]  ;;  %v2449_v30 = vmul.f32 0.5, %v6775_v7 }
 0x414   :  { %v2496_v47 = vmul.f32 0.044715, %v2480_v20 }
 0x415   :  { %v2253_v63 = vpop.permute.xlu1 %2252  ;;  %v2882_v48 = vpop.eup %2881 }
 0x416   :  { %v6835_v14 = vpop.permute.xlu2 %2250  ;;  %v2884_v11 = vpop.eup %2883  ;;  %v2263_v55 = vsel %vm2256_vm8, %v6678_v43, %v2253_v63 }
 0x417   :  { %8157 = vst [vmem:[#allocation147_spill] sm:$0xff] %v6835_v14 }
 0x418   :  { %v2121_v44 = vpop.permute.xlu0 %2120 }
 0x419   :  { %v2152_v12 = vmul.f32 %v2121_v44, %v2071_v19  ;;  %v2153_v52 = vmul.f32 %v2121_v44, %v2072_v38  ;;  %v2330_v38 = vmul.f32 %v6596_v32, %v2264_v40  ;;  %v2484_v40 = vmul.f32 %v2468_v56, %v6753_v27 }
 0x41b   :  { %v6865_v3 = vadd.f32 %v2152_v12, %v6329_v8  ;;  %v6868_v19 = vadd.f32 %v2153_v52, %v6331_v21  ;;  %v2453_v8 = vmul.f32 0.5, %v6738_v22  ;;  %v2454_v21 = vmul.f32 0.5, %v6741_v51 }
 0x41c   :  { %v2074_v12 = vmul.f32 %v6522_v26, %v2034_v49  ;;  %v2411_v22 = vmul.f32 %v6780_v45, %v2330_v38  ;;  %v2495_v51 = vmul.f32 0.044715, %v2479_v33  ;;  %v8159_v33 = vld [vmem:[#allocation80_spill] sm:$0xff]  ;;  %v2326_v45 = vmul.f32 %v6596_v32, %v2263_v55 }
 0x41d   :  { %v2126_v52 = vpop.permute.xlu1 %2125 }
 0x41e   :  { %v2221_v5 = vpop.permute.xlu2 %2220  ;;  %v2156_v17 = vmul.f32 %v2126_v52, %v2075_v28  ;;  %v2157_v57 = vmul.f32 %v2126_v52, %v2076_v10  ;;  %v2158_v24 = vmul.f32 %v2126_v52, %v2077_v0  ;;  %v2159_v14 = vmul.f32 %v2126_v52, %v2078_v16 }
 0x41f   :  { %v2287_v28 = vsel %vm2256_vm8, %v2253_v63, %v6785_v60  ;;  %v2154_v10 = vmul.f32 %v2121_v44, %v2073_v54  ;;  %v2155_v0 = vmul.f32 %v2121_v44, %v2074_v12  ;;  %v2271_v16 = vsel %vm2256_vm8, %v2221_v5, %v6678_v43 }
 0x420   :  { %v6885_v41 = vpop.permute.xlu0 %1997  ;;  %v2279_v4 = vsel %vm2256_vm8, %v6785_v60, %v2221_v5  ;;  %v2190_v56 = vadd.f32 %v2158_v24, %v6215_v31  ;;  %v2191_v49 = vadd.f32 %v2159_v14, %v6217_v36  ;;  %v6902_v38 = vadd.f32 %v2156_v17, %v8158_v2  ;;  %v8160_v14 = vld [vmem:[#allocation120_spill] sm:$0xff]  ;;  %v8161_v24 = vld [vmem:[#allocation86_spill] sm:$0xff] }
 0x421   :  { %v6905_v20 = vadd.f32 %v2157_v57, %v8159_v33  ;;  %v2515_v63 = vadd.f32 %v2499_v6, %v6751_v13  ;;  %v2500_v44 = vmul.f32 0.044715, %v2484_v40  ;;  %v2565_v43 = vadd.f32 1.0, %v2882_v48 }
 0x422   :  { %v2443_v54 = vadd.f32 %v2411_v22, %v2190_v56  ;;  %v2444_v12 = vadd.f32 %v2412_v29, %v2191_v49  ;;  %v2566_v52 = vadd.f32 1.0, %v2884_v11  ;;  %v2327_v60 = vmul.f32 %v6594_v18, %v2287_v28 }
 0x423   :  { %v2324_v31 = vmul.f32 %v6608_v42, %v2279_v4  ;;  %v2325_v36 = vmul.f32 %v6610_v50, %v2271_v16  ;;  %v2186_v17 = vadd.f32 %v2154_v10, %v8160_v14  ;;  %v2187_v2 = vadd.f32 %v2155_v0, %v8161_v24 }
 0x424   :  { %v2603_v57 = vmul.f32 %v2587_v39, %v2443_v54  ;;  %v2604_v6 = vmul.f32 %v2588_v53, %v2444_v12  ;;  %v2581_v55 = vmul.f32 %v2565_v43, %v2453_v8  ;;  %v2582_v56 = vmul.f32 %v2566_v52, %v2454_v21 }
 0x425   :  { %v2374_v5 = vpop.permute.xlu1 %2373  ;;  %v2516_v28 = vadd.f32 %v2500_v44, %v6753_v27  ;;  %v2461_v16 = vmul.f32 %v6726_v37, %v6726_v37  ;;  %v2511_v53 = vadd.f32 %v2495_v51, %v6732_v35  ;;  %v2531_v0 = vmul.f32 0.7978846, %v2515_v63 }
 0x426   :  { %v2405_v40 = vmul.f32 %v2374_v5, %v2324_v31  ;;  %v2406_v22 = vmul.f32 %v2374_v5, %v2325_v36  ;;  %v2407_v29 = vmul.f32 %v2374_v5, %v2326_v45  ;;  %v2408_v48 = vmul.f32 %v2374_v5, %v2327_v60 }
 0x427   :  { %v2462_v45 = vmul.f32 %v6729_v34, %v6729_v34  ;;  %v2512_v54 = vadd.f32 %v2496_v47, %v6735_v59  ;;  %v2466_v51 = vmul.f32 %v6778_v58, %v6778_v58  ;;  %v2532_v43 = vmul.f32 0.7978846, %v2516_v28 }
 0x428   :  { %v6914_v11 = vpop.permute.xlu0 %2200  ;;  %v2439_v4 = vadd.f32 %v2407_v29, %v2186_v17  ;;  %v2440_v49 = vadd.f32 %v2408_v48, %v2187_v2  ;;  %v2437_v39 = vadd.f32 %v2405_v40, %v6865_v3  ;;  %v2438_v10 = vadd.f32 %v2406_v22, %v6868_v19  ;;  %v8162_v2 = vld [vmem:[#allocation139_spill] sm:$0xff]  ;;  %v8163_v40 = vld [vmem:[#allocation84_spill] sm:$0xff] }
 0x429   :  { %v2465_v3 = vmul.f32 %v6775_v7, %v6775_v7  ;;  %v2477_v19 = vmul.f32 %v2461_v16, %v6726_v37  ;;  %v2527_v52 = vmul.f32 0.7978846, %v2511_v53  ;;  %2885 = vtanh.f32 %v2531_v0  ;;  %v8164_v29 = vld [vmem:[#allocation144_spill] sm:$0xff]  ;;  %v8169_v53 = vld [vmem:[#allocation123_spill] sm:$0xff] }
 0x42a   :  { %v2599_v8 = vmul.f32 %v6837_v1, %v2439_v4  ;;  %v2600_v21 = vmul.f32 %v6839_v61, %v2440_v49  ;;  %v6926_v33 = vmul.f32 %v2581_v55, %v2437_v39  ;;  %v6928_v44 = vmul.f32 %v2582_v56, %v2438_v10  ;;  %v8165_v56 = vld [vmem:[#allocation140_spill] sm:$0xff]  ;;  %v8167_v4 = vld [vmem:[#allocation143_spill] sm:$0xff]  ;;  %v8168_v39 = vld [vmem:[#allocation142_spill] sm:$0xff] }
 0x42b   :  { %v2478_v61 = vmul.f32 %v2462_v45, %v6729_v34  ;;  %v2528_v60 = vmul.f32 0.7978846, %v2512_v54  ;;  %v2481_v31 = vmul.f32 %v2465_v3, %v6775_v7  ;;  %v2493_v36 = vmul.f32 0.044715, %v2477_v19  ;;  %v8166_v16 = vld [vmem:[#allocation136_spill] sm:$0xff] }
 0x42c   :  { %v2613_v63 = vpack.c.bf16 %v2603_v57, %v2599_v8  ;;  %v2614_v12 = vpack.c.bf16 %v2604_v6, %v2600_v21  ;;  %v2482_v5 = vmul.f32 %v2466_v51, %v6778_v58  ;;  %2887 = vtanh.f32 %v2532_v43 }
 0x42d   :  { %v6936_v1 = vpop.permute.xlu1 %2202  ;;  %v2457_v14 = vmul.f32 0.5, %v6652_v46  ;;  %v2569_v17 = vadd.f32 1.0, %v6870_v23  ;;  %v2570_v57 = vadd.f32 1.0, %v6876_v9  ;;  %v2494_v24 = vmul.f32 0.044715, %v2478_v61 }
 0x42e   :  { %2670 = vmatpush.bf16.msrb.mxu2 %v2613_v63  ;;  %2684 = vmatpush.bf16.msrb.mxu3 %v2614_v12  ;;  %v2008_v6 = vsel %vm2003_vm7, %v8162_v2, %v6746_v15  ;;  %v2032_v22 = vsel %vm2003_vm7, %v6746_v15, %v8163_v40  ;;  %v2458_v48 = vmul.f32 0.5, %v8164_v29  ;;  %2889 = vtanh.f32 %v2527_v52 }
 0x42f   :  { %2891 = vtanh.f32 %v2528_v60  ;;  %v2497_v46 = vmul.f32 0.044715, %v2481_v31  ;;  %v2509_v23 = vadd.f32 %v2493_v36, %v6726_v37  ;;  %v2498_v55 = vmul.f32 0.044715, %v2482_v5  ;;  %v2886_v9 = vpop.eup %2885  ;;  %v8170_v31 = vld [vmem:[#allocation147_spill] sm:$0xff] }
 0x430   :  { %v6939_v47 = vpop.permute.xlu0 %2234  ;;  %v2063_v28 = vmul.f32 %v6481_v25, %v8165_v56  ;;  %v2064_v49 = vmul.f32 %v8167_v4, %v8166_v16  ;;  %v2067_v10 = vmul.f32 %v6481_v25, %v8168_v39  ;;  %v2068_v15 = vmul.f32 %v8167_v4, %v8169_v53 }
 0x431   :  { %v6964_v45 = vmul.f32 %v2569_v17, %v2457_v14  ;;  %v6966_v8 = vmul.f32 %v2570_v57, %v2458_v48  ;;  %v2510_v21 = vadd.f32 %v2494_v24, %v6729_v34  ;;  %v2065_v3 = vmul.f32 %v6524_v62, %v2008_v6  ;;  %v8171_v17 = vld [vmem:[#allocation141_spill] sm:$0xff]  ;;  %v8173_v48 = vld [vmem:[#allocation134_spill] sm:$0xff] }
 0x432   :  { %v2888_v54 = vpop.eup %2887  ;;  %v2066_v19 = vmul.f32 %v6522_v26, %v2032_v22  ;;  %v2447_v51 = vmul.f32 0.5, %v6732_v35  ;;  %v6973_v63 = vmul.f32 0.5, %v6735_v59  ;;  %v2563_v12 = vadd.f32 1.0, %v2886_v9  ;;  %v8172_v24 = vld [vmem:[#allocation137_spill] sm:$0xff] }
 0x433   :  { %v2513_v43 = vadd.f32 %v2497_v46, %v6775_v7  ;;  %v2525_v61 = vmul.f32 0.7978846, %v2509_v23  ;;  %v2514_v52 = vadd.f32 %v2498_v55, %v6778_v58  ;;  %v2286_v36 = vsel %vm2256_vm8, %v8170_v31, %v6936_v1  ;;  %v8174_v23 = vld [vmem:[#allocation135_spill] sm:$0xff] }
 0x434   :  { %v2890_v60 = vpop.eup %2889  ;;  %v2262_v35 = vsel %vm2256_vm8, %v6939_v47, %v8170_v31  ;;  %v2009_v57 = vsel %vm2003_vm7, %v8171_v17, %v6885_v41  ;;  %v2033_v2 = vsel %vm2003_vm7, %v6885_v41, %v8172_v24  ;;  %v2564_v6 = vadd.f32 1.0, %v2888_v54  ;;  %v8179_v17 = vld [vmem:[#allocation138_spill] sm:$0xff] }
 0x435   :  { %v2249_v0 = vpop.permute.xlu1 %2248  ;;  %v2892_v14 = vpop.eup %2891  ;;  %v2526_v40 = vmul.f32 0.7978846, %v2510_v21  ;;  %v2451_v22 = vmul.f32 0.5, %v6751_v13  ;;  %v2452_v29 = vmul.f32 0.5, %v6753_v27  ;;  %v2323_v9 = vmul.f32 %v6594_v18, %v2286_v36 }
 0x436   :  { %v2322_v56 = vmul.f32 %v6596_v32, %v2262_v35  ;;  %v2529_v16 = vmul.f32 0.7978846, %v2513_v43  ;;  %v2069_v41 = vmul.f32 %v6524_v62, %v2009_v57  ;;  %v2070_v4 = vmul.f32 %v6522_v26, %v2033_v2  ;;  %v7005_v21 = vpop.permute.xlu2 %2368  ;;  %v8175_v62 = vld [vmem:[#allocation145_spill] sm:$0xff] }
 0x437   :  { %2893 = vtanh.f32 %v2525_v61  ;;  %v2579_v27 = vmul.f32 %v2563_v12, %v2451_v22  ;;  %v2580_v39 = vmul.f32 %v2564_v6, %v2452_v29  ;;  %v2530_v53 = vmul.f32 0.7978846, %v2514_v52  ;;  %v8176_v52 = vld [vmem:[#allocation146_spill] sm:$0xff]  ;;  %v8180_v6 = vld [vmem:[#allocation131_spill] sm:$0xff] }
 0x438   :  { %v2111_v25 = vpop.permute.xlu0 %2110  ;;  %2895 = vtanh.f32 %v2526_v40  ;;  %v2403_v43 = vmul.f32 %v7005_v21, %v2322_v56  ;;  %v2261_v26 = vsel %vm2256_vm8, %v8175_v62, %v2249_v0  ;;  %v2285_v12 = vsel %vm2256_vm8, %v2249_v0, %v6914_v11  ;;  %v8181_v0 = vld [vmem:[#allocation85_spill] sm:$0xff] }
 0x439   :  { %v2144_v59 = vmul.f32 %v2111_v25, %v2063_v28  ;;  %v2145_v5 = vmul.f32 %v2111_v25, %v2064_v49  ;;  %v2559_v28 = vadd.f32 1.0, %v2890_v60  ;;  %v2560_v49 = vadd.f32 1.0, %v2892_v14 }
 0x43a   :  { %v2404_v60 = vmul.f32 %v7005_v21, %v2323_v9  ;;  %2897 = vtanh.f32 %v2529_v16 }
 0x43b   :  { %v6996_v46 = vadd.f32 %v2144_v59, %v8173_v48  ;;  %v6999_v55 = vadd.f32 %v2145_v5, %v8174_v23  ;;  %v8178_v5 = vld [vmem:[#allocation150_spill] sm:$0xff]  ;;  %v2146_v48 = vmul.f32 %v2111_v25, %v2065_v3  ;;  %v2147_v23 = vmul.f32 %v2111_v25, %v2066_v19 }
 0x43c   :  { %v2576_v19 = vmul.f32 %v2560_v49, %v6973_v63  ;;  %2899 = vtanh.f32 %v2530_v53 }
 0x43d   :  { %v2116_v13 = vpop.permute.xlu1 %2115  ;;  %v2894_v29 = vpop.eup %2893 }
 0x43e   :  { %v2148_v54 = vmul.f32 %v2116_v13, %v2067_v10  ;;  %v2149_v31 = vmul.f32 %v2116_v13, %v2068_v15  ;;  %v2150_v36 = vmul.f32 %v2116_v13, %v2069_v41  ;;  %v2151_v59 = vmul.f32 %v2116_v13, %v2070_v4  ;;  %v8177_v15 = vld [vmem:[#allocation156_spill] sm:$0xff]  ;;  %v2896_v41 = vpop.eup %2895  ;;  %v8182_v4 = vld [vmem:[#allocation153_spill] sm:$0xff] }
 0x440   :  { %v2223_v61 = vpop.permute.xlu0 %2222  ;;  %v2182_v14 = vadd.f32 %v2150_v36, %v8178_v5  ;;  %v2183_v57 = vadd.f32 %v2151_v59, %v8179_v17  ;;  %v7026_v40 = vadd.f32 %v2148_v54, %v8180_v6  ;;  %v7029_v22 = vadd.f32 %v2149_v31, %v8181_v0  ;;  %v2898_v53 = vpop.eup %2897 }
 0x441   :  { %v2272_v10 = vsel %vm2256_vm8, %v2223_v61, %v8176_v52  ;;  %v2280_v35 = vsel %vm2256_vm8, %v8177_v15, %v2223_v61  ;;  %v2575_v59 = vmul.f32 %v2559_v28, %v2447_v51  ;;  %v2318_v61 = vmul.f32 %v6596_v32, %v2261_v26  ;;  %v8184_v51 = vld [vmem:[#allocation133_spill] sm:$0xff] }
 0x442   :  { %v2328_v24 = vmul.f32 %v6608_v42, %v2280_v35  ;;  %v2329_v2 = vmul.f32 %v6610_v50, %v2272_v10  ;;  %v2435_v9 = vadd.f32 %v2403_v43, %v2182_v14  ;;  %v2436_v56 = vadd.f32 %v2404_v60, %v2183_v57  ;;  %v8183_v43 = vld [vmem:[#allocation78_spill] sm:$0xff]  ;;  %v2900_v17 = vpop.eup %2899 }
 0x443   :  { %v2319_v54 = vmul.f32 %v6594_v18, %v2285_v12  ;;  %v2178_v35 = vadd.f32 %v2146_v48, %v8183_v43  ;;  %v2179_v28 = vadd.f32 %v2147_v23, %v8184_v51  ;;  %v2561_v0 = vadd.f32 1.0, %v2898_v53 }
 0x444   :  { %v2409_v13 = vmul.f32 %v8182_v4, %v2328_v24  ;;  %v2410_v36 = vmul.f32 %v8182_v4, %v2329_v2  ;;  %v2595_v52 = vmul.f32 %v2579_v27, %v2435_v9  ;;  %v2596_v10 = vmul.f32 %v2580_v39, %v2436_v56 }
 0x445   :  { %v2364_v31 = vpop.permute.xlu1 %2363  ;;  %v2557_v27 = vadd.f32 1.0, %v2894_v29  ;;  %v2558_v39 = vadd.f32 1.0, %v2896_v41  ;;  %v2446_v24 = vmul.f32 0.5, %v6729_v34  ;;  %v2562_v56 = vadd.f32 1.0, %v2900_v17 }
 0x446   :  { %v2441_v15 = vadd.f32 %v2409_v13, %v6902_v38  ;;  %v2442_v3 = vadd.f32 %v2410_v36, %v6905_v20  ;;  %v2399_v25 = vmul.f32 %v2364_v31, %v2318_v61  ;;  %v2400_v60 = vmul.f32 %v2364_v31, %v2319_v54 }
 0x447   :  { %v2574_v9 = vmul.f32 %v2558_v39, %v2446_v24 }
 0x448   :  { %v2217_v16 = vpop.permute.xlu0 %2216  ;;  %v2601_v32 = vmul.f32 %v6964_v45, %v2441_v15  ;;  %v2602_v18 = vmul.f32 %v6966_v8, %v2442_v3  ;;  %v2431_v63 = vadd.f32 %v2399_v25, %v2178_v35  ;;  %v2432_v49 = vadd.f32 %v2400_v60, %v2179_v28 }
 0x449   :  { %v2269_v38 = vsel %vm2256_vm8, %v2217_v16, %v8175_v62  ;;  %v2277_v20 = vsel %vm2256_vm8, %v6914_v11, %v2217_v16  ;;  %v2445_v11 = vmul.f32 0.5, %v6726_v37 }
 0x44a   :  { %v2316_v26 = vmul.f32 %v6608_v42, %v2277_v20  ;;  %v2317_v12 = vmul.f32 %v6610_v50, %v2269_v38  ;;  %v2611_v45 = vpack.c.bf16 %v2601_v32, %v6926_v33  ;;  %v2612_v8 = vpack.c.bf16 %v2602_v18, %v6928_v44  ;;  %v2853_v33 = vld [vmem:[%s7085_s5] sm:$0xff]  ;;  %s2939_s5 = smov [#allocation2]  }
 0x44b   :  { %v2591_v5 = vmul.f32 %v2575_v59, %v2431_v63  ;;  %v2592_v14 = vmul.f32 %v2576_v19, %v2432_v49  ;;  %v2573_v48 = vmul.f32 %v2557_v27, %v2445_v11  ;;  %v2577_v59 = vmul.f32 %v2561_v0, %v2449_v30  ;;  %s2704_s10 = sshll.u32 %s2939_s5, 4  ;;  %s2705_s10 = int_to_ptr.vmem [resolvable:$true] %s2704_s10 }
 0x44c   :  { %v2397_v57 = vmul.f32 %v2364_v31, %v2316_v26  ;;  %v2398_v62 = vmul.f32 %v2364_v31, %v2317_v12  ;;  %2642 = vmatpush.bf16.msrb.mxu0 %v2611_v45  ;;  %2656 = vmatpush.bf16.msrb.mxu1 %v2612_v8 }
 0x44d   :  { %v2609_v2 = vpack.c.bf16 %v2595_v52, %v2591_v5  ;;  %v2610_v6 = vpack.c.bf16 %v2596_v10, %v2592_v14  ;;  %v2219_v29 = vpop.permute.xlu1 %2218 }
 0x44e   :  { %v2429_v44 = vadd.f32 %v2397_v57, %v6996_v46  ;;  %v2430_v23 = vadd.f32 %v2398_v62, %v6999_v55  ;;  %v2270_v37 = vsel %vm2256_vm8, %v2219_v29, %v6939_v47  ;;  %v2278_v34 = vsel %vm2256_vm8, %v6936_v1, %v2219_v29 }
 0x44f   :  { %2671 = vmatpush.bf16.msrb.mxu2 %v2609_v2  ;;  %2685 = vmatpush.bf16.msrb.mxu3 %v2610_v6  ;;  %v2320_v41 = vmul.f32 %v6608_v42, %v2278_v34  ;;  %v2321_v46 = vmul.f32 %v6610_v50, %v2270_v37  ;;  %v2450_v1 = vmul.f32 0.5, %v6778_v58 }
 0x450   :  { %v2589_v4 = vmul.f32 %v2573_v48, %v2429_v44  ;;  %v2590_v13 = vmul.f32 %v2574_v9, %v2430_v23  ;;  %v2625_v25 = vpop.permute.xlu0 %2624 }
 0x451   :  { %v2401_v55 = vmul.f32 %v7005_v21, %v2320_v41  ;;  %v2402_v36 = vmul.f32 %v7005_v21, %v2321_v46  ;;  %v2578_v50 = vmul.f32 %v2562_v56, %v2450_v1  ;;  %v2620_v21 = vpop.permute.xlu2 %2619 }
 0x452   :  { %2843 = vmatmul.msk.bf16.vlgmr.msrb.gmra.mxu2 %vm2632_vm9, %v2853_v33  ;;  %2844 = vmatmul.msk.bf16.vlgmr.msrb.gmra.mxu3 %vm2632_vm9, %v2853_v33 }
 0x453   :  { %v2433_v47 = vadd.f32 %v2401_v55, %v7026_v40  ;;  %v2434_v42 = vadd.f32 %v2402_v36, %v7029_v22 }
 0x455   :  { %v2593_v61 = vmul.f32 %v2577_v59, %v2433_v47  ;;  %v2594_v54 = vmul.f32 %v2578_v50, %v2434_v42 }
 0x457   :  { %v2607_v52 = vpack.c.bf16 %v2593_v61, %v2589_v4  ;;  %v2608_v10 = vpack.c.bf16 %v2594_v54, %v2590_v13 }
 0x459   :  { %2643 = vmatpush.bf16.msrb.mxu0 %v2607_v52  ;;  %2657 = vmatpush.bf16.msrb.mxu1 %v2608_v10 }
 0x45c   :  { %2841 = vmatmul.msk.bf16.vlgmr.msrb.gmra.mxu0 %vm2632_vm9, %v2853_v33  ;;  %2842 = vmatmul.msk.bf16.vlgmr.msrb.gmra.mxu1 %vm2632_vm9, %v2853_v33 }
 0x4d5   :  { %v2673_v7 = vpop.f32.mrf.mxu2  ;;  %v2687_v31 = vpop.f32.mrf.mxu3 }
 0x4d6   :  { %v2674_v58 = vadd.f32 %v2673_v7, %v2620_v21  ;;  %v2688_v15 = vadd.f32 %v2687_v31, %v2620_v21 }
 0x4d8   :  { %2694 = vst [vmem:[#allocation2 + $0x10] sm:$0xff] %v2674_v58 }
 0x4d9   :  { %2695 = vst [vmem:[#allocation2 + $0x18] sm:$0xff] %v2688_v15  ;;  %v2645_v40 = vpop.f32.mrf.mxu0  ;;  %v2659_v22 = vpop.f32.mrf.mxu1 }
 0x4da   :  { %v2646_v3 = vadd.f32 %v2645_v40, %v2620_v21  ;;  %v2660_v19 = vadd.f32 %v2659_v22, %v2620_v21 }
 0x4dc   :  { %2692 = vst [vmem:[#allocation2] sm:$0xff] %v2646_v3 }
 0x4dd   :  { %v2675_v60 = vpop.f32.mrf.mxu2  ;;  %v2689_v43 = vpop.f32.mrf.mxu3  ;;  %2693 = vst [vmem:[#allocation2 + $0x8] sm:$0xff] %v2660_v19 }
 0x4de   :  { %v2676_v35 = vadd.f32 %v2675_v60, %v2625_v25  ;;  %v2690_v51 = vadd.f32 %v2689_v43, %v2625_v25 }
 0x4e0   :  { %2698 = vst [vmem:[#allocation2 + $0x30] sm:$0xff] %v2676_v35 }
 0x4e1   :  { %2699 = vst [vmem:[#allocation2 + $0x38] sm:$0xff] %v2690_v51  ;;  %v2647_v28 = vpop.f32.mrf.mxu0  ;;  %v2661_v16 = vpop.f32.mrf.mxu1 }
 0x4e2   :  { %v2648_v32 = vadd.f32 %v2647_v28, %v2625_v25  ;;  %v2662_v18 = vadd.f32 %v2661_v16, %v2625_v25 }
 0x4e4   :  { %2696 = vst [vmem:[#allocation2 + $0x20] sm:$0xff] %v2648_v32 }
 0x4e5   :  { %2697 = vst [vmem:[#allocation2 + $0x28] sm:$0xff] %v2662_v18 }
 0x4e6   :  { %2712 = dma.vmem_to_hbm [thread:$0]  %s2705_s10, 1024, %s2707_s12, [#allocation3], %s2940_s13, %s2940_s13, %s2941_s15  }
 0x4e7   :  { %2928 = dma.done.wait [#allocation3], 1024  }
 0x4e8   :  { %2929 = vsyncadd [#allocation3], 4294966272 }
 0x4e9   :  { %2717 = vsyncpa [#allocation3], 1 }

</bundles_post_ra>
